<compile_context>
chip_gen: v7x
topology: tpu7x:2x2x1
jax: 0.10.0
libtpu: 0.0.40
codegen_flags: <defaults>
</compile_context>

<pallas_src>
import functools

import numpy as np
import jax
import jax.numpy as jnp
from jax.experimental import pallas as pl
from jax.experimental.pallas import tpu as pltpu

BN_EPS = 1e-5


def _vmem_spec():
    return pl.BlockSpec(memory_space=pltpu.MemorySpace.VMEM)


# ----------------------------- in-kernel helpers ----------------------------- #

def _pool_to_padded(src, *, N, Hin, Win, C, row_of):
    """2x2 max-pool a lane-packed row slab into a zero-haloed conv-input slab.

    src    : (rows, Win*C) value; spatial row i of image n lives at row_of(n, i),
             lanes [w*C:(w+1)*C] hold the channels of pixel w.
    returns: (N*(Ho+2), (Wo+2)*C) value with a one-pixel zero halo on every side
             (separate halo rows per image), Ho = Hin//2, Wo = Win//2.
    """
    Ho, Wo = Hin // 2, Win // 2
    # vertical max over row pairs (unrolled; N*Ho <= 16 at these shapes)
    vrows = [jnp.maximum(src[row_of(n, 2 * i)], src[row_of(n, 2 * i + 1)])
             for n in range(N) for i in range(Ho)]
    t = jnp.stack(vrows)                                        # (N*Ho, Win*C)
    # horizontal max over adjacent C-wide lane groups (Wo static lane slices)
    parts = [jnp.maximum(t[:, (2 * j) * C:(2 * j + 1) * C],
                         t[:, (2 * j + 1) * C:(2 * j + 2) * C])
             for j in range(Wo)]
    p = jnp.concatenate(parts, axis=1)                          # (N*Ho, Wo*C)
    # insert zero halo rows (top/bottom of each image) and zero halo lane groups
    zrow = jnp.zeros((1, Wo * C), p.dtype)
    blocks = []
    for n in range(N):
        blocks += [zrow, p[n * Ho:(n + 1) * Ho], zrow]
    xc = jnp.concatenate(blocks, axis=0)                        # (N*(Ho+2), Wo*C)
    zc = jnp.zeros((N * (Ho + 2), C), p.dtype)
    return jnp.concatenate([zc, xc, zc], axis=1)                # (N*(Ho+2), (Wo+2)*C)


def _conv_bn_relu(xpad, wmat, gamma, beta, *, N, Ho, Wo, Cout):
    """3x3 conv (single MXU matmul) + training-mode BN + ReLU on the packed slab.

    xpad : (NR, (Wo+2)*Cin) f32, NR = N*(Ho+2), zero halo rows / lane groups.
    wmat : (3*(Wo+2)*Cin, Wo*Cout) bf16 banded weight slab (dy & dx taps folded
           into the contraction dimension).
    out  : (NR, Wo*Cout) f32 with halo rows zeroed (directly usable as the next
           conv's / next layer's padded input and as the lane-dense output).
    """
    NR = N * (Ho + 2)
    xb = xpad.astype(jnp.bfloat16)                      # cast once per conv
    zr = jnp.zeros((1, xb.shape[1]), jnp.bfloat16)
    up = jnp.concatenate([zr, xb[:-1]], axis=0)         # row r -> xpad[r-1] (dy=-1)
    dn = jnp.concatenate([xb[1:], zr], axis=0)          # row r -> xpad[r+1] (dy=+1)
    lhs = jnp.concatenate([up, xb, dn], axis=1)         # (NR, 3*(Wo+2)*Cin)
    y = jnp.dot(lhs, wmat, preferred_element_type=jnp.float32)   # (NR, Wo*Cout)

    # row validity: local rows 0 and Ho+1 of every image block are halo rows
    loc = jax.lax.broadcasted_iota(jnp.int32, (NR, 1), 0) % (Ho + 2)
    valid = jnp.logical_and(loc >= 1, loc <= Ho)
    inv_cnt = 1.0 / float(N * Ho * Wo)

    def per_channel(v):                                  # (Wo*Cout,) -> (Cout,)
        s = v[0:Cout]
        for j in range(1, Wo):
            s = s + v[j * Cout:(j + 1) * Cout]
        return s

    col_sum = jnp.sum(jnp.where(valid, y, 0.0), axis=0)            # (Wo*Cout,)
    mean = per_channel(col_sum) * inv_cnt                          # (Cout,)
    d = y - jnp.concatenate([mean] * Wo)
    col_sq = jnp.sum(jnp.where(valid, d * d, 0.0), axis=0)
    var = per_channel(col_sq) * inv_cnt                            # biased var
    scale = jax.lax.rsqrt(var + BN_EPS) * gamma                    # fold gamma
    h = jnp.maximum(d * jnp.concatenate([scale] * Wo)
                    + jnp.concatenate([beta] * Wo), 0.0)
    return jnp.where(valid, h, 0.0)                      # zero the halo rows


def _encoder_kernel(*refs, N, Hin, Win, layer_dims):
    """Fused UNet encoder: all Down layers in one invocation, all in VMEM."""
    n_layers = len(layer_dims)
    x_ref = refs[0]
    w_refs = refs[1:1 + 3 * n_layers]
    o_refs = refs[1 + 3 * n_layers:]

    src = x_ref[...]                                     # (N*Hin, Win*Cin0) f32
    H, W = Hin, Win
    row_of = lambda n, i, _h=Hin: n * _h + i             # raw input slab rows
    for l, (Cin, Cout) in enumerate(layer_dims):
        w1_ref, w2_ref, bn_ref = w_refs[3 * l:3 * l + 3]
        bn = bn_ref[...]                                 # (4, Cout): g1, b1, g2, b2
        Ho, Wo = H // 2, W // 2

        xpad = _pool_to_padded(src, N=N, Hin=H, Win=W, C=Cin, row_of=row_of)
        h1 = _conv_bn_relu(xpad, w1_ref[...], bn[0], bn[1],
                           N=N, Ho=Ho, Wo=Wo, Cout=Cout)
        zc = jnp.zeros((N * (Ho + 2), Cout), h1.dtype)   # lane halo for conv2
        h2 = _conv_bn_relu(jnp.concatenate([zc, h1, zc], axis=1),
                           w2_ref[...], bn[2], bn[3],
                           N=N, Ho=Ho, Wo=Wo, Cout=Cout)

        o_refs[l][...] = h2                              # lane-dense full-slab store
        src = h2                                         # stays in registers/VMEM
        H, W = Ho, Wo
        row_of = lambda n, i, _b=Ho + 2: n * _b + 1 + i  # skip this layer's halo rows


# ------------------------------- op wrapper ---------------------------------- #

def _conv_weight_slab(w, Wo):
    """OIHW (Cout, Cin, 3, 3) -> banded (3*(Wo+2)*Cin, Wo*Cout) bf16 matrix so the
    3x3 conv over a lane-packed, zero-haloed row slab is a single matmul."""
    Cout, Cin = int(w.shape[0]), int(w.shape[1])
    sel = np.zeros((3, Wo + 2, Wo), np.float32)          # sel[dx, j_in, j_out]
    for dx in range(3):
        for jo in range(Wo):
            sel[dx, jo + dx, jo] = 1.0
    wt = jnp.transpose(w, (2, 3, 1, 0))                  # (dy, dx, Cin, Cout)
    b = jnp.einsum('xjo,yxic->yjioc', jnp.asarray(sel), wt)
    return b.reshape(3 * (Wo + 2) * Cin, Wo * Cout).astype(jnp.bfloat16)


def _unet_encoder_forward_impl(x_nchw, params):
    N, C0, H, W = x_nchw.shape
    x_nhwc = jnp.transpose(x_nchw, (0, 2, 3, 1))
    x_slab = x_nhwc.reshape(N * H, W * C0)               # lane-packed row slab

    layer_dims, geoms, args = [], [], [x_slab]
    h, w, cin = H, W, C0
    for layer in params:
        assert h % 2 == 0 and w % 2 == 0, "spatial dims must stay even"
        cout = int(layer["w0"].shape[0])
        ho, wo = h // 2, w // 2
        layer_dims.append((cin, cout))
        geoms.append((ho, wo, cout))
        args.append(_conv_weight_slab(layer["w0"], wo))
        args.append(_conv_weight_slab(layer["w1"], wo))
        args.append(jnp.stack([layer["gamma0"], layer["beta0"],
                               layer["gamma1"], layer["beta1"]]).astype(jnp.float32))
        # NOTE: conv biases are intentionally NOT passed to the kernel - a
        # per-channel constant before training-mode BatchNorm is exactly
        # cancelled by the mean subtraction.
        h, w, cin = ho, wo, cout

    kernel = functools.partial(_encoder_kernel, N=N, Hin=H, Win=W,
                               layer_dims=tuple(layer_dims))
    out_shape = tuple(jax.ShapeDtypeStruct((N * (ho + 2), wo * co), jnp.float32)
                      for (ho, wo, co) in geoms)
    outs = pl.pallas_call(
        kernel,
        out_shape=out_shape,
        in_specs=[_vmem_spec()] * len(args),
        out_specs=tuple(_vmem_spec() for _ in geoms),
        compiler_params=pltpu.CompilerParams(vmem_limit_bytes=32 * 1024 * 1024),
    )(*args)

    feats = [x_nchw]
    for (ho, wo, co), slab in zip(geoms, outs):
        f = slab.reshape(N, ho + 2, wo, co)[:, 1:ho + 1]   # drop zero halo rows
        feats.append(jnp.transpose(f, (0, 3, 1, 2)))       # NHWC -> NCHW
    feats.reverse()
    return feats


unet_encoder_forward = jax.jit(_unet_encoder_forward_impl)


# --------------------------- UNet_Encoder parameters ------------------------- #

def init_params(topology, key):
    """Deterministic parameter init mirroring the PyTorch module's shapes."""
    params = []
    n_layers = len(topology)
    for idx in range(n_layers):
        in_ch = topology[idx]
        out_ch = topology[idx + 1] if idx != n_layers - 1 else topology[idx]
        layer = {}
        for j, (ci, co) in enumerate([(in_ch, out_ch), (out_ch, out_ch)]):
            key, kw, kb = jax.random.split(key, 3)
            fan_in = ci * 9
            layer[f"w{j}"] = (jax.random.normal(kw, (co, ci, 3, 3), jnp.float32)
                              / jnp.sqrt(fan_in))
            layer[f"b{j}"] = jax.random.normal(kb, (co,), jnp.float32) * 0.01
            layer[f"gamma{j}"] = jnp.ones((co,), jnp.float32)
            layer[f"beta{j}"] = jnp.zeros((co,), jnp.float32)
        params.append(layer)
    return params


# ------------------------ pure-JAX reference (check) ------------------------- #

def _ref_forward(x_nchw, params):
    """XLA reference with the same bf16-operand / f32-accumulate conv math."""
    def conv_bn_relu(h, w, bias, g, be):
        hb = h.astype(jnp.bfloat16).astype(jnp.float32)
        wb = w.astype(jnp.bfloat16).astype(jnp.float32)
        y = jax.lax.conv_general_dilated(
            hb, wb, window_strides=(1, 1), padding="SAME",
            dimension_numbers=("NHWC", "OIHW", "NHWC"))
        y = y + bias
        m = jnp.mean(y, axis=(0, 1, 2), keepdims=True)
        v = jnp.mean((y - m) ** 2, axis=(0, 1, 2), keepdims=True)
        return jnp.maximum((y - m) * jax.lax.rsqrt(v + BN_EPS) * g + be, 0.0)

    x = jnp.transpose(x_nchw, (0, 2, 3, 1))
    feats = [x]
    for layer in params:
        h = feats[-1]
        n, hh, ww, c = h.shape
        h = h.reshape(n, hh // 2, 2, ww // 2, 2, c).max(axis=(2, 4))
        h = conv_bn_relu(h, layer["w0"], layer["b0"], layer["gamma0"], layer["beta0"])
        h = conv_bn_relu(h, layer["w1"], layer["b1"], layer["gamma1"], layer["beta1"])
        feats.append(h)
    feats.reverse()
    return [jnp.transpose(f, (0, 3, 1, 2)) for f in feats]


if __name__ == "__main__":
    topology = (4, 8, 16)          # 3 Down layers: 4->8, 8->16, 16->16
    key = jax.random.PRNGKey(0)
    key, kx = jax.random.split(key)
    x = jax.random.normal(kx, (2, 4, 16, 16), jnp.float32)   # NCHW input

    params = init_params(topology, key)
    outs = unet_encoder_forward(x, params)
    outs = [jax.block_until_ready(o) for o in outs]

    expected_shapes = [(2, 16, 2, 2), (2, 16, 4, 4), (2, 8, 8, 8), (2, 4, 16, 16)]
    assert [tuple(o.shape) for o in outs] == expected_shapes, \
        [tuple(o.shape) for o in outs]
    assert all(bool(jnp.all(jnp.isfinite(o))) for o in outs)

    refs = _ref_forward(x, params)
    for o, r in zip(outs, refs):
        assert bool(jnp.allclose(o, r, rtol=5e-3, atol=5e-3)), \
            float(jnp.max(jnp.abs(o - r)))
    print("KERNEL_OK")
</pallas_src>

<mosaic_0001>
module attributes {stable_mosaic.version = 11 : i64} {
  func.func @_encoder_kernel(%arg0: memref<32x64xf32, #tpu.memory_space<vmem>>, %arg1: memref<120x64xbf16, #tpu.memory_space<vmem>>, %arg2: memref<240x64xbf16, #tpu.memory_space<vmem>>, %arg3: memref<4x8xf32, #tpu.memory_space<vmem>>, %arg4: memref<144x64xbf16, #tpu.memory_space<vmem>>, %arg5: memref<288x64xbf16, #tpu.memory_space<vmem>>, %arg6: memref<4x16xf32, #tpu.memory_space<vmem>>, %arg7: memref<192x32xbf16, #tpu.memory_space<vmem>>, %arg8: memref<192x32xbf16, #tpu.memory_space<vmem>>, %arg9: memref<4x16xf32, #tpu.memory_space<vmem>>, %arg10: memref<20x64xf32, #tpu.memory_space<vmem>>, %arg11: memref<12x64xf32, #tpu.memory_space<vmem>>, %arg12: memref<8x32xf32, #tpu.memory_space<vmem>>) attributes {dimension_semantics = [], scalar_prefetch = 0 : i64, scratch_operands = 0 : i64, tpu.core_type = #tpu.core_type<tc>} {
    %c0 = arith.constant 0 : index
    %c0_0 = arith.constant 0 : index
    %0 = vector.load %arg0[%c0, %c0_0] : memref<32x64xf32, #tpu.memory_space<vmem>>, vector<32x64xf32>
    %c0_1 = arith.constant 0 : index
    %c0_2 = arith.constant 0 : index
    %1 = vector.load %arg3[%c0_1, %c0_2] : memref<4x8xf32, #tpu.memory_space<vmem>>, vector<4x8xf32>
    %2 = vector.extract_strided_slice %0 {offsets = [0, 0], sizes = [1, 64], strides = [1, 1]} : vector<32x64xf32> to vector<1x64xf32>
    %3 = vector.shape_cast %2 : vector<1x64xf32> to vector<64xf32>
    %4 = vector.extract_strided_slice %0 {offsets = [1, 0], sizes = [1, 64], strides = [1, 1]} : vector<32x64xf32> to vector<1x64xf32>
    %5 = vector.shape_cast %4 : vector<1x64xf32> to vector<64xf32>
    %6 = arith.maximumf %3, %5 : vector<64xf32>
    %7 = vector.extract_strided_slice %0 {offsets = [2, 0], sizes = [1, 64], strides = [1, 1]} : vector<32x64xf32> to vector<1x64xf32>
    %8 = vector.shape_cast %7 : vector<1x64xf32> to vector<64xf32>
    %9 = vector.extract_strided_slice %0 {offsets = [3, 0], sizes = [1, 64], strides = [1, 1]} : vector<32x64xf32> to vector<1x64xf32>
    %10 = vector.shape_cast %9 : vector<1x64xf32> to vector<64xf32>
    %11 = arith.maximumf %8, %10 : vector<64xf32>
    %12 = vector.extract_strided_slice %0 {offsets = [4, 0], sizes = [1, 64], strides = [1, 1]} : vector<32x64xf32> to vector<1x64xf32>
    %13 = vector.shape_cast %12 : vector<1x64xf32> to vector<64xf32>
    %14 = vector.extract_strided_slice %0 {offsets = [5, 0], sizes = [1, 64], strides = [1, 1]} : vector<32x64xf32> to vector<1x64xf32>
    %15 = vector.shape_cast %14 : vector<1x64xf32> to vector<64xf32>
    %16 = arith.maximumf %13, %15 : vector<64xf32>
    %17 = vector.extract_strided_slice %0 {offsets = [6, 0], sizes = [1, 64], strides = [1, 1]} : vector<32x64xf32> to vector<1x64xf32>
    %18 = vector.shape_cast %17 : vector<1x64xf32> to vector<64xf32>
    %19 = vector.extract_strided_slice %0 {offsets = [7, 0], sizes = [1, 64], strides = [1, 1]} : vector<32x64xf32> to vector<1x64xf32>
    %20 = vector.shape_cast %19 : vector<1x64xf32> to vector<64xf32>
    %21 = arith.maximumf %18, %20 : vector<64xf32>
    %22 = vector.extract_strided_slice %0 {offsets = [8, 0], sizes = [1, 64], strides = [1, 1]} : vector<32x64xf32> to vector<1x64xf32>
    %23 = vector.shape_cast %22 : vector<1x64xf32> to vector<64xf32>
    %24 = vector.extract_strided_slice %0 {offsets = [9, 0], sizes = [1, 64], strides = [1, 1]} : vector<32x64xf32> to vector<1x64xf32>
    %25 = vector.shape_cast %24 : vector<1x64xf32> to vector<64xf32>
    %26 = arith.maximumf %23, %25 : vector<64xf32>
    %27 = vector.extract_strided_slice %0 {offsets = [10, 0], sizes = [1, 64], strides = [1, 1]} : vector<32x64xf32> to vector<1x64xf32>
    %28 = vector.shape_cast %27 : vector<1x64xf32> to vector<64xf32>
    %29 = vector.extract_strided_slice %0 {offsets = [11, 0], sizes = [1, 64], strides = [1, 1]} : vector<32x64xf32> to vector<1x64xf32>
    %30 = vector.shape_cast %29 : vector<1x64xf32> to vector<64xf32>
    %31 = arith.maximumf %28, %30 : vector<64xf32>
    %32 = vector.extract_strided_slice %0 {offsets = [12, 0], sizes = [1, 64], strides = [1, 1]} : vector<32x64xf32> to vector<1x64xf32>
    %33 = vector.shape_cast %32 : vector<1x64xf32> to vector<64xf32>
    %34 = vector.extract_strided_slice %0 {offsets = [13, 0], sizes = [1, 64], strides = [1, 1]} : vector<32x64xf32> to vector<1x64xf32>
    %35 = vector.shape_cast %34 : vector<1x64xf32> to vector<64xf32>
    %36 = arith.maximumf %33, %35 : vector<64xf32>
    %37 = vector.extract_strided_slice %0 {offsets = [14, 0], sizes = [1, 64], strides = [1, 1]} : vector<32x64xf32> to vector<1x64xf32>
    %38 = vector.shape_cast %37 : vector<1x64xf32> to vector<64xf32>
    %39 = vector.extract_strided_slice %0 {offsets = [15, 0], sizes = [1, 64], strides = [1, 1]} : vector<32x64xf32> to vector<1x64xf32>
    %40 = vector.shape_cast %39 : vector<1x64xf32> to vector<64xf32>
    %41 = arith.maximumf %38, %40 : vector<64xf32>
    %42 = vector.extract_strided_slice %0 {offsets = [16, 0], sizes = [1, 64], strides = [1, 1]} : vector<32x64xf32> to vector<1x64xf32>
    %43 = vector.shape_cast %42 : vector<1x64xf32> to vector<64xf32>
    %44 = vector.extract_strided_slice %0 {offsets = [17, 0], sizes = [1, 64], strides = [1, 1]} : vector<32x64xf32> to vector<1x64xf32>
    %45 = vector.shape_cast %44 : vector<1x64xf32> to vector<64xf32>
    %46 = arith.maximumf %43, %45 : vector<64xf32>
    %47 = vector.extract_strided_slice %0 {offsets = [18, 0], sizes = [1, 64], strides = [1, 1]} : vector<32x64xf32> to vector<1x64xf32>
    %48 = vector.shape_cast %47 : vector<1x64xf32> to vector<64xf32>
    %49 = vector.extract_strided_slice %0 {offsets = [19, 0], sizes = [1, 64], strides = [1, 1]} : vector<32x64xf32> to vector<1x64xf32>
    %50 = vector.shape_cast %49 : vector<1x64xf32> to vector<64xf32>
    %51 = arith.maximumf %48, %50 : vector<64xf32>
    %52 = vector.extract_strided_slice %0 {offsets = [20, 0], sizes = [1, 64], strides = [1, 1]} : vector<32x64xf32> to vector<1x64xf32>
    %53 = vector.shape_cast %52 : vector<1x64xf32> to vector<64xf32>
    %54 = vector.extract_strided_slice %0 {offsets = [21, 0], sizes = [1, 64], strides = [1, 1]} : vector<32x64xf32> to vector<1x64xf32>
    %55 = vector.shape_cast %54 : vector<1x64xf32> to vector<64xf32>
    %56 = arith.maximumf %53, %55 : vector<64xf32>
    %57 = vector.extract_strided_slice %0 {offsets = [22, 0], sizes = [1, 64], strides = [1, 1]} : vector<32x64xf32> to vector<1x64xf32>
    %58 = vector.shape_cast %57 : vector<1x64xf32> to vector<64xf32>
    %59 = vector.extract_strided_slice %0 {offsets = [23, 0], sizes = [1, 64], strides = [1, 1]} : vector<32x64xf32> to vector<1x64xf32>
    %60 = vector.shape_cast %59 : vector<1x64xf32> to vector<64xf32>
    %61 = arith.maximumf %58, %60 : vector<64xf32>
    %62 = vector.extract_strided_slice %0 {offsets = [24, 0], sizes = [1, 64], strides = [1, 1]} : vector<32x64xf32> to vector<1x64xf32>
    %63 = vector.shape_cast %62 : vector<1x64xf32> to vector<64xf32>
    %64 = vector.extract_strided_slice %0 {offsets = [25, 0], sizes = [1, 64], strides = [1, 1]} : vector<32x64xf32> to vector<1x64xf32>
    %65 = vector.shape_cast %64 : vector<1x64xf32> to vector<64xf32>
    %66 = arith.maximumf %63, %65 : vector<64xf32>
    %67 = vector.extract_strided_slice %0 {offsets = [26, 0], sizes = [1, 64], strides = [1, 1]} : vector<32x64xf32> to vector<1x64xf32>
    %68 = vector.shape_cast %67 : vector<1x64xf32> to vector<64xf32>
    %69 = vector.extract_strided_slice %0 {offsets = [27, 0], sizes = [1, 64], strides = [1, 1]} : vector<32x64xf32> to vector<1x64xf32>
    %70 = vector.shape_cast %69 : vector<1x64xf32> to vector<64xf32>
    %71 = arith.maximumf %68, %70 : vector<64xf32>
    %72 = vector.extract_strided_slice %0 {offsets = [28, 0], sizes = [1, 64], strides = [1, 1]} : vector<32x64xf32> to vector<1x64xf32>
    %73 = vector.shape_cast %72 : vector<1x64xf32> to vector<64xf32>
    %74 = vector.extract_strided_slice %0 {offsets = [29, 0], sizes = [1, 64], strides = [1, 1]} : vector<32x64xf32> to vector<1x64xf32>
    %75 = vector.shape_cast %74 : vector<1x64xf32> to vector<64xf32>
    %76 = arith.maximumf %73, %75 : vector<64xf32>
    %77 = vector.extract_strided_slice %0 {offsets = [30, 0], sizes = [1, 64], strides = [1, 1]} : vector<32x64xf32> to vector<1x64xf32>
    %78 = vector.shape_cast %77 : vector<1x64xf32> to vector<64xf32>
    %79 = vector.extract_strided_slice %0 {offsets = [31, 0], sizes = [1, 64], strides = [1, 1]} : vector<32x64xf32> to vector<1x64xf32>
    %80 = vector.shape_cast %79 : vector<1x64xf32> to vector<64xf32>
    %81 = arith.maximumf %78, %80 : vector<64xf32>
    %82 = vector.shape_cast %6 : vector<64xf32> to vector<1x64xf32>
    %83 = vector.shape_cast %11 : vector<64xf32> to vector<1x64xf32>
    %84 = vector.shape_cast %16 : vector<64xf32> to vector<1x64xf32>
    %85 = vector.shape_cast %21 : vector<64xf32> to vector<1x64xf32>
    %86 = vector.shape_cast %26 : vector<64xf32> to vector<1x64xf32>
    %87 = vector.shape_cast %31 : vector<64xf32> to vector<1x64xf32>
    %88 = vector.shape_cast %36 : vector<64xf32> to vector<1x64xf32>
    %89 = vector.shape_cast %41 : vector<64xf32> to vector<1x64xf32>
    %90 = vector.shape_cast %46 : vector<64xf32> to vector<1x64xf32>
    %91 = vector.shape_cast %51 : vector<64xf32> to vector<1x64xf32>
    %92 = vector.shape_cast %56 : vector<64xf32> to vector<1x64xf32>
    %93 = vector.shape_cast %61 : vector<64xf32> to vector<1x64xf32>
    %94 = vector.shape_cast %66 : vector<64xf32> to vector<1x64xf32>
    %95 = vector.shape_cast %71 : vector<64xf32> to vector<1x64xf32>
    %96 = vector.shape_cast %76 : vector<64xf32> to vector<1x64xf32>
    %97 = vector.shape_cast %81 : vector<64xf32> to vector<1x64xf32>
    %98 = tpu.concatenate %82, %83, %84, %85, %86, %87, %88, %89, %90, %91, %92, %93, %94, %95, %96, %97 in 0 : vector<1x64xf32>, vector<1x64xf32>, vector<1x64xf32>, vector<1x64xf32>, vector<1x64xf32>, vector<1x64xf32>, vector<1x64xf32>, vector<1x64xf32>, vector<1x64xf32>, vector<1x64xf32>, vector<1x64xf32>, vector<1x64xf32>, vector<1x64xf32>, vector<1x64xf32>, vector<1x64xf32>, vector<1x64xf32> -> vector<16x64xf32>
    %99 = vector.extract_strided_slice %98 {offsets = [0, 0], sizes = [16, 4], strides = [1, 1]} : vector<16x64xf32> to vector<16x4xf32>
    %100 = vector.extract_strided_slice %98 {offsets = [0, 4], sizes = [16, 4], strides = [1, 1]} : vector<16x64xf32> to vector<16x4xf32>
    %101 = arith.maximumf %99, %100 : vector<16x4xf32>
    %102 = vector.extract_strided_slice %98 {offsets = [0, 8], sizes = [16, 4], strides = [1, 1]} : vector<16x64xf32> to vector<16x4xf32>
    %103 = vector.extract_strided_slice %98 {offsets = [0, 12], sizes = [16, 4], strides = [1, 1]} : vector<16x64xf32> to vector<16x4xf32>
    %104 = arith.maximumf %102, %103 : vector<16x4xf32>
    %105 = vector.extract_strided_slice %98 {offsets = [0, 16], sizes = [16, 4], strides = [1, 1]} : vector<16x64xf32> to vector<16x4xf32>
    %106 = vector.extract_strided_slice %98 {offsets = [0, 20], sizes = [16, 4], strides = [1, 1]} : vector<16x64xf32> to vector<16x4xf32>
    %107 = arith.maximumf %105, %106 : vector<16x4xf32>
    %108 = vector.extract_strided_slice %98 {offsets = [0, 24], sizes = [16, 4], strides = [1, 1]} : vector<16x64xf32> to vector<16x4xf32>
    %109 = vector.extract_strided_slice %98 {offsets = [0, 28], sizes = [16, 4], strides = [1, 1]} : vector<16x64xf32> to vector<16x4xf32>
    %110 = arith.maximumf %108, %109 : vector<16x4xf32>
    %111 = vector.extract_strided_slice %98 {offsets = [0, 32], sizes = [16, 4], strides = [1, 1]} : vector<16x64xf32> to vector<16x4xf32>
    %112 = vector.extract_strided_slice %98 {offsets = [0, 36], sizes = [16, 4], strides = [1, 1]} : vector<16x64xf32> to vector<16x4xf32>
    %113 = arith.maximumf %111, %112 : vector<16x4xf32>
    %114 = vector.extract_strided_slice %98 {offsets = [0, 40], sizes = [16, 4], strides = [1, 1]} : vector<16x64xf32> to vector<16x4xf32>
    %115 = vector.extract_strided_slice %98 {offsets = [0, 44], sizes = [16, 4], strides = [1, 1]} : vector<16x64xf32> to vector<16x4xf32>
    %116 = arith.maximumf %114, %115 : vector<16x4xf32>
    %117 = vector.extract_strided_slice %98 {offsets = [0, 48], sizes = [16, 4], strides = [1, 1]} : vector<16x64xf32> to vector<16x4xf32>
    %118 = vector.extract_strided_slice %98 {offsets = [0, 52], sizes = [16, 4], strides = [1, 1]} : vector<16x64xf32> to vector<16x4xf32>
    %119 = arith.maximumf %117, %118 : vector<16x4xf32>
    %120 = vector.extract_strided_slice %98 {offsets = [0, 56], sizes = [16, 4], strides = [1, 1]} : vector<16x64xf32> to vector<16x4xf32>
    %121 = vector.extract_strided_slice %98 {offsets = [0, 60], sizes = [16, 4], strides = [1, 1]} : vector<16x64xf32> to vector<16x4xf32>
    %122 = arith.maximumf %120, %121 : vector<16x4xf32>
    %123 = tpu.concatenate %101, %104, %107, %110, %113, %116, %119, %122 in 1 : vector<16x4xf32>, vector<16x4xf32>, vector<16x4xf32>, vector<16x4xf32>, vector<16x4xf32>, vector<16x4xf32>, vector<16x4xf32>, vector<16x4xf32> -> vector<16x32xf32>
    %cst = arith.constant 0.000000e+00 : f32
    %124 = vector.broadcast %cst : f32 to vector<1x32xf32>
    %125 = vector.extract_strided_slice %123 {offsets = [0, 0], sizes = [8, 32], strides = [1, 1]} : vector<16x32xf32> to vector<8x32xf32>
    %126 = vector.extract_strided_slice %123 {offsets = [8, 0], sizes = [8, 32], strides = [1, 1]} : vector<16x32xf32> to vector<8x32xf32>
    %127 = tpu.concatenate %124, %125, %124, %124, %126, %124 in 0 : vector<1x32xf32>, vector<8x32xf32>, vector<1x32xf32>, vector<1x32xf32>, vector<8x32xf32>, vector<1x32xf32> -> vector<20x32xf32>
    %cst_3 = arith.constant 0.000000e+00 : f32
    %128 = vector.broadcast %cst_3 : f32 to vector<20x4xf32>
    %129 = tpu.concatenate %128, %127, %128 in 1 : vector<20x4xf32>, vector<20x32xf32>, vector<20x4xf32> -> vector<20x40xf32>
    %c0_4 = arith.constant 0 : index
    %c0_5 = arith.constant 0 : index
    %130 = vector.load %arg1[%c0_4, %c0_5] : memref<120x64xbf16, #tpu.memory_space<vmem>>, vector<120x64xbf16>
    %131 = vector.extract_strided_slice %1 {offsets = [0, 0], sizes = [1, 8], strides = [1, 1]} : vector<4x8xf32> to vector<1x8xf32>
    %132 = vector.shape_cast %131 : vector<1x8xf32> to vector<8xf32>
    %133 = vector.extract_strided_slice %1 {offsets = [1, 0], sizes = [1, 8], strides = [1, 1]} : vector<4x8xf32> to vector<1x8xf32>
    %134 = vector.shape_cast %133 : vector<1x8xf32> to vector<8xf32>
    %135 = arith.truncf %129 : vector<20x40xf32> to vector<20x40xbf16>
    %cst_6 = arith.constant 0.000000e+00 : bf16
    %136 = vector.broadcast %cst_6 : bf16 to vector<1x40xbf16>
    %137 = vector.extract_strided_slice %135 {offsets = [0, 0], sizes = [19, 40], strides = [1, 1]} : vector<20x40xbf16> to vector<19x40xbf16>
    %138 = tpu.concatenate %136, %137 in 0 : vector<1x40xbf16>, vector<19x40xbf16> -> vector<20x40xbf16>
    %139 = vector.extract_strided_slice %135 {offsets = [1, 0], sizes = [19, 40], strides = [1, 1]} : vector<20x40xbf16> to vector<19x40xbf16>
    %140 = tpu.concatenate %139, %136 in 0 : vector<19x40xbf16>, vector<1x40xbf16> -> vector<20x40xbf16>
    %141 = tpu.concatenate %138, %135, %140 in 1 : vector<20x40xbf16>, vector<20x40xbf16>, vector<20x40xbf16> -> vector<20x120xbf16>
    %cst_7 = arith.constant dense<0.000000e+00> : vector<20x64xf32>
    %142 = tpu.matmul %141, %130, %cst_7 {dimension_numbers = #tpu.dot_dimension_numbers<[1], [0], [0], [1], [0, 0, 1, 1], [], []>} : vector<20x120xbf16>, vector<120x64xbf16>, vector<20x64xf32> -> vector<20x64xf32>
    %143 = tpu.iota {dimensions = array<i32: 0>} : vector<20x1xi32>
    %c10_i32 = arith.constant 10 : i32
    %c0_i32 = arith.constant 0 : i32
    %144 = arith.cmpi eq, %c10_i32, %c0_i32 : i32
    %c1_i32 = arith.constant 1 : i32
    %145 = arith.select %144, %c1_i32, %c10_i32 : i32
    %146 = vector.broadcast %145 : i32 to vector<20x1xi32>
    %147 = arith.remsi %143, %146 : vector<20x1xi32>
    %c0_i32_8 = arith.constant 0 : i32
    %148 = vector.broadcast %c0_i32_8 : i32 to vector<20x1xi32>
    %149 = arith.cmpi ne, %147, %148 : vector<20x1xi32>
    %c0_i32_9 = arith.constant 0 : i32
    %150 = vector.broadcast %c0_i32_9 : i32 to vector<20x1xi32>
    %151 = arith.cmpi slt, %147, %150 : vector<20x1xi32>
    %c0_i32_10 = arith.constant 0 : i32
    %152 = arith.cmpi slt, %145, %c0_i32_10 : i32
    %153 = vector.broadcast %152 : i1 to vector<20x1xi1>
    %154 = vector.broadcast %153 : vector<20x1xi1> to vector<20x1xi1>
    %155 = arith.xori %151, %154 : vector<20x1xi1>
    %156 = arith.andi %155, %149 : vector<20x1xi1>
    %157 = vector.broadcast %145 : i32 to vector<20x1xi32>
    %158 = arith.addi %147, %157 : vector<20x1xi32>
    %159 = arith.select %156, %158, %147 : vector<20x1xi1>, vector<20x1xi32>
    %c1_i32_11 = arith.constant 1 : i32
    %160 = vector.broadcast %c1_i32_11 : i32 to vector<20x1xi32>
    %161 = arith.cmpi sge, %159, %160 : vector<20x1xi32>
    %c8_i32 = arith.constant 8 : i32
    %162 = vector.broadcast %c8_i32 : i32 to vector<20x1xi32>
    %163 = arith.cmpi sle, %159, %162 : vector<20x1xi32>
    %164 = arith.andi %161, %163 : vector<20x1xi1>
    %cst_12 = arith.constant 0.000000e+00 : f32
    %165 = vector.shape_cast %164 : vector<20x1xi1> to vector<20x1xi1>
    %166 = vector.broadcast %165 : vector<20x1xi1> to vector<20x64xi1>
    %167 = vector.broadcast %cst_12 : f32 to vector<20x64xf32>
    %168 = arith.select %166, %142, %167 : vector<20x64xi1>, vector<20x64xf32>
    %cst_13 = arith.constant dense<0.000000e+00> : vector<64xf32>
    %169 = vector.multi_reduction <add>, %168, %cst_13 [0] : vector<20x64xf32> to vector<64xf32>
    %170 = vector.extract_strided_slice %169 {offsets = [0], sizes = [8], strides = [1]} : vector<64xf32> to vector<8xf32>
    %171 = vector.extract_strided_slice %169 {offsets = [8], sizes = [8], strides = [1]} : vector<64xf32> to vector<8xf32>
    %172 = arith.addf %170, %171 : vector<8xf32>
    %173 = vector.extract_strided_slice %169 {offsets = [16], sizes = [8], strides = [1]} : vector<64xf32> to vector<8xf32>
    %174 = arith.addf %172, %173 : vector<8xf32>
    %175 = vector.extract_strided_slice %169 {offsets = [24], sizes = [8], strides = [1]} : vector<64xf32> to vector<8xf32>
    %176 = arith.addf %174, %175 : vector<8xf32>
    %177 = vector.extract_strided_slice %169 {offsets = [32], sizes = [8], strides = [1]} : vector<64xf32> to vector<8xf32>
    %178 = arith.addf %176, %177 : vector<8xf32>
    %179 = vector.extract_strided_slice %169 {offsets = [40], sizes = [8], strides = [1]} : vector<64xf32> to vector<8xf32>
    %180 = arith.addf %178, %179 : vector<8xf32>
    %181 = vector.extract_strided_slice %169 {offsets = [48], sizes = [8], strides = [1]} : vector<64xf32> to vector<8xf32>
    %182 = arith.addf %180, %181 : vector<8xf32>
    %183 = vector.extract_strided_slice %169 {offsets = [56], sizes = [8], strides = [1]} : vector<64xf32> to vector<8xf32>
    %184 = arith.addf %182, %183 : vector<8xf32>
    %cst_14 = arith.constant 7.812500e-03 : f32
    %185 = vector.broadcast %cst_14 : f32 to vector<8xf32>
    %186 = arith.mulf %184, %185 : vector<8xf32>
    %187 = tpu.concatenate %186, %186, %186, %186, %186, %186, %186, %186 in 0 : vector<8xf32>, vector<8xf32>, vector<8xf32>, vector<8xf32>, vector<8xf32>, vector<8xf32>, vector<8xf32>, vector<8xf32> -> vector<64xf32>
    %188 = vector.shape_cast %187 : vector<64xf32> to vector<1x64xf32>
    %189 = vector.broadcast %188 : vector<1x64xf32> to vector<20x64xf32>
    %190 = arith.subf %142, %189 : vector<20x64xf32>
    %191 = arith.mulf %190, %190 : vector<20x64xf32>
    %cst_15 = arith.constant 0.000000e+00 : f32
    %192 = vector.shape_cast %164 : vector<20x1xi1> to vector<20x1xi1>
    %193 = vector.broadcast %192 : vector<20x1xi1> to vector<20x64xi1>
    %194 = vector.broadcast %cst_15 : f32 to vector<20x64xf32>
    %195 = arith.select %193, %191, %194 : vector<20x64xi1>, vector<20x64xf32>
    %cst_16 = arith.constant dense<0.000000e+00> : vector<64xf32>
    %196 = vector.multi_reduction <add>, %195, %cst_16 [0] : vector<20x64xf32> to vector<64xf32>
    %197 = vector.extract_strided_slice %196 {offsets = [0], sizes = [8], strides = [1]} : vector<64xf32> to vector<8xf32>
    %198 = vector.extract_strided_slice %196 {offsets = [8], sizes = [8], strides = [1]} : vector<64xf32> to vector<8xf32>
    %199 = arith.addf %197, %198 : vector<8xf32>
    %200 = vector.extract_strided_slice %196 {offsets = [16], sizes = [8], strides = [1]} : vector<64xf32> to vector<8xf32>
    %201 = arith.addf %199, %200 : vector<8xf32>
    %202 = vector.extract_strided_slice %196 {offsets = [24], sizes = [8], strides = [1]} : vector<64xf32> to vector<8xf32>
    %203 = arith.addf %201, %202 : vector<8xf32>
    %204 = vector.extract_strided_slice %196 {offsets = [32], sizes = [8], strides = [1]} : vector<64xf32> to vector<8xf32>
    %205 = arith.addf %203, %204 : vector<8xf32>
    %206 = vector.extract_strided_slice %196 {offsets = [40], sizes = [8], strides = [1]} : vector<64xf32> to vector<8xf32>
    %207 = arith.addf %205, %206 : vector<8xf32>
    %208 = vector.extract_strided_slice %196 {offsets = [48], sizes = [8], strides = [1]} : vector<64xf32> to vector<8xf32>
    %209 = arith.addf %207, %208 : vector<8xf32>
    %210 = vector.extract_strided_slice %196 {offsets = [56], sizes = [8], strides = [1]} : vector<64xf32> to vector<8xf32>
    %211 = arith.addf %209, %210 : vector<8xf32>
    %cst_17 = arith.constant 7.812500e-03 : f32
    %212 = vector.broadcast %cst_17 : f32 to vector<8xf32>
    %213 = arith.mulf %211, %212 : vector<8xf32>
    %cst_18 = arith.constant 9.99999974E-6 : f32
    %214 = vector.broadcast %cst_18 : f32 to vector<8xf32>
    %215 = arith.addf %213, %214 : vector<8xf32>
    %216 = math.rsqrt %215 : vector<8xf32>
    %217 = arith.mulf %216, %132 : vector<8xf32>
    %218 = tpu.concatenate %217, %217, %217, %217, %217, %217, %217, %217 in 0 : vector<8xf32>, vector<8xf32>, vector<8xf32>, vector<8xf32>, vector<8xf32>, vector<8xf32>, vector<8xf32>, vector<8xf32> -> vector<64xf32>
    %219 = vector.shape_cast %218 : vector<64xf32> to vector<1x64xf32>
    %220 = vector.broadcast %219 : vector<1x64xf32> to vector<20x64xf32>
    %221 = arith.mulf %190, %220 : vector<20x64xf32>
    %222 = tpu.concatenate %134, %134, %134, %134, %134, %134, %134, %134 in 0 : vector<8xf32>, vector<8xf32>, vector<8xf32>, vector<8xf32>, vector<8xf32>, vector<8xf32>, vector<8xf32>, vector<8xf32> -> vector<64xf32>
    %223 = vector.shape_cast %222 : vector<64xf32> to vector<1x64xf32>
    %224 = vector.broadcast %223 : vector<1x64xf32> to vector<20x64xf32>
    %225 = arith.addf %221, %224 : vector<20x64xf32>
    %cst_19 = arith.constant 0.000000e+00 : f32
    %226 = vector.broadcast %cst_19 : f32 to vector<20x64xf32>
    %227 = arith.maximumf %225, %226 : vector<20x64xf32>
    %cst_20 = arith.constant 0.000000e+00 : f32
    %228 = vector.shape_cast %164 : vector<20x1xi1> to vector<20x1xi1>
    %229 = vector.broadcast %228 : vector<20x1xi1> to vector<20x64xi1>
    %230 = vector.broadcast %cst_20 : f32 to vector<20x64xf32>
    %231 = arith.select %229, %227, %230 : vector<20x64xi1>, vector<20x64xf32>
    %cst_21 = arith.constant 0.000000e+00 : f32
    %232 = vector.broadcast %cst_21 : f32 to vector<20x8xf32>
    %233 = tpu.concatenate %232, %231, %232 in 1 : vector<20x8xf32>, vector<20x64xf32>, vector<20x8xf32> -> vector<20x80xf32>
    %c0_22 = arith.constant 0 : index
    %c0_23 = arith.constant 0 : index
    %234 = vector.load %arg2[%c0_22, %c0_23] : memref<240x64xbf16, #tpu.memory_space<vmem>>, vector<240x64xbf16>
    %235 = vector.extract_strided_slice %1 {offsets = [2, 0], sizes = [1, 8], strides = [1, 1]} : vector<4x8xf32> to vector<1x8xf32>
    %236 = vector.shape_cast %235 : vector<1x8xf32> to vector<8xf32>
    %237 = vector.extract_strided_slice %1 {offsets = [3, 0], sizes = [1, 8], strides = [1, 1]} : vector<4x8xf32> to vector<1x8xf32>
    %238 = vector.shape_cast %237 : vector<1x8xf32> to vector<8xf32>
    %239 = arith.truncf %233 : vector<20x80xf32> to vector<20x80xbf16>
    %cst_24 = arith.constant 0.000000e+00 : bf16
    %240 = vector.broadcast %cst_24 : bf16 to vector<1x80xbf16>
    %241 = vector.extract_strided_slice %239 {offsets = [0, 0], sizes = [19, 80], strides = [1, 1]} : vector<20x80xbf16> to vector<19x80xbf16>
    %242 = tpu.concatenate %240, %241 in 0 : vector<1x80xbf16>, vector<19x80xbf16> -> vector<20x80xbf16>
    %243 = vector.extract_strided_slice %239 {offsets = [1, 0], sizes = [19, 80], strides = [1, 1]} : vector<20x80xbf16> to vector<19x80xbf16>
    %244 = tpu.concatenate %243, %240 in 0 : vector<19x80xbf16>, vector<1x80xbf16> -> vector<20x80xbf16>
    %245 = tpu.concatenate %242, %239, %244 in 1 : vector<20x80xbf16>, vector<20x80xbf16>, vector<20x80xbf16> -> vector<20x240xbf16>
    %cst_25 = arith.constant dense<0.000000e+00> : vector<20x64xf32>
    %246 = tpu.matmul %245, %234, %cst_25 {dimension_numbers = #tpu.dot_dimension_numbers<[1], [0], [0], [1], [0, 0, 1, 1], [], []>} : vector<20x240xbf16>, vector<240x64xbf16>, vector<20x64xf32> -> vector<20x64xf32>
    %247 = tpu.iota {dimensions = array<i32: 0>} : vector<20x1xi32>
    %c10_i32_26 = arith.constant 10 : i32
    %c0_i32_27 = arith.constant 0 : i32
    %248 = arith.cmpi eq, %c10_i32_26, %c0_i32_27 : i32
    %c1_i32_28 = arith.constant 1 : i32
    %249 = arith.select %248, %c1_i32_28, %c10_i32_26 : i32
    %250 = vector.broadcast %249 : i32 to vector<20x1xi32>
    %251 = arith.remsi %247, %250 : vector<20x1xi32>
    %c0_i32_29 = arith.constant 0 : i32
    %252 = vector.broadcast %c0_i32_29 : i32 to vector<20x1xi32>
    %253 = arith.cmpi ne, %251, %252 : vector<20x1xi32>
    %c0_i32_30 = arith.constant 0 : i32
    %254 = vector.broadcast %c0_i32_30 : i32 to vector<20x1xi32>
    %255 = arith.cmpi slt, %251, %254 : vector<20x1xi32>
    %c0_i32_31 = arith.constant 0 : i32
    %256 = arith.cmpi slt, %249, %c0_i32_31 : i32
    %257 = vector.broadcast %256 : i1 to vector<20x1xi1>
    %258 = vector.broadcast %257 : vector<20x1xi1> to vector<20x1xi1>
    %259 = arith.xori %255, %258 : vector<20x1xi1>
    %260 = arith.andi %259, %253 : vector<20x1xi1>
    %261 = vector.broadcast %249 : i32 to vector<20x1xi32>
    %262 = arith.addi %251, %261 : vector<20x1xi32>
    %263 = arith.select %260, %262, %251 : vector<20x1xi1>, vector<20x1xi32>
    %c1_i32_32 = arith.constant 1 : i32
    %264 = vector.broadcast %c1_i32_32 : i32 to vector<20x1xi32>
    %265 = arith.cmpi sge, %263, %264 : vector<20x1xi32>
    %c8_i32_33 = arith.constant 8 : i32
    %266 = vector.broadcast %c8_i32_33 : i32 to vector<20x1xi32>
    %267 = arith.cmpi sle, %263, %266 : vector<20x1xi32>
    %268 = arith.andi %265, %267 : vector<20x1xi1>
    %cst_34 = arith.constant 0.000000e+00 : f32
    %269 = vector.shape_cast %268 : vector<20x1xi1> to vector<20x1xi1>
    %270 = vector.broadcast %269 : vector<20x1xi1> to vector<20x64xi1>
    %271 = vector.broadcast %cst_34 : f32 to vector<20x64xf32>
    %272 = arith.select %270, %246, %271 : vector<20x64xi1>, vector<20x64xf32>
    %cst_35 = arith.constant dense<0.000000e+00> : vector<64xf32>
    %273 = vector.multi_reduction <add>, %272, %cst_35 [0] : vector<20x64xf32> to vector<64xf32>
    %274 = vector.extract_strided_slice %273 {offsets = [0], sizes = [8], strides = [1]} : vector<64xf32> to vector<8xf32>
    %275 = vector.extract_strided_slice %273 {offsets = [8], sizes = [8], strides = [1]} : vector<64xf32> to vector<8xf32>
    %276 = arith.addf %274, %275 : vector<8xf32>
    %277 = vector.extract_strided_slice %273 {offsets = [16], sizes = [8], strides = [1]} : vector<64xf32> to vector<8xf32>
    %278 = arith.addf %276, %277 : vector<8xf32>
    %279 = vector.extract_strided_slice %273 {offsets = [24], sizes = [8], strides = [1]} : vector<64xf32> to vector<8xf32>
    %280 = arith.addf %278, %279 : vector<8xf32>
    %281 = vector.extract_strided_slice %273 {offsets = [32], sizes = [8], strides = [1]} : vector<64xf32> to vector<8xf32>
    %282 = arith.addf %280, %281 : vector<8xf32>
    %283 = vector.extract_strided_slice %273 {offsets = [40], sizes = [8], strides = [1]} : vector<64xf32> to vector<8xf32>
    %284 = arith.addf %282, %283 : vector<8xf32>
    %285 = vector.extract_strided_slice %273 {offsets = [48], sizes = [8], strides = [1]} : vector<64xf32> to vector<8xf32>
    %286 = arith.addf %284, %285 : vector<8xf32>
    %287 = vector.extract_strided_slice %273 {offsets = [56], sizes = [8], strides = [1]} : vector<64xf32> to vector<8xf32>
    %288 = arith.addf %286, %287 : vector<8xf32>
    %cst_36 = arith.constant 7.812500e-03 : f32
    %289 = vector.broadcast %cst_36 : f32 to vector<8xf32>
    %290 = arith.mulf %288, %289 : vector<8xf32>
    %291 = tpu.concatenate %290, %290, %290, %290, %290, %290, %290, %290 in 0 : vector<8xf32>, vector<8xf32>, vector<8xf32>, vector<8xf32>, vector<8xf32>, vector<8xf32>, vector<8xf32>, vector<8xf32> -> vector<64xf32>
    %292 = vector.shape_cast %291 : vector<64xf32> to vector<1x64xf32>
    %293 = vector.broadcast %292 : vector<1x64xf32> to vector<20x64xf32>
    %294 = arith.subf %246, %293 : vector<20x64xf32>
    %295 = arith.mulf %294, %294 : vector<20x64xf32>
    %cst_37 = arith.constant 0.000000e+00 : f32
    %296 = vector.shape_cast %268 : vector<20x1xi1> to vector<20x1xi1>
    %297 = vector.broadcast %296 : vector<20x1xi1> to vector<20x64xi1>
    %298 = vector.broadcast %cst_37 : f32 to vector<20x64xf32>
    %299 = arith.select %297, %295, %298 : vector<20x64xi1>, vector<20x64xf32>
    %cst_38 = arith.constant dense<0.000000e+00> : vector<64xf32>
    %300 = vector.multi_reduction <add>, %299, %cst_38 [0] : vector<20x64xf32> to vector<64xf32>
    %301 = vector.extract_strided_slice %300 {offsets = [0], sizes = [8], strides = [1]} : vector<64xf32> to vector<8xf32>
    %302 = vector.extract_strided_slice %300 {offsets = [8], sizes = [8], strides = [1]} : vector<64xf32> to vector<8xf32>
    %303 = arith.addf %301, %302 : vector<8xf32>
    %304 = vector.extract_strided_slice %300 {offsets = [16], sizes = [8], strides = [1]} : vector<64xf32> to vector<8xf32>
    %305 = arith.addf %303, %304 : vector<8xf32>
    %306 = vector.extract_strided_slice %300 {offsets = [24], sizes = [8], strides = [1]} : vector<64xf32> to vector<8xf32>
    %307 = arith.addf %305, %306 : vector<8xf32>
    %308 = vector.extract_strided_slice %300 {offsets = [32], sizes = [8], strides = [1]} : vector<64xf32> to vector<8xf32>
    %309 = arith.addf %307, %308 : vector<8xf32>
    %310 = vector.extract_strided_slice %300 {offsets = [40], sizes = [8], strides = [1]} : vector<64xf32> to vector<8xf32>
    %311 = arith.addf %309, %310 : vector<8xf32>
    %312 = vector.extract_strided_slice %300 {offsets = [48], sizes = [8], strides = [1]} : vector<64xf32> to vector<8xf32>
    %313 = arith.addf %311, %312 : vector<8xf32>
    %314 = vector.extract_strided_slice %300 {offsets = [56], sizes = [8], strides = [1]} : vector<64xf32> to vector<8xf32>
    %315 = arith.addf %313, %314 : vector<8xf32>
    %cst_39 = arith.constant 7.812500e-03 : f32
    %316 = vector.broadcast %cst_39 : f32 to vector<8xf32>
    %317 = arith.mulf %315, %316 : vector<8xf32>
    %cst_40 = arith.constant 9.99999974E-6 : f32
    %318 = vector.broadcast %cst_40 : f32 to vector<8xf32>
    %319 = arith.addf %317, %318 : vector<8xf32>
    %320 = math.rsqrt %319 : vector<8xf32>
    %321 = arith.mulf %320, %236 : vector<8xf32>
    %322 = tpu.concatenate %321, %321, %321, %321, %321, %321, %321, %321 in 0 : vector<8xf32>, vector<8xf32>, vector<8xf32>, vector<8xf32>, vector<8xf32>, vector<8xf32>, vector<8xf32>, vector<8xf32> -> vector<64xf32>
    %323 = vector.shape_cast %322 : vector<64xf32> to vector<1x64xf32>
    %324 = vector.broadcast %323 : vector<1x64xf32> to vector<20x64xf32>
    %325 = arith.mulf %294, %324 : vector<20x64xf32>
    %326 = tpu.concatenate %238, %238, %238, %238, %238, %238, %238, %238 in 0 : vector<8xf32>, vector<8xf32>, vector<8xf32>, vector<8xf32>, vector<8xf32>, vector<8xf32>, vector<8xf32>, vector<8xf32> -> vector<64xf32>
    %327 = vector.shape_cast %326 : vector<64xf32> to vector<1x64xf32>
    %328 = vector.broadcast %327 : vector<1x64xf32> to vector<20x64xf32>
    %329 = arith.addf %325, %328 : vector<20x64xf32>
    %cst_41 = arith.constant 0.000000e+00 : f32
    %330 = vector.broadcast %cst_41 : f32 to vector<20x64xf32>
    %331 = arith.maximumf %329, %330 : vector<20x64xf32>
    %cst_42 = arith.constant 0.000000e+00 : f32
    %332 = vector.shape_cast %268 : vector<20x1xi1> to vector<20x1xi1>
    %333 = vector.broadcast %332 : vector<20x1xi1> to vector<20x64xi1>
    %334 = vector.broadcast %cst_42 : f32 to vector<20x64xf32>
    %335 = arith.select %333, %331, %334 : vector<20x64xi1>, vector<20x64xf32>
    %c0_43 = arith.constant 0 : index
    %c0_44 = arith.constant 0 : index
    %336 = vector.load %arg10[%c0_43, %c0_44] : memref<20x64xf32, #tpu.memory_space<vmem>>, vector<20x64xf32>
    tpu.vector_store %arg10[%c0_43, %c0_44], %335 {strides = array<i32>} : memref<20x64xf32, #tpu.memory_space<vmem>>, vector<20x64xf32>,
    %c0_45 = arith.constant 0 : index
    %c0_46 = arith.constant 0 : index
    %337 = vector.load %arg6[%c0_45, %c0_46] : memref<4x16xf32, #tpu.memory_space<vmem>>, vector<4x16xf32>
    %338 = vector.extract_strided_slice %335 {offsets = [1, 0], sizes = [1, 64], strides = [1, 1]} : vector<20x64xf32> to vector<1x64xf32>
    %339 = vector.shape_cast %338 : vector<1x64xf32> to vector<64xf32>
    %340 = vector.extract_strided_slice %335 {offsets = [2, 0], sizes = [1, 64], strides = [1, 1]} : vector<20x64xf32> to vector<1x64xf32>
    %341 = vector.shape_cast %340 : vector<1x64xf32> to vector<64xf32>
    %342 = arith.maximumf %339, %341 : vector<64xf32>
    %343 = vector.extract_strided_slice %335 {offsets = [3, 0], sizes = [1, 64], strides = [1, 1]} : vector<20x64xf32> to vector<1x64xf32>
    %344 = vector.shape_cast %343 : vector<1x64xf32> to vector<64xf32>
    %345 = vector.extract_strided_slice %335 {offsets = [4, 0], sizes = [1, 64], strides = [1, 1]} : vector<20x64xf32> to vector<1x64xf32>
    %346 = vector.shape_cast %345 : vector<1x64xf32> to vector<64xf32>
    %347 = arith.maximumf %344, %346 : vector<64xf32>
    %348 = vector.extract_strided_slice %335 {offsets = [5, 0], sizes = [1, 64], strides = [1, 1]} : vector<20x64xf32> to vector<1x64xf32>
    %349 = vector.shape_cast %348 : vector<1x64xf32> to vector<64xf32>
    %350 = vector.extract_strided_slice %335 {offsets = [6, 0], sizes = [1, 64], strides = [1, 1]} : vector<20x64xf32> to vector<1x64xf32>
    %351 = vector.shape_cast %350 : vector<1x64xf32> to vector<64xf32>
    %352 = arith.maximumf %349, %351 : vector<64xf32>
    %353 = vector.extract_strided_slice %335 {offsets = [7, 0], sizes = [1, 64], strides = [1, 1]} : vector<20x64xf32> to vector<1x64xf32>
    %354 = vector.shape_cast %353 : vector<1x64xf32> to vector<64xf32>
    %355 = vector.extract_strided_slice %335 {offsets = [8, 0], sizes = [1, 64], strides = [1, 1]} : vector<20x64xf32> to vector<1x64xf32>
    %356 = vector.shape_cast %355 : vector<1x64xf32> to vector<64xf32>
    %357 = arith.maximumf %354, %356 : vector<64xf32>
    %358 = vector.extract_strided_slice %335 {offsets = [11, 0], sizes = [1, 64], strides = [1, 1]} : vector<20x64xf32> to vector<1x64xf32>
    %359 = vector.shape_cast %358 : vector<1x64xf32> to vector<64xf32>
    %360 = vector.extract_strided_slice %335 {offsets = [12, 0], sizes = [1, 64], strides = [1, 1]} : vector<20x64xf32> to vector<1x64xf32>
    %361 = vector.shape_cast %360 : vector<1x64xf32> to vector<64xf32>
    %362 = arith.maximumf %359, %361 : vector<64xf32>
    %363 = vector.extract_strided_slice %335 {offsets = [13, 0], sizes = [1, 64], strides = [1, 1]} : vector<20x64xf32> to vector<1x64xf32>
    %364 = vector.shape_cast %363 : vector<1x64xf32> to vector<64xf32>
    %365 = vector.extract_strided_slice %335 {offsets = [14, 0], sizes = [1, 64], strides = [1, 1]} : vector<20x64xf32> to vector<1x64xf32>
    %366 = vector.shape_cast %365 : vector<1x64xf32> to vector<64xf32>
    %367 = arith.maximumf %364, %366 : vector<64xf32>
    %368 = vector.extract_strided_slice %335 {offsets = [15, 0], sizes = [1, 64], strides = [1, 1]} : vector<20x64xf32> to vector<1x64xf32>
    %369 = vector.shape_cast %368 : vector<1x64xf32> to vector<64xf32>
    %370 = vector.extract_strided_slice %335 {offsets = [16, 0], sizes = [1, 64], strides = [1, 1]} : vector<20x64xf32> to vector<1x64xf32>
    %371 = vector.shape_cast %370 : vector<1x64xf32> to vector<64xf32>
    %372 = arith.maximumf %369, %371 : vector<64xf32>
    %373 = vector.extract_strided_slice %335 {offsets = [17, 0], sizes = [1, 64], strides = [1, 1]} : vector<20x64xf32> to vector<1x64xf32>
    %374 = vector.shape_cast %373 : vector<1x64xf32> to vector<64xf32>
    %375 = vector.extract_strided_slice %335 {offsets = [18, 0], sizes = [1, 64], strides = [1, 1]} : vector<20x64xf32> to vector<1x64xf32>
    %376 = vector.shape_cast %375 : vector<1x64xf32> to vector<64xf32>
    %377 = arith.maximumf %374, %376 : vector<64xf32>
    %378 = vector.shape_cast %342 : vector<64xf32> to vector<1x64xf32>
    %379 = vector.shape_cast %347 : vector<64xf32> to vector<1x64xf32>
    %380 = vector.shape_cast %352 : vector<64xf32> to vector<1x64xf32>
    %381 = vector.shape_cast %357 : vector<64xf32> to vector<1x64xf32>
    %382 = vector.shape_cast %362 : vector<64xf32> to vector<1x64xf32>
    %383 = vector.shape_cast %367 : vector<64xf32> to vector<1x64xf32>
    %384 = vector.shape_cast %372 : vector<64xf32> to vector<1x64xf32>
    %385 = vector.shape_cast %377 : vector<64xf32> to vector<1x64xf32>
    %386 = tpu.concatenate %378, %379, %380, %381, %382, %383, %384, %385 in 0 : vector<1x64xf32>, vector<1x64xf32>, vector<1x64xf32>, vector<1x64xf32>, vector<1x64xf32>, vector<1x64xf32>, vector<1x64xf32>, vector<1x64xf32> -> vector<8x64xf32>
    %387 = vector.extract_strided_slice %386 {offsets = [0, 0], sizes = [8, 8], strides = [1, 1]} : vector<8x64xf32> to vector<8x8xf32>
    %388 = vector.extract_strided_slice %386 {offsets = [0, 8], sizes = [8, 8], strides = [1, 1]} : vector<8x64xf32> to vector<8x8xf32>
    %389 = arith.maximumf %387, %388 : vector<8x8xf32>
    %390 = vector.extract_strided_slice %386 {offsets = [0, 16], sizes = [8, 8], strides = [1, 1]} : vector<8x64xf32> to vector<8x8xf32>
    %391 = vector.extract_strided_slice %386 {offsets = [0, 24], sizes = [8, 8], strides = [1, 1]} : vector<8x64xf32> to vector<8x8xf32>
    %392 = arith.maximumf %390, %391 : vector<8x8xf32>
    %393 = vector.extract_strided_slice %386 {offsets = [0, 32], sizes = [8, 8], strides = [1, 1]} : vector<8x64xf32> to vector<8x8xf32>
    %394 = vector.extract_strided_slice %386 {offsets = [0, 40], sizes = [8, 8], strides = [1, 1]} : vector<8x64xf32> to vector<8x8xf32>
    %395 = arith.maximumf %393, %394 : vector<8x8xf32>
    %396 = vector.extract_strided_slice %386 {offsets = [0, 48], sizes = [8, 8], strides = [1, 1]} : vector<8x64xf32> to vector<8x8xf32>
    %397 = vector.extract_strided_slice %386 {offsets = [0, 56], sizes = [8, 8], strides = [1, 1]} : vector<8x64xf32> to vector<8x8xf32>
    %398 = arith.maximumf %396, %397 : vector<8x8xf32>
    %399 = tpu.concatenate %389, %392, %395, %398 in 1 : vector<8x8xf32>, vector<8x8xf32>, vector<8x8xf32>, vector<8x8xf32> -> vector<8x32xf32>
    %cst_47 = arith.constant 0.000000e+00 : f32
    %400 = vector.broadcast %cst_47 : f32 to vector<1x32xf32>
    %401 = vector.extract_strided_slice %399 {offsets = [0, 0], sizes = [4, 32], strides = [1, 1]} : vector<8x32xf32> to vector<4x32xf32>
    %402 = vector.extract_strided_slice %399 {offsets = [4, 0], sizes = [4, 32], strides = [1, 1]} : vector<8x32xf32> to vector<4x32xf32>
    %403 = tpu.concatenate %400, %401, %400, %400, %402, %400 in 0 : vector<1x32xf32>, vector<4x32xf32>, vector<1x32xf32>, vector<1x32xf32>, vector<4x32xf32>, vector<1x32xf32> -> vector<12x32xf32>
    %cst_48 = arith.constant 0.000000e+00 : f32
    %404 = vector.broadcast %cst_48 : f32 to vector<12x8xf32>
    %405 = tpu.concatenate %404, %403, %404 in 1 : vector<12x8xf32>, vector<12x32xf32>, vector<12x8xf32> -> vector<12x48xf32>
    %c0_49 = arith.constant 0 : index
    %c0_50 = arith.constant 0 : index
    %406 = vector.load %arg4[%c0_49, %c0_50] : memref<144x64xbf16, #tpu.memory_space<vmem>>, vector<144x64xbf16>
    %407 = vector.extract_strided_slice %337 {offsets = [0, 0], sizes = [1, 16], strides = [1, 1]} : vector<4x16xf32> to vector<1x16xf32>
    %408 = vector.shape_cast %407 : vector<1x16xf32> to vector<16xf32>
    %409 = vector.extract_strided_slice %337 {offsets = [1, 0], sizes = [1, 16], strides = [1, 1]} : vector<4x16xf32> to vector<1x16xf32>
    %410 = vector.shape_cast %409 : vector<1x16xf32> to vector<16xf32>
    %411 = arith.truncf %405 : vector<12x48xf32> to vector<12x48xbf16>
    %cst_51 = arith.constant 0.000000e+00 : bf16
    %412 = vector.broadcast %cst_51 : bf16 to vector<1x48xbf16>
    %413 = vector.extract_strided_slice %411 {offsets = [0, 0], sizes = [11, 48], strides = [1, 1]} : vector<12x48xbf16> to vector<11x48xbf16>
    %414 = tpu.concatenate %412, %413 in 0 : vector<1x48xbf16>, vector<11x48xbf16> -> vector<12x48xbf16>
    %415 = vector.extract_strided_slice %411 {offsets = [1, 0], sizes = [11, 48], strides = [1, 1]} : vector<12x48xbf16> to vector<11x48xbf16>
    %416 = tpu.concatenate %415, %412 in 0 : vector<11x48xbf16>, vector<1x48xbf16> -> vector<12x48xbf16>
    %417 = tpu.concatenate %414, %411, %416 in 1 : vector<12x48xbf16>, vector<12x48xbf16>, vector<12x48xbf16> -> vector<12x144xbf16>
    %cst_52 = arith.constant dense<0.000000e+00> : vector<12x64xf32>
    %418 = tpu.matmul %417, %406, %cst_52 {dimension_numbers = #tpu.dot_dimension_numbers<[1], [0], [0], [1], [0, 0, 1, 1], [], []>} : vector<12x144xbf16>, vector<144x64xbf16>, vector<12x64xf32> -> vector<12x64xf32>
    %419 = tpu.iota {dimensions = array<i32: 0>} : vector<12x1xi32>
    %c6_i32 = arith.constant 6 : i32
    %c0_i32_53 = arith.constant 0 : i32
    %420 = arith.cmpi eq, %c6_i32, %c0_i32_53 : i32
    %c1_i32_54 = arith.constant 1 : i32
    %421 = arith.select %420, %c1_i32_54, %c6_i32 : i32
    %422 = vector.broadcast %421 : i32 to vector<12x1xi32>
    %423 = arith.remsi %419, %422 : vector<12x1xi32>
    %c0_i32_55 = arith.constant 0 : i32
    %424 = vector.broadcast %c0_i32_55 : i32 to vector<12x1xi32>
    %425 = arith.cmpi ne, %423, %424 : vector<12x1xi32>
    %c0_i32_56 = arith.constant 0 : i32
    %426 = vector.broadcast %c0_i32_56 : i32 to vector<12x1xi32>
    %427 = arith.cmpi slt, %423, %426 : vector<12x1xi32>
    %c0_i32_57 = arith.constant 0 : i32
    %428 = arith.cmpi slt, %421, %c0_i32_57 : i32
    %429 = vector.broadcast %428 : i1 to vector<12x1xi1>
    %430 = vector.broadcast %429 : vector<12x1xi1> to vector<12x1xi1>
    %431 = arith.xori %427, %430 : vector<12x1xi1>
    %432 = arith.andi %431, %425 : vector<12x1xi1>
    %433 = vector.broadcast %421 : i32 to vector<12x1xi32>
    %434 = arith.addi %423, %433 : vector<12x1xi32>
    %435 = arith.select %432, %434, %423 : vector<12x1xi1>, vector<12x1xi32>
    %c1_i32_58 = arith.constant 1 : i32
    %436 = vector.broadcast %c1_i32_58 : i32 to vector<12x1xi32>
    %437 = arith.cmpi sge, %435, %436 : vector<12x1xi32>
    %c4_i32 = arith.constant 4 : i32
    %438 = vector.broadcast %c4_i32 : i32 to vector<12x1xi32>
    %439 = arith.cmpi sle, %435, %438 : vector<12x1xi32>
    %440 = arith.andi %437, %439 : vector<12x1xi1>
    %cst_59 = arith.constant 0.000000e+00 : f32
    %441 = vector.shape_cast %440 : vector<12x1xi1> to vector<12x1xi1>
    %442 = vector.broadcast %441 : vector<12x1xi1> to vector<12x64xi1>
    %443 = vector.broadcast %cst_59 : f32 to vector<12x64xf32>
    %444 = arith.select %442, %418, %443 : vector<12x64xi1>, vector<12x64xf32>
    %cst_60 = arith.constant dense<0.000000e+00> : vector<64xf32>
    %445 = vector.multi_reduction <add>, %444, %cst_60 [0] : vector<12x64xf32> to vector<64xf32>
    %446 = vector.extract_strided_slice %445 {offsets = [0], sizes = [16], strides = [1]} : vector<64xf32> to vector<16xf32>
    %447 = vector.extract_strided_slice %445 {offsets = [16], sizes = [16], strides = [1]} : vector<64xf32> to vector<16xf32>
    %448 = arith.addf %446, %447 : vector<16xf32>
    %449 = vector.extract_strided_slice %445 {offsets = [32], sizes = [16], strides = [1]} : vector<64xf32> to vector<16xf32>
    %450 = arith.addf %448, %449 : vector<16xf32>
    %451 = vector.extract_strided_slice %445 {offsets = [48], sizes = [16], strides = [1]} : vector<64xf32> to vector<16xf32>
    %452 = arith.addf %450, %451 : vector<16xf32>
    %cst_61 = arith.constant 3.125000e-02 : f32
    %453 = vector.broadcast %cst_61 : f32 to vector<16xf32>
    %454 = arith.mulf %452, %453 : vector<16xf32>
    %455 = tpu.concatenate %454, %454, %454, %454 in 0 : vector<16xf32>, vector<16xf32>, vector<16xf32>, vector<16xf32> -> vector<64xf32>
    %456 = vector.shape_cast %455 : vector<64xf32> to vector<1x64xf32>
    %457 = vector.broadcast %456 : vector<1x64xf32> to vector<12x64xf32>
    %458 = arith.subf %418, %457 : vector<12x64xf32>
    %459 = arith.mulf %458, %458 : vector<12x64xf32>
    %cst_62 = arith.constant 0.000000e+00 : f32
    %460 = vector.shape_cast %440 : vector<12x1xi1> to vector<12x1xi1>
    %461 = vector.broadcast %460 : vector<12x1xi1> to vector<12x64xi1>
    %462 = vector.broadcast %cst_62 : f32 to vector<12x64xf32>
    %463 = arith.select %461, %459, %462 : vector<12x64xi1>, vector<12x64xf32>
    %cst_63 = arith.constant dense<0.000000e+00> : vector<64xf32>
    %464 = vector.multi_reduction <add>, %463, %cst_63 [0] : vector<12x64xf32> to vector<64xf32>
    %465 = vector.extract_strided_slice %464 {offsets = [0], sizes = [16], strides = [1]} : vector<64xf32> to vector<16xf32>
    %466 = vector.extract_strided_slice %464 {offsets = [16], sizes = [16], strides = [1]} : vector<64xf32> to vector<16xf32>
    %467 = arith.addf %465, %466 : vector<16xf32>
    %468 = vector.extract_strided_slice %464 {offsets = [32], sizes = [16], strides = [1]} : vector<64xf32> to vector<16xf32>
    %469 = arith.addf %467, %468 : vector<16xf32>
    %470 = vector.extract_strided_slice %464 {offsets = [48], sizes = [16], strides = [1]} : vector<64xf32> to vector<16xf32>
    %471 = arith.addf %469, %470 : vector<16xf32>
    %cst_64 = arith.constant 3.125000e-02 : f32
    %472 = vector.broadcast %cst_64 : f32 to vector<16xf32>
    %473 = arith.mulf %471, %472 : vector<16xf32>
    %cst_65 = arith.constant 9.99999974E-6 : f32
    %474 = vector.broadcast %cst_65 : f32 to vector<16xf32>
    %475 = arith.addf %473, %474 : vector<16xf32>
    %476 = math.rsqrt %475 : vector<16xf32>
    %477 = arith.mulf %476, %408 : vector<16xf32>
    %478 = tpu.concatenate %477, %477, %477, %477 in 0 : vector<16xf32>, vector<16xf32>, vector<16xf32>, vector<16xf32> -> vector<64xf32>
    %479 = vector.shape_cast %478 : vector<64xf32> to vector<1x64xf32>
    %480 = vector.broadcast %479 : vector<1x64xf32> to vector<12x64xf32>
    %481 = arith.mulf %458, %480 : vector<12x64xf32>
    %482 = tpu.concatenate %410, %410, %410, %410 in 0 : vector<16xf32>, vector<16xf32>, vector<16xf32>, vector<16xf32> -> vector<64xf32>
    %483 = vector.shape_cast %482 : vector<64xf32> to vector<1x64xf32>
    %484 = vector.broadcast %483 : vector<1x64xf32> to vector<12x64xf32>
    %485 = arith.addf %481, %484 : vector<12x64xf32>
    %cst_66 = arith.constant 0.000000e+00 : f32
    %486 = vector.broadcast %cst_66 : f32 to vector<12x64xf32>
    %487 = arith.maximumf %485, %486 : vector<12x64xf32>
    %cst_67 = arith.constant 0.000000e+00 : f32
    %488 = vector.shape_cast %440 : vector<12x1xi1> to vector<12x1xi1>
    %489 = vector.broadcast %488 : vector<12x1xi1> to vector<12x64xi1>
    %490 = vector.broadcast %cst_67 : f32 to vector<12x64xf32>
    %491 = arith.select %489, %487, %490 : vector<12x64xi1>, vector<12x64xf32>
    %cst_68 = arith.constant 0.000000e+00 : f32
    %492 = vector.broadcast %cst_68 : f32 to vector<12x16xf32>
    %493 = tpu.concatenate %492, %491, %492 in 1 : vector<12x16xf32>, vector<12x64xf32>, vector<12x16xf32> -> vector<12x96xf32>
    %c0_69 = arith.constant 0 : index
    %c0_70 = arith.constant 0 : index
    %494 = vector.load %arg5[%c0_69, %c0_70] : memref<288x64xbf16, #tpu.memory_space<vmem>>, vector<288x64xbf16>
    %495 = vector.extract_strided_slice %337 {offsets = [2, 0], sizes = [1, 16], strides = [1, 1]} : vector<4x16xf32> to vector<1x16xf32>
    %496 = vector.shape_cast %495 : vector<1x16xf32> to vector<16xf32>
    %497 = vector.extract_strided_slice %337 {offsets = [3, 0], sizes = [1, 16], strides = [1, 1]} : vector<4x16xf32> to vector<1x16xf32>
    %498 = vector.shape_cast %497 : vector<1x16xf32> to vector<16xf32>
    %499 = arith.truncf %493 : vector<12x96xf32> to vector<12x96xbf16>
    %cst_71 = arith.constant 0.000000e+00 : bf16
    %500 = vector.broadcast %cst_71 : bf16 to vector<1x96xbf16>
    %501 = vector.extract_strided_slice %499 {offsets = [0, 0], sizes = [11, 96], strides = [1, 1]} : vector<12x96xbf16> to vector<11x96xbf16>
    %502 = tpu.concatenate %500, %501 in 0 : vector<1x96xbf16>, vector<11x96xbf16> -> vector<12x96xbf16>
    %503 = vector.extract_strided_slice %499 {offsets = [1, 0], sizes = [11, 96], strides = [1, 1]} : vector<12x96xbf16> to vector<11x96xbf16>
    %504 = tpu.concatenate %503, %500 in 0 : vector<11x96xbf16>, vector<1x96xbf16> -> vector<12x96xbf16>
    %505 = tpu.concatenate %502, %499, %504 in 1 : vector<12x96xbf16>, vector<12x96xbf16>, vector<12x96xbf16> -> vector<12x288xbf16>
    %cst_72 = arith.constant dense<0.000000e+00> : vector<12x64xf32>
    %506 = tpu.matmul %505, %494, %cst_72 {dimension_numbers = #tpu.dot_dimension_numbers<[1], [0], [0], [1], [0, 0, 1, 1], [], []>} : vector<12x288xbf16>, vector<288x64xbf16>, vector<12x64xf32> -> vector<12x64xf32>
    %507 = tpu.iota {dimensions = array<i32: 0>} : vector<12x1xi32>
    %c6_i32_73 = arith.constant 6 : i32
    %c0_i32_74 = arith.constant 0 : i32
    %508 = arith.cmpi eq, %c6_i32_73, %c0_i32_74 : i32
    %c1_i32_75 = arith.constant 1 : i32
    %509 = arith.select %508, %c1_i32_75, %c6_i32_73 : i32
    %510 = vector.broadcast %509 : i32 to vector<12x1xi32>
    %511 = arith.remsi %507, %510 : vector<12x1xi32>
    %c0_i32_76 = arith.constant 0 : i32
    %512 = vector.broadcast %c0_i32_76 : i32 to vector<12x1xi32>
    %513 = arith.cmpi ne, %511, %512 : vector<12x1xi32>
    %c0_i32_77 = arith.constant 0 : i32
    %514 = vector.broadcast %c0_i32_77 : i32 to vector<12x1xi32>
    %515 = arith.cmpi slt, %511, %514 : vector<12x1xi32>
    %c0_i32_78 = arith.constant 0 : i32
    %516 = arith.cmpi slt, %509, %c0_i32_78 : i32
    %517 = vector.broadcast %516 : i1 to vector<12x1xi1>
    %518 = vector.broadcast %517 : vector<12x1xi1> to vector<12x1xi1>
    %519 = arith.xori %515, %518 : vector<12x1xi1>
    %520 = arith.andi %519, %513 : vector<12x1xi1>
    %521 = vector.broadcast %509 : i32 to vector<12x1xi32>
    %522 = arith.addi %511, %521 : vector<12x1xi32>
    %523 = arith.select %520, %522, %511 : vector<12x1xi1>, vector<12x1xi32>
    %c1_i32_79 = arith.constant 1 : i32
    %524 = vector.broadcast %c1_i32_79 : i32 to vector<12x1xi32>
    %525 = arith.cmpi sge, %523, %524 : vector<12x1xi32>
    %c4_i32_80 = arith.constant 4 : i32
    %526 = vector.broadcast %c4_i32_80 : i32 to vector<12x1xi32>
    %527 = arith.cmpi sle, %523, %526 : vector<12x1xi32>
    %528 = arith.andi %525, %527 : vector<12x1xi1>
    %cst_81 = arith.constant 0.000000e+00 : f32
    %529 = vector.shape_cast %528 : vector<12x1xi1> to vector<12x1xi1>
    %530 = vector.broadcast %529 : vector<12x1xi1> to vector<12x64xi1>
    %531 = vector.broadcast %cst_81 : f32 to vector<12x64xf32>
    %532 = arith.select %530, %506, %531 : vector<12x64xi1>, vector<12x64xf32>
    %cst_82 = arith.constant dense<0.000000e+00> : vector<64xf32>
    %533 = vector.multi_reduction <add>, %532, %cst_82 [0] : vector<12x64xf32> to vector<64xf32>
    %534 = vector.extract_strided_slice %533 {offsets = [0], sizes = [16], strides = [1]} : vector<64xf32> to vector<16xf32>
    %535 = vector.extract_strided_slice %533 {offsets = [16], sizes = [16], strides = [1]} : vector<64xf32> to vector<16xf32>
    %536 = arith.addf %534, %535 : vector<16xf32>
    %537 = vector.extract_strided_slice %533 {offsets = [32], sizes = [16], strides = [1]} : vector<64xf32> to vector<16xf32>
    %538 = arith.addf %536, %537 : vector<16xf32>
    %539 = vector.extract_strided_slice %533 {offsets = [48], sizes = [16], strides = [1]} : vector<64xf32> to vector<16xf32>
    %540 = arith.addf %538, %539 : vector<16xf32>
    %cst_83 = arith.constant 3.125000e-02 : f32
    %541 = vector.broadcast %cst_83 : f32 to vector<16xf32>
    %542 = arith.mulf %540, %541 : vector<16xf32>
    %543 = tpu.concatenate %542, %542, %542, %542 in 0 : vector<16xf32>, vector<16xf32>, vector<16xf32>, vector<16xf32> -> vector<64xf32>
    %544 = vector.shape_cast %543 : vector<64xf32> to vector<1x64xf32>
    %545 = vector.broadcast %544 : vector<1x64xf32> to vector<12x64xf32>
    %546 = arith.subf %506, %545 : vector<12x64xf32>
    %547 = arith.mulf %546, %546 : vector<12x64xf32>
    %cst_84 = arith.constant 0.000000e+00 : f32
    %548 = vector.shape_cast %528 : vector<12x1xi1> to vector<12x1xi1>
    %549 = vector.broadcast %548 : vector<12x1xi1> to vector<12x64xi1>
    %550 = vector.broadcast %cst_84 : f32 to vector<12x64xf32>
    %551 = arith.select %549, %547, %550 : vector<12x64xi1>, vector<12x64xf32>
    %cst_85 = arith.constant dense<0.000000e+00> : vector<64xf32>
    %552 = vector.multi_reduction <add>, %551, %cst_85 [0] : vector<12x64xf32> to vector<64xf32>
    %553 = vector.extract_strided_slice %552 {offsets = [0], sizes = [16], strides = [1]} : vector<64xf32> to vector<16xf32>
    %554 = vector.extract_strided_slice %552 {offsets = [16], sizes = [16], strides = [1]} : vector<64xf32> to vector<16xf32>
    %555 = arith.addf %553, %554 : vector<16xf32>
    %556 = vector.extract_strided_slice %552 {offsets = [32], sizes = [16], strides = [1]} : vector<64xf32> to vector<16xf32>
    %557 = arith.addf %555, %556 : vector<16xf32>
    %558 = vector.extract_strided_slice %552 {offsets = [48], sizes = [16], strides = [1]} : vector<64xf32> to vector<16xf32>
    %559 = arith.addf %557, %558 : vector<16xf32>
    %cst_86 = arith.constant 3.125000e-02 : f32
    %560 = vector.broadcast %cst_86 : f32 to vector<16xf32>
    %561 = arith.mulf %559, %560 : vector<16xf32>
    %cst_87 = arith.constant 9.99999974E-6 : f32
    %562 = vector.broadcast %cst_87 : f32 to vector<16xf32>
    %563 = arith.addf %561, %562 : vector<16xf32>
    %564 = math.rsqrt %563 : vector<16xf32>
    %565 = arith.mulf %564, %496 : vector<16xf32>
    %566 = tpu.concatenate %565, %565, %565, %565 in 0 : vector<16xf32>, vector<16xf32>, vector<16xf32>, vector<16xf32> -> vector<64xf32>
    %567 = vector.shape_cast %566 : vector<64xf32> to vector<1x64xf32>
    %568 = vector.broadcast %567 : vector<1x64xf32> to vector<12x64xf32>
    %569 = arith.mulf %546, %568 : vector<12x64xf32>
    %570 = tpu.concatenate %498, %498, %498, %498 in 0 : vector<16xf32>, vector<16xf32>, vector<16xf32>, vector<16xf32> -> vector<64xf32>
    %571 = vector.shape_cast %570 : vector<64xf32> to vector<1x64xf32>
    %572 = vector.broadcast %571 : vector<1x64xf32> to vector<12x64xf32>
    %573 = arith.addf %569, %572 : vector<12x64xf32>
    %cst_88 = arith.constant 0.000000e+00 : f32
    %574 = vector.broadcast %cst_88 : f32 to vector<12x64xf32>
    %575 = arith.maximumf %573, %574 : vector<12x64xf32>
    %cst_89 = arith.constant 0.000000e+00 : f32
    %576 = vector.shape_cast %528 : vector<12x1xi1> to vector<12x1xi1>
    %577 = vector.broadcast %576 : vector<12x1xi1> to vector<12x64xi1>
    %578 = vector.broadcast %cst_89 : f32 to vector<12x64xf32>
    %579 = arith.select %577, %575, %578 : vector<12x64xi1>, vector<12x64xf32>
    %c0_90 = arith.constant 0 : index
    %c0_91 = arith.constant 0 : index
    %580 = vector.load %arg11[%c0_90, %c0_91] : memref<12x64xf32, #tpu.memory_space<vmem>>, vector<12x64xf32>
    tpu.vector_store %arg11[%c0_90, %c0_91], %579 {strides = array<i32>} : memref<12x64xf32, #tpu.memory_space<vmem>>, vector<12x64xf32>,
    %c0_92 = arith.constant 0 : index
    %c0_93 = arith.constant 0 : index
    %581 = vector.load %arg9[%c0_92, %c0_93] : memref<4x16xf32, #tpu.memory_space<vmem>>, vector<4x16xf32>
    %582 = vector.extract_strided_slice %579 {offsets = [1, 0], sizes = [1, 64], strides = [1, 1]} : vector<12x64xf32> to vector<1x64xf32>
    %583 = vector.shape_cast %582 : vector<1x64xf32> to vector<64xf32>
    %584 = vector.extract_strided_slice %579 {offsets = [2, 0], sizes = [1, 64], strides = [1, 1]} : vector<12x64xf32> to vector<1x64xf32>
    %585 = vector.shape_cast %584 : vector<1x64xf32> to vector<64xf32>
    %586 = arith.maximumf %583, %585 : vector<64xf32>
    %587 = vector.extract_strided_slice %579 {offsets = [3, 0], sizes = [1, 64], strides = [1, 1]} : vector<12x64xf32> to vector<1x64xf32>
    %588 = vector.shape_cast %587 : vector<1x64xf32> to vector<64xf32>
    %589 = vector.extract_strided_slice %579 {offsets = [4, 0], sizes = [1, 64], strides = [1, 1]} : vector<12x64xf32> to vector<1x64xf32>
    %590 = vector.shape_cast %589 : vector<1x64xf32> to vector<64xf32>
    %591 = arith.maximumf %588, %590 : vector<64xf32>
    %592 = vector.extract_strided_slice %579 {offsets = [7, 0], sizes = [1, 64], strides = [1, 1]} : vector<12x64xf32> to vector<1x64xf32>
    %593 = vector.shape_cast %592 : vector<1x64xf32> to vector<64xf32>
    %594 = vector.extract_strided_slice %579 {offsets = [8, 0], sizes = [1, 64], strides = [1, 1]} : vector<12x64xf32> to vector<1x64xf32>
    %595 = vector.shape_cast %594 : vector<1x64xf32> to vector<64xf32>
    %596 = arith.maximumf %593, %595 : vector<64xf32>
    %597 = vector.extract_strided_slice %579 {offsets = [9, 0], sizes = [1, 64], strides = [1, 1]} : vector<12x64xf32> to vector<1x64xf32>
    %598 = vector.shape_cast %597 : vector<1x64xf32> to vector<64xf32>
    %599 = vector.extract_strided_slice %579 {offsets = [10, 0], sizes = [1, 64], strides = [1, 1]} : vector<12x64xf32> to vector<1x64xf32>
    %600 = vector.shape_cast %599 : vector<1x64xf32> to vector<64xf32>
    %601 = arith.maximumf %598, %600 : vector<64xf32>
    %602 = vector.shape_cast %586 : vector<64xf32> to vector<1x64xf32>
    %603 = vector.shape_cast %591 : vector<64xf32> to vector<1x64xf32>
    %604 = vector.shape_cast %596 : vector<64xf32> to vector<1x64xf32>
    %605 = vector.shape_cast %601 : vector<64xf32> to vector<1x64xf32>
    %606 = tpu.concatenate %602, %603, %604, %605 in 0 : vector<1x64xf32>, vector<1x64xf32>, vector<1x64xf32>, vector<1x64xf32> -> vector<4x64xf32>
    %607 = vector.extract_strided_slice %606 {offsets = [0, 0], sizes = [4, 16], strides = [1, 1]} : vector<4x64xf32> to vector<4x16xf32>
    %608 = vector.extract_strided_slice %606 {offsets = [0, 16], sizes = [4, 16], strides = [1, 1]} : vector<4x64xf32> to vector<4x16xf32>
    %609 = arith.maximumf %607, %608 : vector<4x16xf32>
    %610 = vector.extract_strided_slice %606 {offsets = [0, 32], sizes = [4, 16], strides = [1, 1]} : vector<4x64xf32> to vector<4x16xf32>
    %611 = vector.extract_strided_slice %606 {offsets = [0, 48], sizes = [4, 16], strides = [1, 1]} : vector<4x64xf32> to vector<4x16xf32>
    %612 = arith.maximumf %610, %611 : vector<4x16xf32>
    %613 = tpu.concatenate %609, %612 in 1 : vector<4x16xf32>, vector<4x16xf32> -> vector<4x32xf32>
    %cst_94 = arith.constant 0.000000e+00 : f32
    %614 = vector.broadcast %cst_94 : f32 to vector<1x32xf32>
    %615 = vector.extract_strided_slice %613 {offsets = [0, 0], sizes = [2, 32], strides = [1, 1]} : vector<4x32xf32> to vector<2x32xf32>
    %616 = vector.extract_strided_slice %613 {offsets = [2, 0], sizes = [2, 32], strides = [1, 1]} : vector<4x32xf32> to vector<2x32xf32>
    %617 = tpu.concatenate %614, %615, %614, %614, %616, %614 in 0 : vector<1x32xf32>, vector<2x32xf32>, vector<1x32xf32>, vector<1x32xf32>, vector<2x32xf32>, vector<1x32xf32> -> vector<8x32xf32>
    %cst_95 = arith.constant 0.000000e+00 : f32
    %618 = vector.broadcast %cst_95 : f32 to vector<8x16xf32>
    %619 = tpu.concatenate %618, %617, %618 in 1 : vector<8x16xf32>, vector<8x32xf32>, vector<8x16xf32> -> vector<8x64xf32>
    %c0_96 = arith.constant 0 : index
    %c0_97 = arith.constant 0 : index
    %620 = vector.load %arg7[%c0_96, %c0_97] : memref<192x32xbf16, #tpu.memory_space<vmem>>, vector<192x32xbf16>
    %621 = vector.extract_strided_slice %581 {offsets = [0, 0], sizes = [1, 16], strides = [1, 1]} : vector<4x16xf32> to vector<1x16xf32>
    %622 = vector.shape_cast %621 : vector<1x16xf32> to vector<16xf32>
    %623 = vector.extract_strided_slice %581 {offsets = [1, 0], sizes = [1, 16], strides = [1, 1]} : vector<4x16xf32> to vector<1x16xf32>
    %624 = vector.shape_cast %623 : vector<1x16xf32> to vector<16xf32>
    %625 = arith.truncf %619 : vector<8x64xf32> to vector<8x64xbf16>
    %cst_98 = arith.constant 0.000000e+00 : bf16
    %626 = vector.broadcast %cst_98 : bf16 to vector<1x64xbf16>
    %627 = vector.extract_strided_slice %625 {offsets = [0, 0], sizes = [7, 64], strides = [1, 1]} : vector<8x64xbf16> to vector<7x64xbf16>
    %628 = tpu.concatenate %626, %627 in 0 : vector<1x64xbf16>, vector<7x64xbf16> -> vector<8x64xbf16>
    %629 = vector.extract_strided_slice %625 {offsets = [1, 0], sizes = [7, 64], strides = [1, 1]} : vector<8x64xbf16> to vector<7x64xbf16>
    %630 = tpu.concatenate %629, %626 in 0 : vector<7x64xbf16>, vector<1x64xbf16> -> vector<8x64xbf16>
    %631 = tpu.concatenate %628, %625, %630 in 1 : vector<8x64xbf16>, vector<8x64xbf16>, vector<8x64xbf16> -> vector<8x192xbf16>
    %cst_99 = arith.constant dense<0.000000e+00> : vector<8x32xf32>
    %632 = tpu.matmul %631, %620, %cst_99 {dimension_numbers = #tpu.dot_dimension_numbers<[1], [0], [0], [1], [0, 0, 1, 1], [], []>} : vector<8x192xbf16>, vector<192x32xbf16>, vector<8x32xf32> -> vector<8x32xf32>
    %633 = tpu.iota {dimensions = array<i32: 0>} : vector<8x1xi32>
    %c4_i32_100 = arith.constant 4 : i32
    %c0_i32_101 = arith.constant 0 : i32
    %634 = arith.cmpi eq, %c4_i32_100, %c0_i32_101 : i32
    %c1_i32_102 = arith.constant 1 : i32
    %635 = arith.select %634, %c1_i32_102, %c4_i32_100 : i32
    %636 = vector.broadcast %635 : i32 to vector<8x1xi32>
    %637 = arith.remsi %633, %636 : vector<8x1xi32>
    %c0_i32_103 = arith.constant 0 : i32
    %638 = vector.broadcast %c0_i32_103 : i32 to vector<8x1xi32>
    %639 = arith.cmpi ne, %637, %638 : vector<8x1xi32>
    %c0_i32_104 = arith.constant 0 : i32
    %640 = vector.broadcast %c0_i32_104 : i32 to vector<8x1xi32>
    %641 = arith.cmpi slt, %637, %640 : vector<8x1xi32>
    %c0_i32_105 = arith.constant 0 : i32
    %642 = arith.cmpi slt, %635, %c0_i32_105 : i32
    %643 = vector.broadcast %642 : i1 to vector<8x1xi1>
    %644 = vector.broadcast %643 : vector<8x1xi1> to vector<8x1xi1>
    %645 = arith.xori %641, %644 : vector<8x1xi1>
    %646 = arith.andi %645, %639 : vector<8x1xi1>
    %647 = vector.broadcast %635 : i32 to vector<8x1xi32>
    %648 = arith.addi %637, %647 : vector<8x1xi32>
    %649 = arith.select %646, %648, %637 : vector<8x1xi1>, vector<8x1xi32>
    %c1_i32_106 = arith.constant 1 : i32
    %650 = vector.broadcast %c1_i32_106 : i32 to vector<8x1xi32>
    %651 = arith.cmpi sge, %649, %650 : vector<8x1xi32>
    %c2_i32 = arith.constant 2 : i32
    %652 = vector.broadcast %c2_i32 : i32 to vector<8x1xi32>
    %653 = arith.cmpi sle, %649, %652 : vector<8x1xi32>
    %654 = arith.andi %651, %653 : vector<8x1xi1>
    %cst_107 = arith.constant 0.000000e+00 : f32
    %655 = vector.shape_cast %654 : vector<8x1xi1> to vector<8x1xi1>
    %656 = vector.broadcast %655 : vector<8x1xi1> to vector<8x32xi1>
    %657 = vector.broadcast %cst_107 : f32 to vector<8x32xf32>
    %658 = arith.select %656, %632, %657 : vector<8x32xi1>, vector<8x32xf32>
    %cst_108 = arith.constant dense<0.000000e+00> : vector<32xf32>
    %659 = vector.multi_reduction <add>, %658, %cst_108 [0] : vector<8x32xf32> to vector<32xf32>
    %660 = vector.extract_strided_slice %659 {offsets = [0], sizes = [16], strides = [1]} : vector<32xf32> to vector<16xf32>
    %661 = vector.extract_strided_slice %659 {offsets = [16], sizes = [16], strides = [1]} : vector<32xf32> to vector<16xf32>
    %662 = arith.addf %660, %661 : vector<16xf32>
    %cst_109 = arith.constant 1.250000e-01 : f32
    %663 = vector.broadcast %cst_109 : f32 to vector<16xf32>
    %664 = arith.mulf %662, %663 : vector<16xf32>
    %665 = tpu.concatenate %664, %664 in 0 : vector<16xf32>, vector<16xf32> -> vector<32xf32>
    %666 = vector.shape_cast %665 : vector<32xf32> to vector<1x32xf32>
    %667 = vector.broadcast %666 : vector<1x32xf32> to vector<8x32xf32>
    %668 = arith.subf %632, %667 : vector<8x32xf32>
    %669 = arith.mulf %668, %668 : vector<8x32xf32>
    %cst_110 = arith.constant 0.000000e+00 : f32
    %670 = vector.shape_cast %654 : vector<8x1xi1> to vector<8x1xi1>
    %671 = vector.broadcast %670 : vector<8x1xi1> to vector<8x32xi1>
    %672 = vector.broadcast %cst_110 : f32 to vector<8x32xf32>
    %673 = arith.select %671, %669, %672 : vector<8x32xi1>, vector<8x32xf32>
    %cst_111 = arith.constant dense<0.000000e+00> : vector<32xf32>
    %674 = vector.multi_reduction <add>, %673, %cst_111 [0] : vector<8x32xf32> to vector<32xf32>
    %675 = vector.extract_strided_slice %674 {offsets = [0], sizes = [16], strides = [1]} : vector<32xf32> to vector<16xf32>
    %676 = vector.extract_strided_slice %674 {offsets = [16], sizes = [16], strides = [1]} : vector<32xf32> to vector<16xf32>
    %677 = arith.addf %675, %676 : vector<16xf32>
    %cst_112 = arith.constant 1.250000e-01 : f32
    %678 = vector.broadcast %cst_112 : f32 to vector<16xf32>
    %679 = arith.mulf %677, %678 : vector<16xf32>
    %cst_113 = arith.constant 9.99999974E-6 : f32
    %680 = vector.broadcast %cst_113 : f32 to vector<16xf32>
    %681 = arith.addf %679, %680 : vector<16xf32>
    %682 = math.rsqrt %681 : vector<16xf32>
    %683 = arith.mulf %682, %622 : vector<16xf32>
    %684 = tpu.concatenate %683, %683 in 0 : vector<16xf32>, vector<16xf32> -> vector<32xf32>
    %685 = vector.shape_cast %684 : vector<32xf32> to vector<1x32xf32>
    %686 = vector.broadcast %685 : vector<1x32xf32> to vector<8x32xf32>
    %687 = arith.mulf %668, %686 : vector<8x32xf32>
    %688 = tpu.concatenate %624, %624 in 0 : vector<16xf32>, vector<16xf32> -> vector<32xf32>
    %689 = vector.shape_cast %688 : vector<32xf32> to vector<1x32xf32>
    %690 = vector.broadcast %689 : vector<1x32xf32> to vector<8x32xf32>
    %691 = arith.addf %687, %690 : vector<8x32xf32>
    %cst_114 = arith.constant 0.000000e+00 : f32
    %692 = vector.broadcast %cst_114 : f32 to vector<8x32xf32>
    %693 = arith.maximumf %691, %692 : vector<8x32xf32>
    %cst_115 = arith.constant 0.000000e+00 : f32
    %694 = vector.shape_cast %654 : vector<8x1xi1> to vector<8x1xi1>
    %695 = vector.broadcast %694 : vector<8x1xi1> to vector<8x32xi1>
    %696 = vector.broadcast %cst_115 : f32 to vector<8x32xf32>
    %697 = arith.select %695, %693, %696 : vector<8x32xi1>, vector<8x32xf32>
    %cst_116 = arith.constant 0.000000e+00 : f32
    %698 = vector.broadcast %cst_116 : f32 to vector<8x16xf32>
    %699 = tpu.concatenate %698, %697, %698 in 1 : vector<8x16xf32>, vector<8x32xf32>, vector<8x16xf32> -> vector<8x64xf32>
    %c0_117 = arith.constant 0 : index
    %c0_118 = arith.constant 0 : index
    %700 = vector.load %arg8[%c0_117, %c0_118] : memref<192x32xbf16, #tpu.memory_space<vmem>>, vector<192x32xbf16>
    %701 = vector.extract_strided_slice %581 {offsets = [2, 0], sizes = [1, 16], strides = [1, 1]} : vector<4x16xf32> to vector<1x16xf32>
    %702 = vector.shape_cast %701 : vector<1x16xf32> to vector<16xf32>
    %703 = vector.extract_strided_slice %581 {offsets = [3, 0], sizes = [1, 16], strides = [1, 1]} : vector<4x16xf32> to vector<1x16xf32>
    %704 = vector.shape_cast %703 : vector<1x16xf32> to vector<16xf32>
    %705 = arith.truncf %699 : vector<8x64xf32> to vector<8x64xbf16>
    %cst_119 = arith.constant 0.000000e+00 : bf16
    %706 = vector.broadcast %cst_119 : bf16 to vector<1x64xbf16>
    %707 = vector.extract_strided_slice %705 {offsets = [0, 0], sizes = [7, 64], strides = [1, 1]} : vector<8x64xbf16> to vector<7x64xbf16>
    %708 = tpu.concatenate %706, %707 in 0 : vector<1x64xbf16>, vector<7x64xbf16> -> vector<8x64xbf16>
    %709 = vector.extract_strided_slice %705 {offsets = [1, 0], sizes = [7, 64], strides = [1, 1]} : vector<8x64xbf16> to vector<7x64xbf16>
    %710 = tpu.concatenate %709, %706 in 0 : vector<7x64xbf16>, vector<1x64xbf16> -> vector<8x64xbf16>
    %711 = tpu.concatenate %708, %705, %710 in 1 : vector<8x64xbf16>, vector<8x64xbf16>, vector<8x64xbf16> -> vector<8x192xbf16>
    %cst_120 = arith.constant dense<0.000000e+00> : vector<8x32xf32>
    %712 = tpu.matmul %711, %700, %cst_120 {dimension_numbers = #tpu.dot_dimension_numbers<[1], [0], [0], [1], [0, 0, 1, 1], [], []>} : vector<8x192xbf16>, vector<192x32xbf16>, vector<8x32xf32> -> vector<8x32xf32>
    %713 = tpu.iota {dimensions = array<i32: 0>} : vector<8x1xi32>
    %c4_i32_121 = arith.constant 4 : i32
    %c0_i32_122 = arith.constant 0 : i32
    %714 = arith.cmpi eq, %c4_i32_121, %c0_i32_122 : i32
    %c1_i32_123 = arith.constant 1 : i32
    %715 = arith.select %714, %c1_i32_123, %c4_i32_121 : i32
    %716 = vector.broadcast %715 : i32 to vector<8x1xi32>
    %717 = arith.remsi %713, %716 : vector<8x1xi32>
    %c0_i32_124 = arith.constant 0 : i32
    %718 = vector.broadcast %c0_i32_124 : i32 to vector<8x1xi32>
    %719 = arith.cmpi ne, %717, %718 : vector<8x1xi32>
    %c0_i32_125 = arith.constant 0 : i32
    %720 = vector.broadcast %c0_i32_125 : i32 to vector<8x1xi32>
    %721 = arith.cmpi slt, %717, %720 : vector<8x1xi32>
    %c0_i32_126 = arith.constant 0 : i32
    %722 = arith.cmpi slt, %715, %c0_i32_126 : i32
    %723 = vector.broadcast %722 : i1 to vector<8x1xi1>
    %724 = vector.broadcast %723 : vector<8x1xi1> to vector<8x1xi1>
    %725 = arith.xori %721, %724 : vector<8x1xi1>
    %726 = arith.andi %725, %719 : vector<8x1xi1>
    %727 = vector.broadcast %715 : i32 to vector<8x1xi32>
    %728 = arith.addi %717, %727 : vector<8x1xi32>
    %729 = arith.select %726, %728, %717 : vector<8x1xi1>, vector<8x1xi32>
    %c1_i32_127 = arith.constant 1 : i32
    %730 = vector.broadcast %c1_i32_127 : i32 to vector<8x1xi32>
    %731 = arith.cmpi sge, %729, %730 : vector<8x1xi32>
    %c2_i32_128 = arith.constant 2 : i32
    %732 = vector.broadcast %c2_i32_128 : i32 to vector<8x1xi32>
    %733 = arith.cmpi sle, %729, %732 : vector<8x1xi32>
    %734 = arith.andi %731, %733 : vector<8x1xi1>
    %cst_129 = arith.constant 0.000000e+00 : f32
    %735 = vector.shape_cast %734 : vector<8x1xi1> to vector<8x1xi1>
    %736 = vector.broadcast %735 : vector<8x1xi1> to vector<8x32xi1>
    %737 = vector.broadcast %cst_129 : f32 to vector<8x32xf32>
    %738 = arith.select %736, %712, %737 : vector<8x32xi1>, vector<8x32xf32>
    %cst_130 = arith.constant dense<0.000000e+00> : vector<32xf32>
    %739 = vector.multi_reduction <add>, %738, %cst_130 [0] : vector<8x32xf32> to vector<32xf32>
    %740 = vector.extract_strided_slice %739 {offsets = [0], sizes = [16], strides = [1]} : vector<32xf32> to vector<16xf32>
    %741 = vector.extract_strided_slice %739 {offsets = [16], sizes = [16], strides = [1]} : vector<32xf32> to vector<16xf32>
    %742 = arith.addf %740, %741 : vector<16xf32>
    %cst_131 = arith.constant 1.250000e-01 : f32
    %743 = vector.broadcast %cst_131 : f32 to vector<16xf32>
    %744 = arith.mulf %742, %743 : vector<16xf32>
    %745 = tpu.concatenate %744, %744 in 0 : vector<16xf32>, vector<16xf32> -> vector<32xf32>
    %746 = vector.shape_cast %745 : vector<32xf32> to vector<1x32xf32>
    %747 = vector.broadcast %746 : vector<1x32xf32> to vector<8x32xf32>
    %748 = arith.subf %712, %747 : vector<8x32xf32>
    %749 = arith.mulf %748, %748 : vector<8x32xf32>
    %cst_132 = arith.constant 0.000000e+00 : f32
    %750 = vector.shape_cast %734 : vector<8x1xi1> to vector<8x1xi1>
    %751 = vector.broadcast %750 : vector<8x1xi1> to vector<8x32xi1>
    %752 = vector.broadcast %cst_132 : f32 to vector<8x32xf32>
    %753 = arith.select %751, %749, %752 : vector<8x32xi1>, vector<8x32xf32>
    %cst_133 = arith.constant dense<0.000000e+00> : vector<32xf32>
    %754 = vector.multi_reduction <add>, %753, %cst_133 [0] : vector<8x32xf32> to vector<32xf32>
    %755 = vector.extract_strided_slice %754 {offsets = [0], sizes = [16], strides = [1]} : vector<32xf32> to vector<16xf32>
    %756 = vector.extract_strided_slice %754 {offsets = [16], sizes = [16], strides = [1]} : vector<32xf32> to vector<16xf32>
    %757 = arith.addf %755, %756 : vector<16xf32>
    %cst_134 = arith.constant 1.250000e-01 : f32
    %758 = vector.broadcast %cst_134 : f32 to vector<16xf32>
    %759 = arith.mulf %757, %758 : vector<16xf32>
    %cst_135 = arith.constant 9.99999974E-6 : f32
    %760 = vector.broadcast %cst_135 : f32 to vector<16xf32>
    %761 = arith.addf %759, %760 : vector<16xf32>
    %762 = math.rsqrt %761 : vector<16xf32>
    %763 = arith.mulf %762, %702 : vector<16xf32>
    %764 = tpu.concatenate %763, %763 in 0 : vector<16xf32>, vector<16xf32> -> vector<32xf32>
    %765 = vector.shape_cast %764 : vector<32xf32> to vector<1x32xf32>
    %766 = vector.broadcast %765 : vector<1x32xf32> to vector<8x32xf32>
    %767 = arith.mulf %748, %766 : vector<8x32xf32>
    %768 = tpu.concatenate %704, %704 in 0 : vector<16xf32>, vector<16xf32> -> vector<32xf32>
    %769 = vector.shape_cast %768 : vector<32xf32> to vector<1x32xf32>
    %770 = vector.broadcast %769 : vector<1x32xf32> to vector<8x32xf32>
    %771 = arith.addf %767, %770 : vector<8x32xf32>
    %cst_136 = arith.constant 0.000000e+00 : f32
    %772 = vector.broadcast %cst_136 : f32 to vector<8x32xf32>
    %773 = arith.maximumf %771, %772 : vector<8x32xf32>
    %cst_137 = arith.constant 0.000000e+00 : f32
    %774 = vector.shape_cast %734 : vector<8x1xi1> to vector<8x1xi1>
    %775 = vector.broadcast %774 : vector<8x1xi1> to vector<8x32xi1>
    %776 = vector.broadcast %cst_137 : f32 to vector<8x32xf32>
    %777 = arith.select %775, %773, %776 : vector<8x32xi1>, vector<8x32xf32>
    %c0_138 = arith.constant 0 : index
    %c0_139 = arith.constant 0 : index
    %778 = vector.load %arg12[%c0_138, %c0_139] : memref<8x32xf32, #tpu.memory_space<vmem>>, vector<8x32xf32>
    tpu.vector_store %arg12[%c0_138, %c0_139], %777 {strides = array<i32>} : memref<8x32xf32, #tpu.memory_space<vmem>>, vector<8x32xf32>,
    return
  }
}

</mosaic_0001>

<bundles_post_ra>
// kernel: _unet_encoder_forward_impl.1
= control target key start
LH: loop header
LB: loop body
LE: loop exit
PB: predicated region body
PF: predicated region fallthrough
CT: control target
= control target key end

     0   :  { %vm4194_vm0 = vcmask 1040384   ;;  %vm4193_vm1 = vcmask 1041408   ;;  %vm4192_vm2 = vcmask 1042432   ;;  %vm4191_vm3 = vcmask 1043456   ;;  %s3021_s29 = smov 116   ;;  %s3022_s30 = smov 108   ;;  %s4172_s0 = inlined_call_operand.vmem [shape: f32[32,64], index: 0, kind: input, shape index: {}]   ;;  %s4173_s1 = inlined_call_operand.vmem [shape: bf16[120,64], index: 1, kind: input, shape index: {}]   ;;  %s4174_s3 = inlined_call_operand.vmem [shape: f32[4,8], index: 3, kind: input, shape index: {}]   ;;  %s4175_s2 = inlined_call_operand.vmem [shape: bf16[240,64], index: 2, kind: input, shape index: {}]   ;;  %s4176_s10 = inlined_call_operand.vmem [shape: f32[20,64], index: 10, kind: output, shape index: {0}]   ;;  %s4177_s4 = inlined_call_operand.vmem [shape: bf16[144,64], index: 4, kind: input, shape index: {}]   ;;  %s4178_s6 = inlined_call_operand.vmem [shape: f32[4,16], index: 6, kind: input, shape index: {}]   ;;  %s4179_s5 = inlined_call_operand.vmem [shape: bf16[288,64], index: 5, kind: input, shape index: {}]   ;;  %s4180_s11 = inlined_call_operand.vmem [shape: f32[12,64], index: 11, kind: output, shape index: {1}]   ;;  %s4181_s7 = inlined_call_operand.vmem [shape: bf16[192,32], index: 7, kind: input, shape index: {}]   ;;  %s4182_s9 = inlined_call_operand.vmem [shape: f32[4,16], index: 9, kind: input, shape index: {}]   ;;  %s4183_s8 = inlined_call_operand.vmem [shape: bf16[192,32], index: 8, kind: input, shape index: {}]   ;;  %s4184_s12 = inlined_call_operand.vmem [shape: f32[8,32], index: 12, kind: output, shape index: {2}]  }
   0x1   :  { %v39_v0 = vld [vmem:[%s4172_s0] sm:$0xff]  ;;  %v40_v1 = vld [vmem:[%s4172_s0 + $0x8] sm:$0xff]  ;;  %v41_v2 = vld [vmem:[%s4172_s0 + $0x10] sm:$0xff]  ;;  %vm4190_vm4 = vcmask 1044480   ;;  %vm4189_vm5 = vcmask 1045504   ;;  %vm4188_vm6 = vcmask 1046528  }
   0x2   :  { %v45_v3 = vrot.slane %v39_v0, 1  ;;  %v49_v4 = vrot.slane %v40_v1, 1  ;;  %v53_v5 = vrot.slane %v41_v2, 1  ;;  %v42_v6 = vld [vmem:[%s4172_s0 + $0x18] sm:$0xff]  ;;  %s3020_s0 = smov 124   ;;  %s3023_s13 = smov 120  }
   0x3   :  { %v57_v7 = vrot.slane %v42_v6, 1  ;;  %s3024_s14 = smov 100   ;;  %s3025_s15 = smov 112   ;;  %vm167_vm7 = vcmask 31744   ;;  %vm4198_vm8 = vcmask 64512   ;;  %vm173_vm9 = vcmask 97280  }
   0x4   :  { %v47_v8 = vmax.f32 %v39_v0, %v45_v3  ;;  %v51_v9 = vmax.f32 %v40_v1, %v49_v4  ;;  %v55_v10 = vmax.f32 %v41_v2, %v53_v5  ;;  %s3026_s16 = smov 104   ;;  %vm4187_vm10 = vcmask 130048   ;;  %s3027_s17 = smov 4  }
   0x5   :  { %v59_v11 = vmax.f32 %v42_v6, %v57_v7  ;;  %vm179_vm11 = vcmask 162816   ;;  %vm4185_vm12 = vcmask 195584   ;;  %vm185_vm13 = vcmask 228352   ;;  %s3028_s18 = smov 40   ;;  %s3030_s19 = smov 96  }
   0x6   :  { %v61_v12 = vrot.slane %v47_v8, 1  ;;  %v63_v13 = vrot.slane %v47_v8, 2  ;;  %v65_v14 = vrot.slane %v47_v8, 3  ;;  %v68_v15 = vrot.slane %v51_v9, 4  ;;  %s3031_s20 = smov 88   ;;  %s3032_s21 = smov 72  }
   0x7   :  { %v77_v16 = vrot.slane %v55_v10, 1  ;;  %v70_v17 = vrot.slane %v51_v9, 5  ;;  %v79_v19 = vrot.slane %v55_v10, 2  ;;  %v81_v20 = vrot.slane %v55_v10, 3  ;;  %s3034_s22 = smov 16   ;;  %s3035_s23 = smov 8  }
   0x8   :  { %v93_v18 = vsel %vm4194_vm0, %v47_v8, %v61_v12  ;;  %v72_v21 = vrot.slane %v51_v9, 6  ;;  %v84_v23 = vrot.slane %v59_v11, 4  ;;  %v74_v24 = vrot.slane %v51_v9, 7  ;;  %s3036_s24 = smov 32   ;;  %s3037_s25 = smov 24  }
   0x9   :  { %v95_v22 = vsel %vm4193_vm1, %v93_v18, %v63_v13  ;;  %v86_v26 = vrot.slane %v59_v11, 5  ;;  %v106_v27 = vsel %vm4194_vm0, %v55_v10, %v77_v16  ;;  %v88_v29 = vrot.slane %v59_v11, 6  ;;  %s3038_s26 = smov 48   ;;  %s3039_s27 = smov 56  }
   0xa   :  { %v97_v25 = vsel %vm4192_vm2, %v95_v22, %v65_v14  ;;  %v107_v30 = vsel %vm4193_vm1, %v106_v27, %v79_v19  ;;  %v90_v32 = vrot.slane %v59_v11, 7  ;;  %v2938_v27 = vld [vmem:[%s4173_s1 + $0x20] sm:$0xff]   ;;  %vm214_vm14 = vcmask 293888  }
   0xb   :  { %v99_v28 = vsel %vm4191_vm3, %v97_v25, %v68_v15  ;;  %v108_v33 = vsel %vm4192_vm2, %v107_v30, %v81_v20  ;;  %v2936_v25 = vld [vmem:[%s4173_s1 + $0x10] sm:$0xff]   ;;  %v2941_v30 = vld [vmem:[%s4173_s1 + $0x38] ss:$0 sps:$4 sm:$0xff]   ;;  %vm263_vm15 = vsmask.f32 1280 }
   0xc   :  { %v101_v31 = vsel %vm4190_vm4, %v99_v28, %v70_v17  ;;  %v109_v35 = vsel %vm4191_vm3, %v108_v33, %v84_v23  ;;  %v2934_v23 = vld [vmem:[%s4173_s1] sm:$0xff]   ;;  %v2939_v28 = vld [vmem:[%s4173_s1 + $0x28] sm:$0xff]   ;;  %v340_v33 = vsel %vm4191_vm3, %v2941_v30, 0 }
   0xd   :  { %v103_v34 = vsel %vm4189_vm5, %v101_v31, %v72_v21  ;;  %v110_v37 = vsel %vm4190_vm4, %v109_v35, %v86_v26  ;;  %2821 = vmatprep.subr.bf16.mxu0 %v2934_v23  ;;  %v2937_v26 = vld [vmem:[%s4173_s1 + $0x18] sm:$0xff]  }
   0xe   :  { %v105_v36 = vsel %vm4188_vm6, %v103_v34, %v74_v24  ;;  %v111_v38 = vsel %vm4189_vm5, %v110_v37, %v88_v29  ;;  %v2935_v24 = vld [vmem:[%s4173_s1 + $0x8] sm:$0xff]   ;;  %2822 = vmatpush3.bf16.msra.mxu0 %v2934_v23  ;;  %v2940_v29 = vld [vmem:[%s4173_s1 + $0x30] sm:$0xff]   ;;  %s3029_s1 = smov 80  }
   0xf   :  { %115 = vrot.lane.b32.xlu0 %v105_v36, %s3020_s0  ;;  %v112_v39 = vsel %vm4188_vm6, %v111_v38, %v90_v32  ;;  %2823 = vmatprep.subr.bf16.mxu0 %v2935_v24 }
  0x12   :  { %2824 = vmatpush3.bf16.msra.mxu0 %v2935_v24 }
  0x13   :  { %117 = vrot.lane.b32.xlu0 %v112_v39, %s3020_s0  ;;  %2825 = vmatprep.subr.bf16.mxu0 %v2936_v25 }
  0x16   :  { %2826 = vmatpush3.bf16.msra.mxu0 %v2936_v25 }
  0x17   :  { %2827 = vmatprep.subr.bf16.mxu0 %v2937_v26 }
  0x1a   :  { %2828 = vmatpush3.bf16.msra.mxu0 %v2937_v26 }
  0x1b   :  { %2829 = vmatprep.subr.bf16.mxu0 %v2938_v27 }
  0x1e   :  { %2830 = vmatpush3.bf16.msra.mxu0 %v2938_v27 }
  0x1f   :  { %2831 = vmatprep.subr.bf16.mxu0 %v2939_v28 }
  0x22   :  { %2832 = vmatpush3.bf16.msra.mxu0 %v2939_v28 }
  0x23   :  { %2833 = vmatprep.subr.bf16.mxu0 %v2940_v29 }
  0x26   :  { %2834 = vmatpush3.bf16.msra.mxu0 %v2940_v29 }
  0x27   :  { %2849 = vmatprep.subr.msk.bf16.mxu0 %vm4191_vm3, %v2941_v30 }
  0x2a   :  { %2836 = vmatpush3.bf16.msra.mxu0 %v340_v33 }
  0x81   :  { %v116_v40 = vpop.permute.xlu0 %115 }
  0x82   :  { %v121_v42 = vmax.f32 %v105_v36, %v116_v40 }
  0x85   :  { %v118_v41 = vpop.permute.xlu0 %117 }
  0x86   :  { %v122_v43 = vmax.f32 %v112_v39, %v118_v41 }
  0x88   :  { %v2894_v44 = vpack.i.bf16 %v122_v43, %v121_v42 }
  0x8a   :  { %2895 = vrot.lane.b32.xlu0 %v2894_v44, %s3021_s29  ;;  %2885 = vrot.lane.b32.xlu1 %v2894_v44, %s3020_s0 }
  0x8e   :  { %2905 = vrot.lane.b32.xlu0 %v2894_v44, %s3022_s30  ;;  %2890 = vrot.lane.b32.xlu1 %v2894_v44, %s3023_s13 }
  0x92   :  { %161 = vrot.lane.b32.xlu0 %v121_v42, %s3024_s14  ;;  %2900 = vrot.lane.b32.xlu1 %v2894_v44, %s3025_s15 }
  0x96   :  { %2910 = vrot.lane.b32.xlu1 %v2894_v44, %s3026_s16 }
  0x9a   :  { %163 = vrot.lane.b32.xlu1 %v122_v43, %s3024_s14 }
  0xfc   :  { %v2886_v45 = vpop.permute.xlu1 %2885  ;;  %v2896_v48 = vpop.permute.xlu0 %2895 }
  0xfd   :  { %v2888_v46 = vunpack.i.h.bf16 %v2886_v45  ;;  %v2887_v47 = vunpack.i.l.bf16 %v2886_v45  ;;  %v2898_v56 = vunpack.i.h.bf16 %v2896_v48  ;;  %v2897_v57 = vunpack.i.l.bf16 %v2896_v48 }
  0xfe   :  { %v4208_v48 = vmov 0 }
  0xff   :  { %v169_v52 = vsel %vm167_vm7, %v122_v43, %v2888_v46  ;;  %v168_v53 = vsel %vm167_vm7, %v121_v42, %v2887_v47 }
 0x100   :  { %v2891_v49 = vpop.permute.xlu1 %2890  ;;  %v2906_v59 = vpop.permute.xlu0 %2905 }
 0x101   :  { %v2893_v50 = vunpack.i.h.bf16 %v2891_v49  ;;  %v2892_v51 = vunpack.i.l.bf16 %v2891_v49  ;;  %v2908_v2 = vunpack.i.h.bf16 %v2906_v59  ;;  %v2907_v3 = vunpack.i.l.bf16 %v2906_v59 }
 0x103   :  { %v171_v54 = vsel %vm4198_vm8, %v168_v53, %v2892_v51  ;;  %v172_v55 = vsel %vm4198_vm8, %v169_v52, %v2893_v50 }
 0x104   :  { %v2901_v58 = vpop.permute.xlu1 %2900  ;;  %v174_v62 = vsel %vm173_vm9, %v171_v54, %v2897_v57  ;;  %v175_v63 = vsel %vm173_vm9, %v172_v55, %v2898_v56  ;;  %v162_v9 = vpop.permute.xlu0 %161  ;;  %vm3185_vm9 = vmand %vm4193_vm1, %vm263_vm15  ;;  %vm4195_vm15 = vcmask 654336  }
 0x105   :  { %v2903_v60 = vunpack.i.h.bf16 %v2901_v58  ;;  %v2902_v61 = vunpack.i.l.bf16 %v2901_v58  ;;  %v4209_v48 = vsel %vm3185_vm9, 4294967295, %v4208_v48 }
 0x107   :  { %v177_v0 = vsel %vm4187_vm10, %v174_v62, %v2902_v61  ;;  %v178_v1 = vsel %vm4187_vm10, %v175_v63, %v2903_v60  ;;  %v4210_v61 = vmov 0 }
 0x108   :  { %v2911_v4 = vpop.permute.xlu1 %2910  ;;  %v180_v7 = vsel %vm179_vm11, %v177_v0, %v2907_v3  ;;  %v181_v8 = vsel %vm179_vm11, %v178_v1, %v2908_v2  ;;  %vm4196_vm11 = vsmask.f32 7424 }
 0x109   :  { %v2913_v5 = vunpack.i.h.bf16 %v2911_v4  ;;  %v2912_v6 = vunpack.i.l.bf16 %v2911_v4 }
 0x10b   :  { %v183_v10 = vsel %vm4185_vm12, %v180_v7, %v2912_v6  ;;  %v184_v11 = vsel %vm4185_vm12, %v181_v8, %v2913_v5  ;;  %vm334_vm12 = vcmask 982016   ;;  %v390_v6 = vlaneseq }
 0x10c   :  { %v164_v12 = vpop.permute.xlu1 %163  ;;  %v186_v13 = vsel %vm185_vm13, %v183_v10, %v162_v9 }
 0x10d   :  { %v187_v14 = vsel %vm185_vm13, %v184_v11, %v164_v12  ;;  %v189_v15 = vrot.slane %v186_v13, 7  ;;  %v3209_v7 = vshrl.u32 %v390_v6, 7 }
 0x10e   :  { %v192_v16 = vrot.slane %v187_v14, 5 }
 0x10f   :  { %v195_v17 = vsel %vm4194_vm0, %v189_v15, 0.0  ;;  %v194_v20 = vsel %vm4194_vm0, 0.0, %v189_v15  ;;  %v393_v8 = vadd.s32 16, %v3209_v7  ;;  %v3213_v9 = vadd.s32 8, %v3209_v7 }
 0x110   :  { %v198_v18 = vsel %vm4192_vm2, %v192_v16, 0.0  ;;  %v196_v19 = vsel %vm4193_vm1, %v195_v17, 0.0  ;;  %v3216_v10 = vmul.u32.u64.low 3435973837, %v3209_v7  ;;  %v3217_v11 = vmul.u32.u64.high 3435973837, %v3209_v7, %v3216_v10 }
 0x111   :  { %206 = vrot.lane.b32.xlu1 %v198_v18, %s3027_s17  ;;  %v197_v21 = vsel %vm4192_vm2, %v196_v19, %v192_v16  ;;  %v3219_v12 = vmul.u32.u64.low 3435973837, %v393_v8  ;;  %v3220_v13 = vmul.u32.u64.high 3435973837, %v393_v8, %v3219_v12 }
 0x112   :  { %v2914_v22 = vpack.i.bf16 %v197_v21, %v194_v20  ;;  %v3223_v14 = vmul.u32.u64.low 3435973837, %v3213_v9  ;;  %v3224_v15 = vmul.u32.u64.high 3435973837, %v3213_v9, %v3223_v14  ;;  %v400_v16 = vshrl.u32 %v3217_v11, 3 }
 0x113   :  { %v422_v17 = vshrl.u32 %v3220_v13, 3 }
 0x114   :  { %2915 = vrot.lane.b32.xlu0 %v2914_v22, %s3027_s17  ;;  %v411_v18 = vshrl.u32 %v3224_v15, 3  ;;  %v401_v19 = vmul.u32 10, %v400_v16 }
 0x115   :  { %v423_v20 = vmul.u32 10, %v422_v17 }
 0x116   :  { %v412_v21 = vmul.u32 10, %v411_v18  ;;  %v402_v22 = vsub.s32 %v3209_v7, %v401_v19 }
 0x117   :  { %v424_v23 = vsub.s32 %v393_v8, %v423_v20 }
 0x118   :  { %v413_v24 = vsub.s32 %v3213_v9, %v412_v21  ;;  %v436_v25 = vadd.s32 10, %v402_v22 }
 0x119   :  { %vm429_vm10 = vcmp.ne.s32.totalorder %v424_v23, 0  ;;  %vm432_vm6 = vcmp.lt.s32.totalorder %v424_v23, 0  ;;  %v438_v26 = vadd.s32 10, %v424_v23 }
 0x11a   :  { %vm428_vm5 = vcmp.ne.s32.totalorder %v413_v24, 0  ;;  %vm431_vm4 = vcmp.lt.s32.totalorder %v413_v24, 0  ;;  %vm435_vm2 = vmand %vm432_vm6, %vm429_vm10  ;;  %v437_v27 = vadd.s32 10, %v413_v24  ;;  %vm3302_vm6 = vcmp.lt.s32.totalorder %v390_v6, 32 }
 0x11b   :  { %vm434_vm1 = vmand %vm431_vm4, %vm428_vm5  ;;  %v441_v29 = vsel %vm435_vm2, %v438_v26, %v424_v23  ;;  %vm3288_vm4 = vcmp.lt.s32.totalorder %v390_v6, 16  ;;  %vm3293_vm5 = vcmp.lt.s32.totalorder %v390_v6, 24  ;;  %vm3316_vm10 = vcmp.lt.s32.totalorder %v390_v6, 48 }
 0x11c   :  { %v440_v30 = vsel %vm434_vm1, %v437_v27, %v413_v24  ;;  %vm4202_vm1 = vcmask 519168  }
 0x11d   :  { %vm443_vm8 = vcmp.ge.s32.totalorder %v440_v30, 1 }
 0x183   :  { %v207_v31 = vpop.permute.xlu1 %206 }
 0x184   :  { %v213_v32 = vsel %vm167_vm7, 0.0, %v207_v31 }
 0x185   :  { %v217_v34 = vsel %vm214_vm14, %v213_v32, 0.0 }
 0x186   :  { %v234_v35 = vpack.c.bf16 %v217_v34, %v217_v34  ;;  %v2916_v36 = vpop.permute.xlu0 %2915 }
 0x187   :  { %v2918_v37 = vunpack.i.h.bf16 %v2916_v36  ;;  %v2917_v38 = vunpack.i.l.bf16 %v2916_v36 }
 0x188   :  { %v247_v39 = vshll.u32 %v234_v35, 16  ;;  %270 = vrot.lane.b32.xlu1 %v234_v35, %s3028_s18  ;;  %v244_v40 = vshrl.u32 %v234_v35, 16 }
 0x189   :  { %v212_v41 = vsel %vm167_vm7, 0.0, %v2918_v37  ;;  %v211_v42 = vsel %vm167_vm7, 0.0, %v2917_v38  ;;  %vm4197_vm7 = vsmask.f32 256 }
 0x18a   :  { %v215_v43 = vsel %vm214_vm14, %v211_v42, 0.0  ;;  %v216_v44 = vsel %vm214_vm14, %v212_v41, 0.0  ;;  %v258_v45 = vrot.slane %v247_v39, 1  ;;  %v246_v46 = vrot.slane %v244_v40, 7  ;;  %vm3198_vm13 = vmand %vm4194_vm0, %vm4197_vm7 }
 0x18b   :  { %v233_v47 = vpack.c.bf16 %v216_v44, %v215_v43  ;;  %v4211_v61 = vsel %vm3198_vm13, 4294967295, %v4210_v61  ;;  %vm4186_vm14 = vcmask 326656  }
 0x18c   :  { %v260_v49 = vor.u32 %v258_v45, %v244_v40  ;;  %v249_v50 = vor.u32 %v247_v39, %v246_v46 }
 0x18d   :  { %268 = vrot.lane.b32.xlu0 %v233_v47, %s3028_s18  ;;  %v240_v51 = vshll.u32 %v233_v47, 16  ;;  %v237_v52 = vshrl.u32 %v233_v47, 16 }
 0x18e   :  { %v265_v53 = vsel %vm3185_vm9, %v260_v49, 0 }
 0x18f   :  { %275 = vrot.lane.b32.xlu1 %v265_v53, %s3029_s1  ;;  %v256_v54 = vrot.slane %v240_v51, 1  ;;  %v239_v55 = vrot.slane %v237_v52, 7 }
 0x191   :  { %v257_v56 = vor.u32 %v256_v54, %v237_v52  ;;  %v250_v57 = vsel %vm4197_vm7, %v239_v55, %v249_v50  ;;  %v242_v58 = vor.u32 %v240_v51, %v239_v55  ;;  %vm447_vm7 = vcmp.le.s32.totalorder %v441_v29, 8 }
 0x193   :  { %v259_v59 = vsel %vm4196_vm11, %v257_v56, %v258_v45  ;;  %v254_v63 = vsel %vm3198_vm13, 0, %v242_v58  ;;  %vm444_vm11 = vcmp.ge.s32.totalorder %v441_v29, 1  ;;  %vm446_vm13 = vcmp.le.s32.totalorder %v440_v30, 8 }
 0x194   :  { %273 = vrot.lane.b32.xlu0 %v259_v59, %s3029_s1  ;;  %vm3243_vm2 = vmand %vm443_vm8, %vm446_vm13  ;;  %v3033_v59 = vmov 1966171168   ;;  %vm3307_vm8 = vcmp.lt.s32.totalorder %v390_v6, 40  ;;  %vm4232_vm13 = vcmask 64512  }
 0x1fa   :  { %v271_v60 = vpop.permute.xlu1 %270 }
 0x1fb   :  { %v283_v3 = vsel %vm4186_vm14, %v250_v57, %v271_v60  ;;  %v505_v60 = vunpack.c.l.s4 %v3033_v59 }
 0x1ff   :  { %v269_v62 = vpop.permute.xlu0 %268 }
 0x200   :  { %v280_v1 = vsel %vm4186_vm14, %v254_v63, %v269_v62  ;;  %vm430_vm14 = vcmp.lt.s32.totalorder %v402_v22, 0 }
 0x201   :  { %v276_v0 = vpop.permute.xlu1 %275 }
 0x202   :  { %v288_v5 = vsel %vm4195_vm15, %v283_v3, %v276_v0 }
 0x206   :  { %v274_v2 = vpop.permute.xlu0 %273 }
 0x207   :  { %v286_v4 = vsel %vm4195_vm15, %v280_v1, %v274_v2  ;;  %v506_v1 = vunpack.c.0.s8 %v505_v60  ;;  %v3362_v60 = vld [vmem:[%s4174_s3] sm:$0xf] }
 0x208   :  { %2837 = vmatprep.mubr.msk.bf16.mxu0 %vm334_vm12, %v286_v4 }
 0x209   :  { %2838 = vmatmul.mubr.msk.bf16.vlgmr.msra.gmra.mrb[0].mxu0 %vm334_vm12, %v288_v5  ;;  %vm427_vm12 = vcmp.ne.s32.totalorder %v402_v22, 0  ;;  %v3269_v8 = vsub.s32 %v506_v1, %v3209_v7 }
 0x20a   :  { %vm433_vm3 = vmand %vm430_vm14, %vm427_vm12 }
 0x20b   :  { %v439_v28 = vsel %vm433_vm3, %v436_v25, %v402_v22  ;;  %vm3237_vm12 = vmand %vm444_vm11, %vm447_vm7  ;;  %vm3281_vm3 = vcmp.lt.s32.totalorder %v390_v6, 8  ;;  %vm3324_vm7 = vcmp.lt.s32.totalorder %v390_v6, 56  ;;  %vm748_vm11 = vcmask 588800  }
 0x20c   :  { %vm442_vm0 = vcmp.ge.s32.totalorder %v439_v28, 1  ;;  %vm445_vm15 = vcmp.le.s32.totalorder %v439_v28, 8  ;;  %vm4233_vm14 = vmmov %vm4232_vm13 }
 0x20d   :  { %vm3231_vm9 = vmand %vm442_vm0, %vm445_vm15  ;;  %vm4203_vm0 = vcmask 523264  }
 0x20e   :  { %vm4234_vm15 = vmmov %vm4232_vm13 }
 0x2dc   :  { %v3235_v32 = vpop.f32.mrb[0].mxu0 }
 0x2dd   :  { %v3241_v34 = vpop.f32.mrb[1].mxu0  ;;  %v459_v39 = vsel %vm3237_vm12, %v3235_v32, 0.0 }
 0x2de   :  { %v457_v36 = vsel %vm3231_vm9, %v3241_v34, 0.0  ;;  %v2840_v37 = vpop.f32.mrb[2].mxu0  ;;  %v465_v44 = vsel %vm4202_vm1, %v459_v39, 0.0 }
 0x2df   :  { %v3250_v38 = vpop.f32.mrb[3].mxu0  ;;  %v461_v41 = vsel %vm4203_vm0, %v457_v36, 0.0  ;;  %v3321_v36 = vsub.s32 0, %v3209_v7 }
 0x2e0   :  { %v458_v40 = vsel %vm3243_vm2, %v3250_v38, 0.0 }
 0x2e1   :  { %v462_v42 = vsel %vm4203_vm0, %v458_v40, 0.0 }
 0x2e2   :  { %v463_v43 = vadd.f32 %v462_v42, %v461_v41 }
 0x2e4   :  { %v466_v45 = vadd.f32 %v465_v44, %v463_v43 }
 0x2e6   :  { %v467_v46 = vrot.slane %v466_v45, 4 }
 0x2e8   :  { %v468_v47 = vadd.f32 %v467_v46, %v466_v45 }
 0x2ea   :  { %v469_v49 = vrot.slane %v468_v47, 2 }
 0x2ec   :  { %v470_v50 = vadd.f32 %v469_v49, %v468_v47 }
 0x2ee   :  { %v471_v51 = vrot.slane %v470_v50, 1 }
 0x2f0   :  { %v472_v52 = vadd.f32 %v471_v51, %v470_v50 }
 0x2f2   :  { %478 = vrot.lane.b32.xlu1 %v472_v52, %s3025_s15  ;;  %474 = vrot.lane.b32.xlu0 %v472_v52, %s3023_s13 }
 0x2f6   :  { %486 = vrot.lane.b32.xlu1 %v472_v52, %s3030_s19  ;;  %482 = vrot.lane.b32.xlu0 %v472_v52, %s3026_s16 }
 0x2fa   :  { %494 = vrot.lane.b32.xlu1 %v472_v52, %s3029_s1  ;;  %490 = vrot.lane.b32.xlu0 %v472_v52, %s3031_s20 }
 0x2fe   :  { %498 = vrot.lane.b32.xlu0 %v472_v52, %s3032_s21 }
 0x364   :  { %v479_v53 = vpop.permute.xlu1 %478  ;;  %v475_v54 = vpop.permute.xlu0 %474 }
 0x365   :  { %v477_v55 = vadd.f32 %v475_v54, %v472_v52 }
 0x367   :  { %v481_v56 = vadd.f32 %v479_v53, %v477_v55 }
 0x368   :  { %v487_v57 = vpop.permute.xlu1 %486  ;;  %v483_v58 = vpop.permute.xlu0 %482 }
 0x369   :  { %v485_v62 = vadd.f32 %v483_v58, %v481_v56 }
 0x36b   :  { %v489_v63 = vadd.f32 %v487_v57, %v485_v62  ;;  %v680_v62 = vrot.slane %v3362_v60, %v3269_v8 }
 0x36c   :  { %v491_v0 = vpop.permute.xlu0 %490  ;;  %v495_v3 = vpop.permute.xlu1 %494 }
 0x36d   :  { %v493_v2 = vadd.f32 %v491_v0, %v489_v63  ;;  %v681_v63 = vcombine.high %v680_v62, %v680_v62 }
 0x36f   :  { %v497_v4 = vadd.f32 %v495_v3, %v493_v2  ;;  %v3372_v0 = vrot.slane %v681_v63, %v3269_v8 }
 0x370   :  { %v499_v5 = vpop.permute.xlu0 %498 }
 0x371   :  { %v501_v10 = vadd.f32 %v499_v5, %v497_v4 }
 0x373   :  { %v502_v11 = vmul.f32 0.0078125, %v501_v10 }
 0x375   :  { %v510_v12 = vrot.slane %v502_v11, %v3269_v8 }
 0x377   :  { %v517_v13 = vrot.slane %v510_v12, %v3269_v8 }
 0x379   :  { %521 = vrot.lane.b32.xlu0 %v517_v13, %s3034_s22  ;;  %518 = vrot.lane.b32.xlu1 %v517_v13, %s3035_s23 }
 0x37d   :  { %527 = vrot.lane.b32.xlu0 %v517_v13, %s3036_s24  ;;  %524 = vrot.lane.b32.xlu1 %v517_v13, %s3037_s25 }
 0x381   :  { %533 = vrot.lane.b32.xlu0 %v517_v13, %s3038_s26  ;;  %530 = vrot.lane.b32.xlu1 %v517_v13, %s3028_s18 }
 0x385   :  { %536 = vrot.lane.b32.xlu1 %v517_v13, %s3039_s27 }
 0x3eb   :  { %v522_v15 = vpop.permute.xlu0 %521  ;;  %v519_v16 = vpop.permute.xlu1 %518 }
 0x3ec   :  { %v543_v17 = vsel %vm3281_vm3, %v502_v11, %v519_v16 }
 0x3ed   :  { %v546_v21 = vsel %vm3288_vm4, %v543_v17, %v522_v15 }
 0x3ef   :  { %v528_v20 = vpop.permute.xlu0 %527  ;;  %v525_v22 = vpop.permute.xlu1 %524 }
 0x3f0   :  { %v549_v23 = vsel %vm3293_vm5, %v546_v21, %v525_v22 }
 0x3f1   :  { %v552_v26 = vsel %vm3302_vm6, %v549_v23, %v528_v20 }
 0x3f3   :  { %v531_v27 = vpop.permute.xlu1 %530  ;;  %v534_v28 = vpop.permute.xlu0 %533 }
 0x3f4   :  { %v555_v29 = vsel %vm3307_vm8, %v552_v26, %v531_v27 }
 0x3f5   :  { %v558_v39 = vsel %vm3316_vm10, %v555_v29, %v534_v28 }
 0x3f7   :  { %v537_v40 = vpop.permute.xlu1 %536 }
 0x3f8   :  { %v561_v41 = vsel %vm3324_vm7, %v558_v39, %v537_v40 }
 0x3f9   :  { %v566_v42 = vrot.slane %v561_v41, %v3321_v36 }
 0x3fb   :  { %v3334_v43 = vsub.f32 %v3241_v34, %v566_v42  ;;  %v3337_v44 = vsub.f32 %v3250_v38, %v566_v42  ;;  %v3340_v6 = vsub.f32 %v3235_v32, %v566_v42 }
 0x3fd   :  { %v571_v45 = vmul.f32 %v3334_v43, %v3334_v43  ;;  %v572_v46 = vmul.f32 %v3337_v44, %v3337_v44  ;;  %v573_v47 = vmul.f32 %v3340_v6, %v3340_v6 }
 0x3ff   :  { %v574_v49 = vsel %vm3231_vm9, %v571_v45, 0.0  ;;  %v575_v34 = vsel %vm3243_vm2, %v572_v46, 0.0  ;;  %v576_v38 = vsel %vm3237_vm12, %v573_v47, 0.0 }
 0x400   :  { %v577_v32 = vsel %vm4203_vm0, %v574_v49, 0.0  ;;  %v578_v50 = vsel %vm4203_vm0, %v575_v34, 0.0  ;;  %v580_v52 = vsel %vm4202_vm1, %v576_v38, 0.0  ;;  %vm922_vm1 = vcmask 916480  }
 0x401   :  { %v579_v51 = vadd.f32 %v578_v50, %v577_v32  ;;  %vm4238_vm0 = vnez %v4211_v61 }
 0x403   :  { %v581_v53 = vadd.f32 %v580_v52, %v579_v51 }
 0x405   :  { %v582_v54 = vrot.slane %v581_v53, 4 }
 0x407   :  { %v583_v55 = vadd.f32 %v582_v54, %v581_v53 }
 0x409   :  { %v584_v56 = vrot.slane %v583_v55, 2 }
 0x40b   :  { %v585_v57 = vadd.f32 %v584_v56, %v583_v55 }
 0x40d   :  { %v586_v58 = vrot.slane %v585_v57, 1 }
 0x40f   :  { %v587_v59 = vadd.f32 %v586_v58, %v585_v57 }
 0x411   :  { %593 = vrot.lane.b32.xlu1 %v587_v59, %s3025_s15  ;;  %589 = vrot.lane.b32.xlu0 %v587_v59, %s3023_s13 }
 0x415   :  { %601 = vrot.lane.b32.xlu1 %v587_v59, %s3030_s19  ;;  %597 = vrot.lane.b32.xlu0 %v587_v59, %s3026_s16 }
 0x419   :  { %609 = vrot.lane.b32.xlu1 %v587_v59, %s3029_s1  ;;  %605 = vrot.lane.b32.xlu0 %v587_v59, %s3031_s20 }
 0x41d   :  { %613 = vrot.lane.b32.xlu0 %v587_v59, %s3032_s21 }
 0x421   :  { %690 = vrot.lane.b32.xlu0 %v3372_v0, %s3035_s23 }
 0x425   :  { %693 = vrot.lane.b32.xlu0 %v3372_v0, %s3034_s22 }
 0x429   :  { %696 = vrot.lane.b32.xlu0 %v3372_v0, %s3037_s25 }
 0x42d   :  { %699 = vrot.lane.b32.xlu0 %v3372_v0, %s3036_s24 }
 0x483   :  { %v594_v1 = vpop.permute.xlu1 %593  ;;  %v590_v2 = vpop.permute.xlu0 %589 }
 0x484   :  { %v592_v3 = vadd.f32 %v590_v2, %v587_v59 }
 0x486   :  { %v596_v4 = vadd.f32 %v594_v1, %v592_v3 }
 0x487   :  { %v602_v5 = vpop.permute.xlu1 %601  ;;  %v598_v10 = vpop.permute.xlu0 %597 }
 0x488   :  { %v600_v11 = vadd.f32 %v598_v10, %v596_v4 }
 0x48a   :  { %v604_v12 = vadd.f32 %v602_v5, %v600_v11 }
 0x48b   :  { %v606_v13 = vpop.permute.xlu0 %605  ;;  %v610_v16 = vpop.permute.xlu1 %609 }
 0x48c   :  { %v608_v15 = vadd.f32 %v606_v13, %v604_v12 }
 0x48e   :  { %v612_v17 = vadd.f32 %v610_v16, %v608_v15 }
 0x48f   :  { %v614_v20 = vpop.permute.xlu0 %613 }
 0x490   :  { %v616_v21 = vadd.f32 %v614_v20, %v612_v17 }
 0x492   :  { %v617_v22 = vmul.f32 0.0078125, %v616_v21 }
 0x493   :  { %v691_v39 = vpop.permute.xlu0 %690 }
 0x494   :  { %v618_v23 = vadd.f32 1e-05, %v617_v22  ;;  %v711_v49 = vsel %vm3281_vm3, %v3372_v0, %v691_v39  ;;  %v2944_v39 = vld [vmem:[%s4175_s2 + $0x10] sm:$0xff]  }
 0x496   :  { %3008 = vrsqrt.f32 %v618_v23 }
 0x497   :  { %v694_v40 = vpop.permute.xlu0 %693 }
 0x498   :  { %v712_v50 = vsel %vm3288_vm4, %v711_v49, %v694_v40  ;;  %v2945_v40 = vld [vmem:[%s4175_s2 + $0x18] sm:$0xff]   ;;  %v2951_v49 = vld [vmem:[%s4175_s2 + $0x48] sm:$0xff]  }
 0x49b   :  { %v697_v42 = vpop.permute.xlu0 %696 }
 0x49c   :  { %v713_v54 = vsel %vm3293_vm5, %v712_v50, %v697_v42  ;;  %v2947_v42 = vld [vmem:[%s4175_s2 + $0x28] sm:$0xff]  }
 0x49d   :  { %v2955_v50 = vld [vmem:[%s4175_s2 + $0x68] sm:$0xff]  }
 0x49f   :  { %v700_v46 = vpop.permute.xlu0 %699 }
 0x4a0   :  { %v3009_v26 = vpop.eup %3008  ;;  %v714_v62 = vsel %vm3302_vm6, %v713_v54, %v700_v46  ;;  %v2949_v46 = vld [vmem:[%s4175_s2 + $0x38] sm:$0xff]  }
 0x4a1   :  { %v620_v27 = vmul.f32 %v3009_v26, %v3362_v60 }
 0x4a3   :  { %v628_v28 = vrot.slane %v620_v27, %v3269_v8 }
 0x4a5   :  { %v635_v29 = vrot.slane %v628_v28, %v3269_v8  ;;  %v2942_v28 = vld [vmem:[%s4175_s2] sm:$0xff]  }
 0x4a7   :  { %639 = vrot.lane.b32.xlu0 %v635_v29, %s3034_s22  ;;  %636 = vrot.lane.b32.xlu1 %v635_v29, %s3035_s23 }
 0x4ab   :  { %642 = vrot.lane.b32.xlu1 %v635_v29, %s3037_s25  ;;  %702 = vrot.lane.b32.xlu0 %v3372_v0, %s3028_s18 }
 0x4af   :  { %645 = vrot.lane.b32.xlu1 %v635_v29, %s3036_s24  ;;  %708 = vrot.lane.b32.xlu0 %v3372_v0, %s3039_s27 }
 0x4b3   :  { %648 = vrot.lane.b32.xlu1 %v635_v29, %s3028_s18 }
 0x4b7   :  { %651 = vrot.lane.b32.xlu1 %v635_v29, %s3038_s26 }
 0x4bb   :  { %654 = vrot.lane.b32.xlu1 %v635_v29, %s3039_s27  ;;  %v2943_v29 = vld [vmem:[%s4175_s2 + $0x8] sm:$0xff]  }
 0x4bf   :  { %705 = vrot.lane.b32.xlu1 %v3372_v0, %s3038_s26 }
 0x519   :  { %v637_v41 = vpop.permute.xlu1 %636  ;;  %v640_v32 = vpop.permute.xlu0 %639 }
 0x51a   :  { %v657_v38 = vsel %vm3281_vm3, %v620_v27, %v637_v41  ;;  %v2946_v41 = vld [vmem:[%s4175_s2 + $0x20] sm:$0xff]  }
 0x51b   :  { %v658_v51 = vsel %vm3288_vm4, %v657_v38, %v640_v32  ;;  %v2953_v38 = vld [vmem:[%s4175_s2 + $0x58] sm:$0xff]   ;;  %v2954_v32 = vld [vmem:[%s4175_s2 + $0x60] sm:$0xff]  }
 0x51d   :  { %v643_v45 = vpop.permute.xlu1 %642  ;;  %v703_v56 = vpop.permute.xlu0 %702 }
 0x51e   :  { %v659_v53 = vsel %vm3293_vm5, %v658_v51, %v643_v45  ;;  %v715_v3 = vsel %vm3307_vm8, %v714_v62, %v703_v56  ;;  %v2948_v45 = vld [vmem:[%s4175_s2 + $0x30] sm:$0xff]  }
 0x51f   :  { %v2956_v51 = vld [vmem:[%s4175_s2 + $0x70] sm:$0xff]  }
 0x521   :  { %v646_v47 = vpop.permute.xlu1 %645  ;;  %v709_v2 = vpop.permute.xlu0 %708 }
 0x522   :  { %v660_v55 = vsel %vm3302_vm6, %v659_v53, %v646_v47  ;;  %v2950_v47 = vld [vmem:[%s4175_s2 + $0x40] sm:$0xff]  }
 0x525   :  { %v649_v34 = vpop.permute.xlu1 %648 }
 0x526   :  { %v661_v57 = vsel %vm3307_vm8, %v660_v55, %v649_v34  ;;  %v2952_v34 = vld [vmem:[%s4175_s2 + $0x50] sm:$0xff]  }
 0x529   :  { %v652_v52 = vpop.permute.xlu1 %651 }
 0x52a   :  { %v662_v58 = vsel %vm3316_vm10, %v661_v57, %v652_v52 }
 0x52d   :  { %v655_v59 = vpop.permute.xlu1 %654 }
 0x52e   :  { %v663_v63 = vsel %vm3324_vm7, %v662_v58, %v655_v59 }
 0x52f   :  { %v668_v1 = vrot.slane %v663_v63, %v3321_v36 }
 0x531   :  { %v706_v4 = vpop.permute.xlu1 %705  ;;  %v670_v11 = vmul.f32 %v668_v1, %v3334_v43  ;;  %v671_v12 = vmul.f32 %v668_v1, %v3337_v44  ;;  %v672_v15 = vmul.f32 %v668_v1, %v3340_v6  ;;  %v3040_v6 = vmov 0  }
 0x532   :  { %v716_v5 = vsel %vm3316_vm10, %v715_v3, %v706_v4  ;;  %927 = vmatprep.subr.bf16.mxu1 %v3040_v6  ;;  %1409 = vmatprep.subr.bf16.mxu0 %v3040_v6 }
 0x533   :  { %v717_v10 = vsel %vm3324_vm7, %v716_v5, %v709_v2  ;;  %928 = vmatpush1.bf16.msra.mxu1 %v2942_v28 }
 0x534   :  { %v722_v13 = vrot.slane %v717_v10, %v3321_v36  ;;  %929 = vmatprep.subr.bf16.mxu1 %v3040_v6 }
 0x536   :  { %v724_v16 = vadd.f32 %v722_v13, %v670_v11  ;;  %v725_v17 = vadd.f32 %v722_v13, %v671_v12  ;;  %v726_v20 = vadd.f32 %v722_v13, %v672_v15 }
 0x537   :  { %930 = vmatpush1.bf16.msra.mxu1 %v2943_v29 }
 0x538   :  { %v729_v21 = vmax.f32 %v726_v20, 0.0  ;;  %v727_v22 = vmax.f32 %v724_v16, 0.0  ;;  %v728_v23 = vmax.f32 %v725_v17, 0.0  ;;  %931 = vmatprep.subr.bf16.mxu1 %v3040_v6 }
 0x53a   :  { %v732_v26 = vsel %vm3237_vm12, %v729_v21, 0.0  ;;  %v730_v27 = vsel %vm3231_vm9, %v727_v22, 0.0  ;;  %v731_v43 = vsel %vm3243_vm2, %v728_v23, 0.0 }
 0x53b   :  { %740 = vrot.lane.b32.xlu0 %v732_v26, %s3035_s23  ;;  %v2919_v44 = vpack.i.bf16 %v731_v43, %v730_v27  ;;  %932 = vmatpush1.bf16.msra.mxu1 %v2944_v39 }
 0x53c   :  { %933 = vmatprep.subr.bf16.mxu1 %v3040_v6 }
 0x53d   :  { %2920 = vrot.lane.b32.xlu1 %v2919_v44, %s3035_s23 }
 0x53f   :  { %934 = vmatpush1.bf16.msra.mxu1 %v2945_v40 }
 0x540   :  { %935 = vmatprep.subr.bf16.mxu1 %v3040_v6 }
 0x543   :  { %936 = vmatpush1.bf16.msra.mxu1 %v2946_v41 }
 0x544   :  { %937 = vmatprep.subr.bf16.mxu1 %v3040_v6 }
 0x547   :  { %938 = vmatpush1.bf16.msra.mxu1 %v2947_v42 }
 0x548   :  { %939 = vmatprep.subr.bf16.mxu1 %v3040_v6 }
 0x54b   :  { %940 = vmatpush1.bf16.msra.mxu1 %v2948_v45 }
 0x54c   :  { %941 = vmatprep.subr.bf16.mxu1 %v3040_v6 }
 0x54f   :  { %942 = vmatpush1.bf16.msra.mxu1 %v2949_v46 }
 0x550   :  { %943 = vmatprep.subr.bf16.mxu1 %v3040_v6 }
 0x553   :  { %944 = vmatpush1.bf16.msra.mxu1 %v2950_v47 }
 0x554   :  { %945 = vmatprep.subr.bf16.mxu1 %v3040_v6 }
 0x557   :  { %946 = vmatpush1.bf16.msra.mxu1 %v2951_v49 }
 0x558   :  { %947 = vmatprep.subr.bf16.mxu1 %v3040_v6 }
 0x55b   :  { %948 = vmatpush1.bf16.msra.mxu1 %v2952_v34 }
 0x55c   :  { %949 = vmatprep.subr.bf16.mxu1 %v3040_v6 }
 0x55f   :  { %950 = vmatpush1.bf16.msra.mxu1 %v2953_v38 }
 0x560   :  { %951 = vmatprep.subr.bf16.mxu1 %v3040_v6 }
 0x563   :  { %952 = vmatpush1.bf16.msra.mxu1 %v2954_v32 }
 0x564   :  { %953 = vmatprep.subr.bf16.mxu1 %v3040_v6 }
 0x567   :  { %954 = vmatpush1.bf16.msra.mxu1 %v2955_v50 }
 0x568   :  { %955 = vmatprep.subr.bf16.mxu1 %v3040_v6 }
 0x56b   :  { %956 = vmatpush1.bf16.msra.mxu1 %v2956_v51 }
 0x5ad   :  { %v741_v52 = vpop.permute.xlu0 %740 }
 0x5ae   :  { %v747_v53 = vsel %vm4232_vm13, 0.0, %v741_v52  ;;  %vm4235_vm13 = vsmask.f32 256 }
 0x5af   :  { %v751_v54 = vsel %vm748_vm11, %v747_v53, 0.0  ;;  %v2921_v55 = vpop.permute.xlu1 %2920 }
 0x5b0   :  { %v783_v56 = vpack.c.bf16 %v751_v54, %v751_v54  ;;  %v2923_v57 = vunpack.i.h.bf16 %v2921_v55  ;;  %v2922_v58 = vunpack.i.l.bf16 %v2921_v55 }
 0x5b2   :  { %v746_v59 = vsel %vm4233_vm14, 0.0, %v2923_v57  ;;  %v745_v62 = vsel %vm4234_vm15, 0.0, %v2922_v58  ;;  %v792_v63 = vshrl.u32 %v783_v56, 16  ;;  %v795_v3 = vshll.u32 %v783_v56, 16 }
 0x5b3   :  { %v750_v1 = vsel %vm748_vm11, %v746_v59, 0.0  ;;  %v749_v2 = vsel %vm748_vm11, %v745_v62, 0.0  ;;  %vm4236_vm14 = vsmask.f32 7424  ;;  %vm4237_vm11 = vnez %v4209_v48 }
 0x5b4   :  { %v782_v4 = vpack.c.bf16 %v750_v1, %v749_v2  ;;  %v794_v5 = vrot.slane %v792_v63, 7  ;;  %v803_v15 = vrot.slane %v795_v3, 1  ;;  %vm4206_vm15 = vcmask 261120  }
 0x5b6   :  { %810 = vrot.lane.b32.xlu1 %v782_v4, %s3029_s1  ;;  %v788_v10 = vshll.u32 %v782_v4, 16  ;;  %v785_v11 = vshrl.u32 %v782_v4, 16  ;;  %v797_v12 = vor.u32 %v795_v3, %v794_v5  ;;  %v805_v23 = vor.u32 %v803_v15, %v792_v63 }
 0x5b8   :  { %v801_v13 = vrot.slane %v788_v10, 1  ;;  %v787_v16 = vrot.slane %v785_v11, 7  ;;  %v807_v26 = vsel %vm4237_vm11, %v805_v23, 0  ;;  %vm4241_vm11 = vcmask 523264  }
 0x5ba   :  { %812 = vrot.lane.b32.xlu1 %v783_v56, %s3029_s1  ;;  %v802_v17 = vor.u32 %v801_v13, %v785_v11  ;;  %v790_v20 = vor.u32 %v788_v10, %v787_v16  ;;  %v798_v21 = vsel %vm4235_vm13, %v787_v16, %v797_v12  ;;  %vm4239_vm13 = vcmask 654336  }
 0x5bc   :  { %v804_v22 = vsel %vm4236_vm14, %v802_v17, %v803_v15  ;;  %v800_v28 = vsel %vm4238_vm0, 0, %v790_v20  ;;  %vm4240_vm14 = vmmov %vm4239_vm13 }
 0x5bd   :  { %815 = vrot.lane.b32.xlu0 %v804_v22, %s3036_s24 }
 0x5c1   :  { %817 = vrot.lane.b32.xlu0 %v807_v26, %s3036_s24 }
 0x628   :  { %v811_v27 = vpop.permute.xlu1 %810 }
 0x629   :  { %v821_v29 = vsel %vm4239_vm13, %v800_v28, %v811_v27  ;;  %vm4243_vm13 = vcmask 519168  }
 0x62c   :  { %v813_v39 = vpop.permute.xlu1 %812 }
 0x62d   :  { %v825_v41 = vsel %vm4240_vm14, %v798_v21, %v813_v39 }
 0x62f   :  { %v816_v43 = vpop.permute.xlu0 %815 }
 0x630   :  { %v829_v44 = vsel %vm4206_vm15, %v811_v27, %v816_v43 }
 0x631   :  { %2729 = vmatprep.mubr.msk.bf16.mxu1 %vm922_vm1, %v829_v44 }
 0x632   :  { %960 = vmatmul.mubr.bf16.vlgmr.msra.gmra.mrb[0].mxu1 %v821_v29 }
 0x633   :  { %v818_v40 = vpop.permute.xlu0 %817 }
 0x634   :  { %v831_v48 = vsel %vm4206_vm15, %v813_v39, %v818_v40 }
 0x635   :  { %2730 = vmatprep.mubr.msk.bf16.mxu1 %vm922_vm1, %v831_v48  ;;  %vm4242_vm1 = vmmov %vm4241_vm11 }
 0x636   :  { %vm4244_vm14 = vmmov %vm4242_vm1 }
 0x63a   :  { %968 = vmatmul.mubr.bf16.gmra.mrb[4].mxu1 %v825_v41 }
 0x705   :  { %v3518_v42 = vpop.f32.mrb[0].mxu1 }
 0x706   :  { %v975_v45 = vsel %vm3231_vm9, %v3518_v42, 0.0  ;;  %v963_v46 = vpop.f32.mrb[1].mxu1 }
 0x707   :  { %v3523_v47 = vpop.f32.mrb[2].mxu1  ;;  %v978_v38 = vsel %vm4241_vm11, %v975_v45, 0.0  ;;  %vm4245_vm11 = vmmov %vm4242_vm1 }
 0x708   :  { %v976_v49 = vsel %vm3243_vm2, %v3523_v47, 0.0  ;;  %v966_v34 = vpop.f32.mrb[3].mxu1 }
 0x709   :  { %v979_v32 = vsel %vm4242_vm1, %v976_v49, 0.0  ;;  %vm4246_vm1 = vmmov %vm4243_vm13 }
 0x70a   :  { %v980_v50 = vadd.f32 %v979_v32, %v978_v38 }
 0x70d   :  { %v969_v51 = vpop.f32.mrb[4].mxu1 }
 0x70e   :  { %v977_v52 = vsel %vm3237_vm12, %v969_v51, 0.0  ;;  %v971_v53 = vpop.f32.mrb[5].mxu1 }
 0x70f   :  { %v981_v54 = vsel %vm4243_vm13, %v977_v52, 0.0  ;;  %v972_v55 = vpop.f32.mrb[6].mxu1  ;;  %vm4254_vm13 = vcmask 1044480  }
 0x710   :  { %v982_v56 = vadd.f32 %v981_v54, %v980_v50  ;;  %v973_v57 = vpop.f32.mrb[7].mxu1 }
 0x712   :  { %v983_v58 = vrot.slane %v982_v56, 4 }
 0x714   :  { %v984_v59 = vadd.f32 %v983_v58, %v982_v56 }
 0x716   :  { %v985_v62 = vrot.slane %v984_v59, 2 }
 0x718   :  { %v986_v63 = vadd.f32 %v985_v62, %v984_v59 }
 0x71a   :  { %v987_v1 = vrot.slane %v986_v63, 1 }
 0x71c   :  { %v988_v2 = vadd.f32 %v987_v1, %v986_v63 }
 0x71e   :  { %994 = vrot.lane.b32.xlu0 %v988_v2, %s3025_s15  ;;  %990 = vrot.lane.b32.xlu1 %v988_v2, %s3023_s13 }
 0x722   :  { %1002 = vrot.lane.b32.xlu0 %v988_v2, %s3030_s19  ;;  %998 = vrot.lane.b32.xlu1 %v988_v2, %s3026_s16 }
 0x726   :  { %1010 = vrot.lane.b32.xlu0 %v988_v2, %s3029_s1  ;;  %1006 = vrot.lane.b32.xlu1 %v988_v2, %s3031_s20 }
 0x72a   :  { %1014 = vrot.lane.b32.xlu1 %v988_v2, %s3032_s21 }
 0x790   :  { %v995_v3 = vpop.permute.xlu0 %994  ;;  %v991_v4 = vpop.permute.xlu1 %990 }
 0x791   :  { %v993_v5 = vadd.f32 %v991_v4, %v988_v2 }
 0x793   :  { %v997_v10 = vadd.f32 %v995_v3, %v993_v5 }
 0x794   :  { %v1003_v11 = vpop.permute.xlu0 %1002  ;;  %v999_v12 = vpop.permute.xlu1 %998 }
 0x795   :  { %v1001_v13 = vadd.f32 %v999_v12, %v997_v10 }
 0x797   :  { %v1005_v15 = vadd.f32 %v1003_v11, %v1001_v13  ;;  %v1175_v13 = vcombine.high %v3372_v0, %v3372_v0 }
 0x798   :  { %v1007_v16 = vpop.permute.xlu1 %1006  ;;  %v1011_v20 = vpop.permute.xlu0 %1010 }
 0x799   :  { %v1009_v17 = vadd.f32 %v1007_v16, %v1005_v15 }
 0x79b   :  { %v1013_v21 = vadd.f32 %v1011_v20, %v1009_v17 }
 0x79c   :  { %v1015_v22 = vpop.permute.xlu1 %1014 }
 0x79d   :  { %v1017_v23 = vadd.f32 %v1015_v22, %v1013_v21 }
 0x79f   :  { %v1018_v26 = vmul.f32 0.0078125, %v1017_v23 }
 0x7a1   :  { %v1026_v27 = vrot.slane %v1018_v26, %v3269_v8 }
 0x7a3   :  { %v1033_v43 = vrot.slane %v1026_v27, %v3269_v8 }
 0x7a5   :  { %1037 = vrot.lane.b32.xlu1 %v1033_v43, %s3034_s22  ;;  %1034 = vrot.lane.b32.xlu0 %v1033_v43, %s3035_s23 }
 0x7a9   :  { %1043 = vrot.lane.b32.xlu1 %v1033_v43, %s3036_s24  ;;  %1040 = vrot.lane.b32.xlu0 %v1033_v43, %s3037_s25 }
 0x7ad   :  { %1049 = vrot.lane.b32.xlu1 %v1033_v43, %s3038_s26  ;;  %1046 = vrot.lane.b32.xlu0 %v1033_v43, %s3028_s18 }
 0x7b1   :  { %1052 = vrot.lane.b32.xlu0 %v1033_v43, %s3039_s27 }
 0x817   :  { %v1038_v44 = vpop.permute.xlu1 %1037  ;;  %v1035_v28 = vpop.permute.xlu0 %1034 }
 0x818   :  { %v1055_v29 = vsel %vm3281_vm3, %v1018_v26, %v1035_v28 }
 0x819   :  { %v1056_v40 = vsel %vm3288_vm4, %v1055_v29, %v1038_v44 }
 0x81b   :  { %v1044_v39 = vpop.permute.xlu1 %1043  ;;  %v1041_v48 = vpop.permute.xlu0 %1040 }
 0x81c   :  { %v1057_v41 = vsel %vm3293_vm5, %v1056_v40, %v1041_v48  ;;  %v1120_v48 = vrot.slane %v3362_v60, 2 }
 0x81d   :  { %v1058_v45 = vsel %vm3302_vm6, %v1057_v41, %v1044_v39 }
 0x81f   :  { %v1047_v46 = vpop.permute.xlu0 %1046  ;;  %v1050_v49 = vpop.permute.xlu1 %1049 }
 0x820   :  { %v1059_v34 = vsel %vm3307_vm8, %v1058_v45, %v1047_v46 }
 0x821   :  { %v1060_v38 = vsel %vm3316_vm10, %v1059_v34, %v1050_v49 }
 0x823   :  { %v1053_v32 = vpop.permute.xlu0 %1052 }
 0x824   :  { %v1061_v50 = vsel %vm3324_vm7, %v1060_v38, %v1053_v32 }
 0x825   :  { %v1066_v52 = vrot.slane %v1061_v50, %v3321_v36 }
 0x827   :  { %v3565_v53 = vsub.f32 %v3518_v42, %v1066_v52  ;;  %v3568_v54 = vsub.f32 %v3523_v47, %v1066_v52  ;;  %v3570_v55 = vsub.f32 %v969_v51, %v1066_v52 }
 0x829   :  { %v1071_v56 = vmul.f32 %v3565_v53, %v3565_v53  ;;  %v1072_v57 = vmul.f32 %v3568_v54, %v3568_v54  ;;  %v1073_v58 = vmul.f32 %v3570_v55, %v3570_v55 }
 0x82b   :  { %v1074_v59 = vsel %vm3231_vm9, %v1071_v56, 0.0  ;;  %v1075_v42 = vsel %vm3243_vm2, %v1072_v57, 0.0  ;;  %v1076_v47 = vsel %vm3237_vm12, %v1073_v58, 0.0 }
 0x82c   :  { %v1077_v51 = vsel %vm4244_vm14, %v1074_v59, 0.0  ;;  %v1078_v62 = vsel %vm4245_vm11, %v1075_v42, 0.0  ;;  %v1080_v1 = vsel %vm4246_vm1, %v1076_v47, 0.0  ;;  %vm4255_vm14 = vcmask 1045504  }
 0x82d   :  { %v1079_v63 = vadd.f32 %v1078_v62, %v1077_v51 }
 0x82f   :  { %v1081_v2 = vadd.f32 %v1080_v1, %v1079_v63 }
 0x831   :  { %v1082_v3 = vrot.slane %v1081_v2, 4 }
 0x833   :  { %v1083_v4 = vadd.f32 %v1082_v3, %v1081_v2 }
 0x835   :  { %v1084_v5 = vrot.slane %v1083_v4, 2 }
 0x837   :  { %v1085_v10 = vadd.f32 %v1084_v5, %v1083_v4 }
 0x839   :  { %v1086_v11 = vrot.slane %v1085_v10, 1 }
 0x83b   :  { %v1087_v12 = vadd.f32 %v1086_v11, %v1085_v10 }
 0x83d   :  { %1093 = vrot.lane.b32.xlu0 %v1087_v12, %s3025_s15  ;;  %1089 = vrot.lane.b32.xlu1 %v1087_v12, %s3023_s13 }
 0x841   :  { %1101 = vrot.lane.b32.xlu0 %v1087_v12, %s3030_s19  ;;  %1097 = vrot.lane.b32.xlu1 %v1087_v12, %s3026_s16 }
 0x845   :  { %1109 = vrot.lane.b32.xlu0 %v1087_v12, %s3029_s1  ;;  %1105 = vrot.lane.b32.xlu1 %v1087_v12, %s3031_s20 }
 0x849   :  { %1113 = vrot.lane.b32.xlu1 %v1087_v12, %s3032_s21 }
 0x84d   :  { %1177 = vrot.lane.b32.xlu1 %v1175_v13, %s3035_s23 }
 0x851   :  { %1180 = vrot.lane.b32.xlu1 %v1175_v13, %s3034_s22 }
 0x855   :  { %1183 = vrot.lane.b32.xlu1 %v1175_v13, %s3037_s25 }
 0x859   :  { %1186 = vrot.lane.b32.xlu1 %v1175_v13, %s3036_s24 }
 0x8af   :  { %v1094_v15 = vpop.permute.xlu0 %1093  ;;  %v1090_v16 = vpop.permute.xlu1 %1089 }
 0x8b0   :  { %v1092_v17 = vadd.f32 %v1090_v16, %v1087_v12 }
 0x8b2   :  { %v1096_v20 = vadd.f32 %v1094_v15, %v1092_v17 }
 0x8b3   :  { %v1102_v21 = vpop.permute.xlu0 %1101  ;;  %v1098_v22 = vpop.permute.xlu1 %1097 }
 0x8b4   :  { %v1100_v23 = vadd.f32 %v1098_v22, %v1096_v20 }
 0x8b6   :  { %v1104_v26 = vadd.f32 %v1102_v21, %v1100_v23 }
 0x8b7   :  { %v1106_v27 = vpop.permute.xlu1 %1105  ;;  %v1110_v44 = vpop.permute.xlu0 %1109 }
 0x8b8   :  { %v1108_v43 = vadd.f32 %v1106_v27, %v1104_v26 }
 0x8ba   :  { %v1112_v0 = vadd.f32 %v1110_v44, %v1108_v43 }
 0x8bb   :  { %v1114_v28 = vpop.permute.xlu1 %1113 }
 0x8bc   :  { %v1116_v29 = vadd.f32 %v1114_v28, %v1112_v0 }
 0x8be   :  { %v1117_v39 = vmul.f32 0.0078125, %v1116_v29 }
 0x8bf   :  { %v1178_v60 = vpop.permute.xlu1 %1177 }
 0x8c0   :  { %v1118_v40 = vadd.f32 1e-05, %v1117_v39  ;;  %v1198_v57 = vsel %vm3281_vm3, %v1175_v13, %v1178_v60 }
 0x8c2   :  { %3010 = vrsqrt.f32 %v1118_v40 }
 0x8c3   :  { %v1181_v34 = vpop.permute.xlu1 %1180 }
 0x8c4   :  { %v1199_v47 = vsel %vm3288_vm4, %v1198_v57, %v1181_v34 }
 0x8c7   :  { %v1184_v32 = vpop.permute.xlu1 %1183 }
 0x8c8   :  { %v1200_v1 = vsel %vm3293_vm5, %v1199_v47, %v1184_v32 }
 0x8cb   :  { %v1187_v52 = vpop.permute.xlu1 %1186 }
 0x8cc   :  { %v3011_v41 = vpop.eup %3010  ;;  %v1201_v10 = vsel %vm3302_vm6, %v1200_v1, %v1187_v52 }
 0x8cd   :  { %v1122_v45 = vmul.f32 %v3011_v41, %v1120_v48 }
 0x8cf   :  { %v1130_v46 = vrot.slane %v1122_v45, %v3269_v8 }
 0x8d1   :  { %v1137_v49 = vrot.slane %v1130_v46, %v3269_v8 }
 0x8d3   :  { %1141 = vrot.lane.b32.xlu1 %v1137_v49, %s3034_s22  ;;  %1138 = vrot.lane.b32.xlu0 %v1137_v49, %s3035_s23 }
 0x8d7   :  { %1144 = vrot.lane.b32.xlu0 %v1137_v49, %s3037_s25  ;;  %1189 = vrot.lane.b32.xlu1 %v1175_v13, %s3028_s18 }
 0x8db   :  { %1147 = vrot.lane.b32.xlu0 %v1137_v49, %s3036_s24  ;;  %1195 = vrot.lane.b32.xlu1 %v1175_v13, %s3039_s27 }
 0x8df   :  { %1150 = vrot.lane.b32.xlu0 %v1137_v49, %s3028_s18 }
 0x8e3   :  { %1153 = vrot.lane.b32.xlu0 %v1137_v49, %s3038_s26 }
 0x8e7   :  { %1156 = vrot.lane.b32.xlu0 %v1137_v49, %s3039_s27 }
 0x8eb   :  { %1192 = vrot.lane.b32.xlu0 %v1175_v13, %s3038_s26 }
 0x945   :  { %v1139_v38 = vpop.permute.xlu0 %1138  ;;  %v1142_v42 = vpop.permute.xlu1 %1141 }
 0x946   :  { %v1159_v59 = vsel %vm3281_vm3, %v1122_v45, %v1139_v38  ;;  %vm4247_vm3 = vmmov %vm4245_vm11  ;;  %vm4256_vm11 = vcmask 1046528  }
 0x947   :  { %v1160_v51 = vsel %vm3288_vm4, %v1159_v59, %v1142_v42 }
 0x949   :  { %v1145_v50 = vpop.permute.xlu0 %1144  ;;  %v1190_v3 = vpop.permute.xlu1 %1189 }
 0x94a   :  { %v1161_v63 = vsel %vm3293_vm5, %v1160_v51, %v1145_v50  ;;  %v1202_v13 = vsel %vm3307_vm8, %v1201_v10, %v1190_v3  ;;  %vm4248_vm5 = vmmov %vm4246_vm1  ;;  %vm4257_vm1 = vcmask 64512  }
 0x94d   :  { %v1148_v56 = vpop.permute.xlu0 %1147  ;;  %v1196_v12 = vpop.permute.xlu1 %1195 }
 0x94e   :  { %v1162_v2 = vsel %vm3302_vm6, %v1161_v63, %v1148_v56 }
 0x951   :  { %v1151_v58 = vpop.permute.xlu0 %1150 }
 0x952   :  { %v1163_v14 = vsel %vm3307_vm8, %v1162_v2, %v1151_v58  ;;  %vm4249_vm8 = vmmov %vm4247_vm3 }
 0x955   :  { %v1154_v62 = vpop.permute.xlu0 %1153 }
 0x956   :  { %v1164_v4 = vsel %vm3316_vm10, %v1163_v14, %v1154_v62 }
 0x959   :  { %v1157_v5 = vpop.permute.xlu0 %1156 }
 0x95a   :  { %v1165_v11 = vsel %vm3324_vm7, %v1164_v4, %v1157_v5 }
 0x95b   :  { %v1170_v19 = vrot.slane %v1165_v11, %v3321_v36 }
 0x95d   :  { %v1193_v15 = vpop.permute.xlu0 %1192  ;;  %v1172_v20 = vmul.f32 %v1170_v19, %v3565_v53  ;;  %v1173_v21 = vmul.f32 %v1170_v19, %v3568_v54  ;;  %v1174_v22 = vmul.f32 %v1170_v19, %v3570_v55 }
 0x95e   :  { %v1203_v16 = vsel %vm3316_vm10, %v1202_v13, %v1193_v15  ;;  %v2957_v13 = vld [vmem:[%s4177_s4] sm:$0xff]   ;;  %v2958_v15 = vld [vmem:[%s4177_s4 + $0x8] sm:$0xff]  }
 0x95f   :  { %v1204_v17 = vsel %vm3324_vm7, %v1203_v16, %v1196_v12  ;;  %vm4253_vm7 = vcmask 1043456   ;;  %1410 = vmatpush1.bf16.msra.mxu0 %v2957_v13  ;;  %v2959_v16 = vld [vmem:[%s4177_s4 + $0x10] sm:$0xff]  }
 0x960   :  { %v1209_v23 = vrot.slane %v1204_v17, %v3321_v36  ;;  %1411 = vmatprep.subr.bf16.mxu0 %v3040_v6  ;;  %v2960_v17 = vld [vmem:[%s4177_s4 + $0x18] sm:$0xff]  }
 0x962   :  { %v1211_v26 = vadd.f32 %v1209_v23, %v1172_v20  ;;  %v1212_v27 = vadd.f32 %v1209_v23, %v1173_v21  ;;  %v1213_v43 = vadd.f32 %v1209_v23, %v1174_v22  ;;  %v2961_v20 = vld [vmem:[%s4177_s4 + $0x20] sm:$0xff]   ;;  %v2962_v21 = vld [vmem:[%s4177_s4 + $0x28] sm:$0xff]   ;;  %v2963_v22 = vld [vmem:[%s4177_s4 + $0x30] sm:$0xff]  }
 0x963   :  { %1412 = vmatpush1.bf16.msra.mxu0 %v2958_v15  ;;  %v2964_v23 = vld [vmem:[%s4177_s4 + $0x38] sm:$0xff]  }
 0x964   :  { %v1214_v25 = vmax.f32 %v1211_v26, 0.0  ;;  %v1215_v44 = vmax.f32 %v1212_v27, 0.0  ;;  %v1216_v0 = vmax.f32 %v1213_v43, 0.0  ;;  %1413 = vmatprep.subr.bf16.mxu0 %v3040_v6  ;;  %v2965_v26 = vld [vmem:[%s4177_s4 + $0x40] sm:$0xff]  }
 0x966   :  { %v1217_v28 = vsel %vm3231_vm9, %v1214_v25, 0.0  ;;  %v1218_v37 = vsel %vm3243_vm2, %v1215_v44, 0.0  ;;  %v1219_v53 = vsel %vm3237_vm12, %v1216_v0, 0.0  ;;  %vm4250_vm9 = vcmask 1040384  }
 0x967   :  { %v1225_v54 = vrot.slane %v1217_v28, 1  ;;  %1221 = vst.msk [vmem:[%s4176_s10 + $0x8] sm:$0xff] %vm4247_vm3, %v1218_v37  ;;  %v1229_v55 = vrot.slane %v1218_v37, 1  ;;  %v1234_v31 = vrot.slane %v1219_v53, 1  ;;  %vm4251_vm12 = vcmask 1041408   ;;  %1414 = vmatpush1.bf16.msra.mxu0 %v2959_v16 }
 0x968   :  { %1222 = vst.msk [vmem:[%s4176_s10 + $0x10] sm:$0xf] %vm4248_vm5, %v1219_v53  ;;  %vm4252_vm2 = vcmask 1042432   ;;  %vm4258_vm3 = vcmask 130048   ;;  %vm4259_vm5 = vcmask 195584   ;;  %1415 = vmatprep.subr.bf16.mxu0 %v3040_v6 }
 0x969   :  { %1220 = vst.msk [vmem:[%s4176_s10] sm:$0xff] %vm4249_vm8, %v1217_v28  ;;  %v1227_v33 = vmax.f32 %v1217_v28, %v1225_v54  ;;  %v1231_v35 = vmax.f32 %v1217_v28, %v1229_v55  ;;  %v1232_v29 = vmax.f32 %v1218_v37, %v1229_v55  ;;  %v1236_v41 = vmax.f32 %v1218_v37, %v1234_v31  ;;  %vm4260_vm8 = vmmov %vm4250_vm9 }
 0x96a   :  { %v1237_v45 = vmax.f32 %v1219_v53, %v1234_v31 }
 0x96b   :  { %v1239_v39 = vrot.slane %v1227_v33, 1  ;;  %v1241_v40 = vrot.slane %v1227_v33, 2  ;;  %v1243_v48 = vrot.slane %v1227_v33, 3  ;;  %v1246_v46 = vrot.slane %v1231_v35, 4  ;;  %1416 = vmatpush1.bf16.msra.mxu0 %v2960_v17 }
 0x96c   :  { %v1249_v60 = vrot.slane %v1232_v29, 7  ;;  %v1252_v32 = vrot.slane %v1236_v41, 1  ;;  %v1255_v52 = vrot.slane %v1237_v45, 2  ;;  %1417 = vmatprep.subr.bf16.mxu0 %v3040_v6 }
 0x96d   :  { %v1257_v49 = vsel %vm4250_vm9, %v1239_v39, %v1241_v40  ;;  %vm4261_vm9 = vmmov %vm4254_vm13 }
 0x96e   :  { %v1258_v34 = vsel %vm4251_vm12, %v1257_v49, %v1243_v48  ;;  %vm4262_vm12 = vmmov %vm4255_vm14 }
 0x96f   :  { %v1259_v38 = vsel %vm4252_vm2, %v1258_v34, %v1246_v46  ;;  %1418 = vmatpush1.bf16.msra.mxu0 %v2961_v20 }
 0x970   :  { %v1260_v50 = vsel %vm4253_vm7, %v1259_v38, %v1249_v60  ;;  %vm4263_vm7 = vmmov %vm4256_vm11  ;;  %1419 = vmatprep.subr.bf16.mxu0 %v3040_v6  ;;  %v3738_v60 = vmul.u32.u64.low 2863311531, %v3209_v7  ;;  %v3739_v34 = vmul.u32.u64.high 2863311531, %v3209_v7, %v3738_v60 }
 0x971   :  { %v1261_v56 = vsel %vm4254_vm13, %v1260_v50, %v1232_v29  ;;  %vm4264_vm13 = vmmov %vm4257_vm1 }
 0x972   :  { %v1262_v57 = vsel %vm4255_vm14, %v1261_v56, %v1252_v32  ;;  %vm4265_vm14 = vmmov %vm4257_vm1  ;;  %v3742_v38 = vmul.u32.u64.low 2863311531, %v3213_v9  ;;  %v3743_v32 = vmul.u32.u64.high 2863311531, %v3213_v9, %v3742_v38  ;;  %v1456_v50 = vshrl.u32 %v3739_v34, 2 }
 0x973   :  { %v1263_v58 = vsel %vm4256_vm11, %v1262_v57, %v1255_v52  ;;  %1420 = vmatpush1.bf16.msra.mxu0 %v2962_v21  ;;  %vm4266_vm11 = vcmask 326656  }
 0x974   :  { %1265 = vrot.lane.b32.xlu0 %v1263_v58, %s3023_s13  ;;  %1421 = vmatprep.subr.bf16.mxu0 %v3040_v6  ;;  %v1467_v52 = vshrl.u32 %v3743_v32, 2  ;;  %v1457_v56 = vmul.u32 6, %v1456_v50 }
 0x976   :  { %v1468_v57 = vmul.u32 6, %v1467_v52 }
 0x977   :  { %1422 = vmatpush1.bf16.msra.mxu0 %v2963_v22 }
 0x978   :  { %1423 = vmatprep.subr.bf16.mxu0 %v3040_v6 }
 0x97b   :  { %1424 = vmatpush1.bf16.msra.mxu0 %v2964_v23 }
 0x97c   :  { %1425 = vmatprep.subr.bf16.mxu0 %v3040_v6 }
 0x97f   :  { %1426 = vmatpush1.bf16.msra.mxu0 %v2965_v26 }
 0x9e6   :  { %v1266_v59 = vpop.permute.xlu0 %1265 }
 0x9e7   :  { %v1268_v42 = vmax.f32 %v1263_v58, %v1266_v59  ;;  %v1458_v58 = vsub.s32 %v3209_v7, %v1457_v56  ;;  %v1469_v59 = vsub.s32 %v3213_v9, %v1468_v57  ;;  %v3787_v57 = vld [vmem:[%s4178_s6] sm:$0xf] }
 0x9e9   :  { %1273 = vrot.lane.b32.xlu0 %v1268_v42, %s3025_s15  ;;  %1270 = vrot.lane.b32.xlu1 %v1268_v42, %s3023_s13 }
 0x9ed   :  { %1276 = vrot.lane.b32.xlu1 %v1268_v42, %s3026_s16 }
 0xa5b   :  { %v1271_v47 = vpop.permute.xlu1 %1270  ;;  %v1274_v51 = vpop.permute.xlu0 %1273 }
 0xa5c   :  { %v1279_v62 = vsel %vm4257_vm1, %v1268_v42, %v1271_v47  ;;  %vm4267_vm1 = vmmov %vm4266_vm11  ;;  %v1478_v42 = vadd.s32 6, %v1458_v58  ;;  %v1479_v47 = vadd.s32 6, %v1469_v59 }
 0xa5d   :  { %v1280_v63 = vsel %vm4258_vm3, %v1279_v62, %v1274_v51  ;;  %vm1336_vm3 = vsmask.f32 5376 }
 0xa5f   :  { %v1277_v1 = vpop.permute.xlu1 %1276 }
 0xa60   :  { %v1281_v2 = vsel %vm4259_vm5, %v1280_v63, %v1277_v1  ;;  %vm4268_vm5 = vmmov %vm4262_vm12 }
 0xa61   :  { %v1283_v3 = vrot.slane %v1281_v2, 7  ;;  %v1285_v14 = vrot.slane %v1281_v2, 5 }
 0xa63   :  { %v1287_v4 = vsel %vm4260_vm8, 0.0, %v1283_v3  ;;  %v1291_v11 = vsel %vm4252_vm2, %v1285_v14, 0.0  ;;  %vm3725_vm8 = vmand %vm4268_vm5, %vm1336_vm3  ;;  %vm4271_vm2 = vcmask 130048  }
 0xa64   :  { %v1288_v5 = vsel %vm4261_vm9, %v1287_v4, 0.0  ;;  %vm4204_vm9 = vcmask 392192  }
 0xa65   :  { %v1289_v10 = vsel %vm4262_vm12, %v1288_v5, 0.0  ;;  %vm4205_vm12 = vcmask 785408  }
 0xa66   :  { %v1290_v19 = vsel %vm4263_vm7, %v1289_v10, %v1285_v14  ;;  %vm1472_vm7 = vcmp.ne.s32.totalorder %v1458_v58, 0 }
 0xa67   :  { %v2924_v12 = vpack.i.bf16 %v1291_v11, %v1290_v19 }
 0xa69   :  { %2925 = vrot.lane.b32.xlu0 %v2924_v12, %s3035_s23 }
 0xadb   :  { %v2926_v27 = vpop.permute.xlu0 %2925 }
 0xadc   :  { %v2928_v43 = vunpack.i.h.bf16 %v2926_v27  ;;  %v2927_v25 = vunpack.i.l.bf16 %v2926_v27 }
 0xade   :  { %v1301_v44 = vsel %vm4264_vm13, 0.0, %v2928_v43  ;;  %v1300_v0 = vsel %vm4265_vm14, 0.0, %v2927_v25  ;;  %vm1474_vm13 = vcmp.lt.s32.totalorder %v1458_v58, 0  ;;  %vm1473_vm14 = vcmp.ne.s32.totalorder %v1469_v59, 0 }
 0xadf   :  { %v1303_v28 = vsel %vm4266_vm11, %v1301_v44, 0.0  ;;  %v1302_v37 = vsel %vm4267_vm1, %v1300_v0, 0.0  ;;  %vm1475_vm11 = vcmp.lt.s32.totalorder %v1469_v59, 0  ;;  %vm1476_vm1 = vmand %vm1474_vm13, %vm1472_vm7  ;;  %vm4276_vm7 = vcmask 523264  }
 0xae0   :  { %v1322_v53 = vpack.c.bf16 %v1303_v28, %v1302_v37  ;;  %vm1477_vm3 = vmand %vm1475_vm11, %vm1473_vm14  ;;  %v1480_v51 = vsel %vm1476_vm1, %v1478_v42, %v1458_v58  ;;  %vm4277_vm13 = vcmask 519168   ;;  %v1624_v58 = vrot.slane %v3787_v57, %v3269_v8 }
 0xae1   :  { %v1481_v62 = vsel %vm1477_vm3, %v1479_v47, %v1469_v59  ;;  %vm1482_vm5 = vcmp.ge.s32.totalorder %v1480_v51, 1  ;;  %vm3042_vm14 = vmmov 0   ;;  %vm4280_vm11 = vcmask 130048  }
 0xae2   :  { %1340 = vrot.lane.b32.xlu1 %v1322_v53, %s3038_s26  ;;  %v1327_v54 = vshll.u32 %v1322_v53, 16  ;;  %v1324_v55 = vshrl.u32 %v1322_v53, 16  ;;  %v1625_v59 = vcombine.high %v1624_v58, %v1624_v58  ;;  %v2979_v58 = vld [vmem:[%s4179_s5 + $0x70] sm:$0xff]   ;;  %vm4281_vm1 = vmmov %vm4280_vm11  ;;  %vm4282_vm3 = vcmask 654336  }
 0xae4   :  { %v1332_v31 = vrot.slane %v1327_v54, 1  ;;  %v1326_v33 = vrot.slane %v1324_v55, 7  ;;  %v3795_v42 = vrot.slane %v1625_v59, %v3269_v8  ;;  %v2980_v59 = vld [vmem:[%s4179_s5 + $0x30] sm:$0xff]  }
 0xae6   :  { %v1333_v29 = vor.u32 %v1332_v31, %v1324_v55  ;;  %v1329_v39 = vor.u32 %v1327_v54, %v1326_v33 }
 0xae8   :  { %v1338_v40 = vsel %vm3725_vm8, %v1333_v29, 0  ;;  %v1331_v41 = vsel %vm4238_vm0, 0, %v1329_v39 }
 0xae9   :  { %1343 = vrot.lane.b32.xlu0 %v1338_v40, %s3030_s19 }
 0xb54   :  { %v1341_v48 = vpop.permute.xlu1 %1340 }
 0xb55   :  { %v1348_v45 = vsel %vm4204_vm9, %v1331_v41, %v1341_v48  ;;  %vm1483_vm9 = vcmp.ge.s32.totalorder %v1481_v62, 1 }
 0xb5b   :  { %v1344_v46 = vpop.permute.xlu0 %1343 }
 0xb5c   :  { %v1351_v49 = vsel %vm4205_vm12, %v1348_v45, %v1344_v46  ;;  %2740 = vmatprep.mubr.msk.bf16.mxu0 %vm4271_vm2, %v1344_v46  ;;  %vm1484_vm2 = vcmp.le.s32.totalorder %v1480_v51, 4  ;;  %vm1485_vm12 = vcmp.le.s32.totalorder %v1481_v62, 4 }
 0xb5d   :  { %1442 = vmatmul.mubr.bf16.vlgmr.msra.gmra.mrb[4].mxu0 %v1351_v49  ;;  %vm3749_vm15 = vmand %vm1482_vm5, %vm1484_vm2  ;;  %vm4284_vm2 = vnez %v4211_v61 }
 0xb5e   :  { %vm3753_vm0 = vmand %vm1483_vm9, %vm1485_vm12 }
 0xb5f   :  { %vm4278_vm9 = vmmov %vm4276_vm7 }
 0xb60   :  { %vm4279_vm12 = vmmov %vm4277_vm13 }
 0xb61   :  { %vm4283_vm5 = vmmov %vm4282_vm3 }
 0xc30   :  { %v1443_v1 = vpop.f32.mrb[4].mxu0 }
 0xc31   :  { %v1492_v2 = vsel %vm3749_vm15, %v1443_v1, 0.0  ;;  %v1445_v3 = vpop.f32.mrb[5].mxu0 }
 0xc32   :  { %v1446_v14 = vpop.f32.mrb[6].mxu0  ;;  %v1494_v10 = vsel %vm4276_vm7, %v1492_v2, 0.0  ;;  %vm4285_vm7 = vcmask 261120  }
 0xc33   :  { %v1493_v4 = vsel %vm3753_vm0, %v1446_v14, 0.0  ;;  %v1448_v5 = vpop.f32.mrb[7].mxu0 }
 0xc34   :  { %v1495_v11 = vsel %vm4277_vm13, %v1493_v4, 0.0  ;;  %vm4286_vm13 = vmmov %vm4278_vm9 }
 0xc35   :  { %v1496_v19 = vadd.f32 %v1495_v11, %v1494_v10 }
 0xc37   :  { %v1497_v12 = vrot.slane %v1496_v19, 4 }
 0xc39   :  { %v1498_v13 = vadd.f32 %v1497_v12, %v1496_v19 }
 0xc3b   :  { %v1499_v15 = vrot.slane %v1498_v13, 2 }
 0xc3d   :  { %v1500_v16 = vadd.f32 %v1499_v15, %v1498_v13 }
 0xc3f   :  { %v1501_v17 = vrot.slane %v1500_v16, 1 }
 0xc41   :  { %v1502_v20 = vadd.f32 %v1501_v17, %v1500_v16 }
 0xc43   :  { %1508 = vrot.lane.b32.xlu0 %v1502_v20, %s3030_s19  ;;  %1504 = vrot.lane.b32.xlu1 %v1502_v20, %s3025_s15 }
 0xc47   :  { %1512 = vrot.lane.b32.xlu1 %v1502_v20, %s3029_s1 }
 0xcb5   :  { %v1505_v21 = vpop.permute.xlu1 %1504  ;;  %v1509_v23 = vpop.permute.xlu0 %1508 }
 0xcb6   :  { %v1507_v22 = vadd.f32 %v1505_v21, %v1502_v20 }
 0xcb8   :  { %v1511_v26 = vadd.f32 %v1509_v23, %v1507_v22 }
 0xcb9   :  { %v1513_v27 = vpop.permute.xlu1 %1512 }
 0xcba   :  { %v1515_v43 = vadd.f32 %v1513_v27, %v1511_v26 }
 0xcbc   :  { %v1516_v25 = vmul.f32 0.03125, %v1515_v43 }
 0xcbe   :  { %v1524_v44 = vrot.slane %v1516_v25, %v3269_v8 }
 0xcc0   :  { %v1531_v0 = vrot.slane %v1524_v44, %v3269_v8 }
 0xcc2   :  { %1535 = vrot.lane.b32.xlu1 %v1531_v0, %s3036_s24  ;;  %1532 = vrot.lane.b32.xlu0 %v1531_v0, %s3034_s22 }
 0xcc6   :  { %1538 = vrot.lane.b32.xlu0 %v1531_v0, %s3038_s26 }
 0xd34   :  { %v1533_v28 = vpop.permute.xlu0 %1532  ;;  %v1536_v37 = vpop.permute.xlu1 %1535 }
 0xd35   :  { %v1541_v53 = vsel %vm3288_vm4, %v1516_v25, %v1533_v28 }
 0xd36   :  { %v1542_v54 = vsel %vm3302_vm6, %v1541_v53, %v1536_v37 }
 0xd38   :  { %v1539_v55 = vpop.permute.xlu0 %1538 }
 0xd39   :  { %v1543_v31 = vsel %vm3316_vm10, %v1542_v54, %v1539_v55 }
 0xd3a   :  { %v1548_v33 = vrot.slane %v1543_v31, %v3321_v36 }
 0xd3c   :  { %v1550_v29 = vsub.f32 %v1443_v1, %v1548_v33  ;;  %v1551_v39 = vsub.f32 %v1446_v14, %v1548_v33 }
 0xd3e   :  { %v1552_v40 = vmul.f32 %v1550_v29, %v1550_v29  ;;  %v1553_v48 = vmul.f32 %v1551_v39, %v1551_v39 }
 0xd40   :  { %v1554_v41 = vsel %vm3749_vm15, %v1552_v40, 0.0  ;;  %v1555_v45 = vsel %vm3753_vm0, %v1553_v48, 0.0  ;;  %v2967_v48 = vld [vmem:[%s4179_s5] sm:$0xff]  }
 0xd41   :  { %v1556_v46 = vsel %vm4278_vm9, %v1554_v41, 0.0  ;;  %v1557_v49 = vsel %vm4279_vm12, %v1555_v45, 0.0  ;;  %v2968_v41 = vld [vmem:[%s4179_s5 + $0x48] sm:$0xff]   ;;  %vm4287_vm9 = vcmask 785408  }
 0xd42   :  { %v1558_v60 = vadd.f32 %v1557_v49, %v1556_v46  ;;  %v2969_v45 = vld [vmem:[%s4179_s5 + $0x8] sm:$0xff]   ;;  %v2970_v46 = vld [vmem:[%s4179_s5 + $0x50] sm:$0xff]  }
 0xd43   :  { %v2971_v49 = vld [vmem:[%s4179_s5 + $0x10] sm:$0xff]  }
 0xd44   :  { %v1559_v34 = vrot.slane %v1558_v60, 4 }
 0xd46   :  { %v1560_v38 = vadd.f32 %v1559_v34, %v1558_v60  ;;  %v2972_v60 = vld [vmem:[%s4179_s5 + $0x58] sm:$0xff]  }
 0xd47   :  { %v2973_v34 = vld [vmem:[%s4179_s5 + $0x18] sm:$0xff]  }
 0xd48   :  { %v1561_v32 = vrot.slane %v1560_v38, 2 }
 0xd4a   :  { %v1562_v50 = vadd.f32 %v1561_v32, %v1560_v38  ;;  %v2974_v38 = vld [vmem:[%s4179_s5 + $0x60] sm:$0xff]  }
 0xd4b   :  { %v2975_v32 = vld [vmem:[%s4179_s5 + $0x20] sm:$0xff]  }
 0xd4c   :  { %v1563_v52 = vrot.slane %v1562_v50, 1 }
 0xd4e   :  { %v1564_v56 = vadd.f32 %v1563_v52, %v1562_v50  ;;  %v2976_v50 = vld [vmem:[%s4179_s5 + $0x68] sm:$0xff]  }
 0xd4f   :  { %v2977_v52 = vld [vmem:[%s4179_s5 + $0x28] sm:$0xff]  }
 0xd50   :  { %1570 = vrot.lane.b32.xlu0 %v1564_v56, %s3030_s19  ;;  %1566 = vrot.lane.b32.xlu1 %v1564_v56, %s3025_s15 }
 0xd54   :  { %1574 = vrot.lane.b32.xlu1 %v1564_v56, %s3029_s1 }
 0xd58   :  { %1634 = vrot.lane.b32.xlu1 %v3795_v42, %s3034_s22 }
 0xdc2   :  { %v1567_v47 = vpop.permute.xlu1 %1566  ;;  %v1571_v62 = vpop.permute.xlu0 %1570 }
 0xdc3   :  { %v1569_v51 = vadd.f32 %v1567_v47, %v1564_v56  ;;  %v2978_v56 = vld [vmem:[%s4179_s5 + $0x80] sm:$0xff]   ;;  %v2981_v47 = vld [vmem:[%s4179_s5 + $0x88] sm:$0xff]  }
 0xdc5   :  { %v1573_v1 = vadd.f32 %v1571_v62, %v1569_v51  ;;  %v2982_v51 = vld [vmem:[%s4179_s5 + $0x78] sm:$0xff]  }
 0xdc6   :  { %v1575_v2 = vpop.permute.xlu1 %1574  ;;  %v2983_v62 = vld [vmem:[%s4179_s5 + $0x38] sm:$0xff]  }
 0xdc7   :  { %v1577_v3 = vadd.f32 %v1575_v2, %v1573_v1 }
 0xdc9   :  { %v1578_v14 = vmul.f32 0.03125, %v1577_v3 }
 0xdca   :  { %v1635_v12 = vpop.permute.xlu1 %1634 }
 0xdcb   :  { %v1579_v4 = vadd.f32 1e-05, %v1578_v14  ;;  %v1643_v26 = vsel %vm3288_vm4, %v3795_v42, %v1635_v12 }
 0xdcd   :  { %3012 = vrsqrt.f32 %v1579_v4 }
 0xdd7   :  { %v3013_v5 = vpop.eup %3012 }
 0xdd8   :  { %v1581_v10 = vmul.f32 %v3013_v5, %v3787_v57 }
 0xdda   :  { %v1589_v11 = vrot.slane %v1581_v10, %v3269_v8 }
 0xddc   :  { %v1596_v19 = vrot.slane %v1589_v11, %v3269_v8 }
 0xdde   :  { %1600 = vrot.lane.b32.xlu1 %v1596_v19, %s3036_s24  ;;  %1597 = vrot.lane.b32.xlu0 %v1596_v19, %s3034_s22 }
 0xde2   :  { %1603 = vrot.lane.b32.xlu0 %v1596_v19, %s3038_s26  ;;  %1640 = vrot.lane.b32.xlu1 %v3795_v42, %s3038_s26 }
 0xde6   :  { %1637 = vrot.lane.b32.xlu0 %v3795_v42, %s3036_s24 }
 0xe50   :  { %v1598_v13 = vpop.permute.xlu0 %1597  ;;  %v1601_v16 = vpop.permute.xlu1 %1600 }
 0xe51   :  { %v1606_v15 = vsel %vm3288_vm4, %v1581_v10, %v1598_v13 }
 0xe52   :  { %v1607_v17 = vsel %vm3302_vm6, %v1606_v15, %v1601_v16 }
 0xe54   :  { %v1604_v20 = vpop.permute.xlu0 %1603  ;;  %v1641_v23 = vpop.permute.xlu1 %1640 }
 0xe55   :  { %v1608_v21 = vsel %vm3316_vm10, %v1607_v17, %v1604_v20 }
 0xe56   :  { %v1613_v22 = vrot.slane %v1608_v21, %v3321_v36 }
 0xe58   :  { %v1638_v27 = vpop.permute.xlu0 %1637  ;;  %v1615_v44 = vmul.f32 %v1613_v22, %v1550_v29  ;;  %v1616_v0 = vmul.f32 %v1613_v22, %v1551_v39  ;;  %v2966_v29 = vld [vmem:[%s4179_s5 + $0x40] sm:$0xff]   ;;  %v3041_v39 = vmov 0.0   ;;  %s3043_s5 = smov 64  }
 0xe59   :  { %v1644_v43 = vsel %vm3302_vm6, %v1643_v26, %v1638_v27  ;;  %2841 = vmatprep.subr.bf16.mxu0 %v3041_v39  ;;  %2796 = vmatprep.subr.bf16.mxu1 %v2966_v29 }
 0xe5a   :  { %v1645_v25 = vsel %vm3316_vm10, %v1644_v43, %v1641_v23  ;;  %2797 = vmatpush3.bf16.msra.mxu1 %v2967_v48  ;;  %2842 = vmatpush3.bf16.msra.mxu0 %v2978_v56 }
 0xe5b   :  { %v1650_v28 = vrot.slane %v1645_v25, %v3321_v36  ;;  %2798 = vmatprep.subr.bf16.mxu1 %v2968_v41  ;;  %2845 = vmatprep.mubr.msk.bf16.mxu0 %vm3042_vm14, %v3041_v39 }
 0xe5c   :  { %2843 = vmatprep.subr.bf16.mxu0 %v3041_v39 }
 0xe5d   :  { %v1652_v37 = vadd.f32 %v1650_v28, %v1615_v44  ;;  %v1653_v53 = vadd.f32 %v1650_v28, %v1616_v0 }
 0xe5e   :  { %2799 = vmatpush3.bf16.msra.mxu1 %v2969_v45  ;;  %2844 = vmatpush3.bf16.msra.mxu0 %v2981_v47 }
 0xe5f   :  { %v1654_v54 = vmax.f32 %v1652_v37, 0.0  ;;  %v1655_v55 = vmax.f32 %v1653_v53, 0.0  ;;  %2800 = vmatprep.subr.bf16.mxu1 %v2970_v46  ;;  %2253 = vmatprep.subr.bf16.mxu0 %v3040_v6 }
 0xe61   :  { %v1656_v31 = vsel %vm3749_vm15, %v1654_v54, 0.0  ;;  %v1657_v33 = vsel %vm3753_vm0, %v1655_v55, 0.0 }
 0xe62   :  { %v2929_v40 = vpack.i.bf16 %v1657_v33, %v1656_v31  ;;  %2801 = vmatpush3.bf16.msra.mxu1 %v2971_v49 }
 0xe63   :  { %2802 = vmatprep.subr.bf16.mxu1 %v2972_v60 }
 0xe64   :  { %2930 = vrot.lane.b32.xlu0 %v2929_v40, %s3034_s22 }
 0xe66   :  { %2803 = vmatpush3.bf16.msra.mxu1 %v2973_v34 }
 0xe67   :  { %2804 = vmatprep.subr.bf16.mxu1 %v2974_v38 }
 0xe6a   :  { %2805 = vmatpush3.bf16.msra.mxu1 %v2975_v32 }
 0xe6b   :  { %2806 = vmatprep.subr.bf16.mxu1 %v2976_v50 }
 0xe6e   :  { %2807 = vmatpush3.bf16.msra.mxu1 %v2977_v52 }
 0xe6f   :  { %2808 = vmatprep.subr.bf16.mxu1 %v2979_v58 }
 0xe72   :  { %2809 = vmatpush3.bf16.msra.mxu1 %v2980_v59 }
 0xe73   :  { %2810 = vmatprep.subr.bf16.mxu1 %v2982_v51 }
 0xe76   :  { %2811 = vmatpush3.bf16.msra.mxu1 %v2983_v62 }
 0xe77   :  { %2550 = vmatprep.subr.bf16.mxu1 %v3040_v6 }
 0xed6   :  { %v2931_v1 = vpop.permute.xlu0 %2930 }
 0xed7   :  { %v2933_v2 = vunpack.i.h.bf16 %v2931_v1  ;;  %v2932_v3 = vunpack.i.l.bf16 %v2931_v1 }
 0xed9   :  { %v1667_v14 = vsel %vm4280_vm11, 0.0, %v2933_v2  ;;  %v1666_v4 = vsel %vm4281_vm1, 0.0, %v2932_v3  ;;  %vm4290_vm11 = vmmov %vm4279_vm12 }
 0xeda   :  { %v1669_v5 = vsel %vm4282_vm3, %v1667_v14, 0.0  ;;  %v1668_v10 = vsel %vm4283_vm5, %v1666_v4, 0.0  ;;  %vm4296_vm3 = vcmask 130048  }
 0xedb   :  { %v1706_v11 = vpack.c.bf16 %v1669_v5, %v1668_v10 }
 0xedd   :  { %1721 = vrot.lane.b32.xlu1 %v1706_v11, %s3030_s19  ;;  %v1708_v19 = vshrl.u32 %v1706_v11, 16  ;;  %v1711_v12 = vshll.u32 %v1706_v11, 16 }
 0xedf   :  { %v1716_v13 = vrot.slane %v1711_v12, 1  ;;  %v1710_v15 = vrot.slane %v1708_v19, 7 }
 0xee1   :  { %v1717_v16 = vor.u32 %v1716_v13, %v1708_v19  ;;  %v1713_v17 = vor.u32 %v1711_v12, %v1710_v15 }
 0xee3   :  { %v1719_v20 = vsel %vm3725_vm8, %v1717_v16, 0  ;;  %v1715_v23 = vsel %vm4284_vm2, 0, %v1713_v17  ;;  %vm4288_vm8 = vmmov %vm4286_vm13 }
 0xee4   :  { %1724 = vrot.lane.b32.xlu0 %v1719_v20, %s3043_s5  ;;  %vm4289_vm14 = vmmov %vm4288_vm8 }
 0xee5   :  { %vm4291_vm1 = vmmov %vm4288_vm8 }
 0xf4f   :  { %v1722_v21 = vpop.permute.xlu1 %1721 }
 0xf50   :  { %v1728_v27 = vsel %vm4287_vm9, %v1715_v23, %v1722_v21  ;;  %vm4300_vm9 = vcmask 1044480  }
 0xf56   :  { %v1725_v22 = vpop.permute.xlu0 %1724 }
 0xf57   :  { %2846 = vmatmul.mubr.msk.bf16.vlgmr.msra.gmra.mrb[8].mxu0 %vm4285_vm7, %v1725_v22  ;;  %v1731_v26 = vsel %vm4286_vm13, %v1722_v21, %v1725_v22  ;;  %vm4299_vm13 = vcmask 1043456  }
 0xf58   :  { %1875 = vmatprep.mubr.bf16.mxu1 %v1731_v26 }
 0xf59   :  { %1876 = vmatmul.mubr.bf16.vlgmr.msra.gmra.mrb[8].mxu1 %v1728_v27 }
0x102a   :  { %v1918_v43 = vpop.f32.mrb[8].mxu0 }
0x102b   :  { %v2847_v25 = vpop.f32.mrb[9].mxu0 }
0x102c   :  { %v2812_v35 = vpop.f32.mrb[8].mxu1  ;;  %v1921_v44 = vpop.f32.mrb[10].mxu0 }
0x102d   :  { %v2813_v0 = vpop.f32.mrb[9].mxu1  ;;  %v2848_v28 = vpop.f32.mrb[11].mxu0 }
0x102e   :  { %v2814_v37 = vadd.f32 %v2813_v0, %v2812_v35  ;;  %v2815_v53 = vpop.f32.mrb[10].mxu1  ;;  %v2052_v35 = vcombine.high %v3795_v42, %v3795_v42 }
0x102f   :  { %v2816_v54 = vpop.f32.mrb[11].mxu1 }
0x1030   :  { %v1919_v55 = vadd.f32 %v2814_v37, %v1918_v43  ;;  %v2817_v31 = vadd.f32 %v2816_v54, %v2815_v53 }
0x1032   :  { %v1925_v33 = vsel %vm3749_vm15, %v1919_v55, 0.0  ;;  %v1922_v40 = vadd.f32 %v2817_v31, %v1921_v44 }
0x1033   :  { %v1927_v39 = vsel %vm4288_vm8, %v1925_v33, 0.0  ;;  %v2014_v33 = vrot.slane %v3787_v57, 2  ;;  %vm4301_vm8 = vcmask 1046528  }
0x1034   :  { %v1926_v29 = vsel %vm3753_vm0, %v1922_v40, 0.0 }
0x1035   :  { %v1928_v48 = vsel %vm4279_vm12, %v1926_v29, 0.0  ;;  %vm4302_vm12 = vmmov %vm4296_vm3 }
0x1036   :  { %v1929_v41 = vadd.f32 %v1928_v48, %v1927_v39 }
0x1038   :  { %v1930_v45 = vrot.slane %v1929_v41, 4 }
0x103a   :  { %v1931_v46 = vadd.f32 %v1930_v45, %v1929_v41 }
0x103c   :  { %v1932_v49 = vrot.slane %v1931_v46, 2 }
0x103e   :  { %v1933_v60 = vadd.f32 %v1932_v49, %v1931_v46 }
0x1040   :  { %v1934_v34 = vrot.slane %v1933_v60, 1 }
0x1042   :  { %v1935_v38 = vadd.f32 %v1934_v34, %v1933_v60 }
0x1044   :  { %1941 = vrot.lane.b32.xlu0 %v1935_v38, %s3030_s19  ;;  %1937 = vrot.lane.b32.xlu1 %v1935_v38, %s3025_s15 }
0x1048   :  { %1945 = vrot.lane.b32.xlu1 %v1935_v38, %s3029_s1 }
0x10b6   :  { %v1938_v32 = vpop.permute.xlu1 %1937  ;;  %v1942_v52 = vpop.permute.xlu0 %1941 }
0x10b7   :  { %v1940_v50 = vadd.f32 %v1938_v32, %v1935_v38 }
0x10b9   :  { %v1944_v56 = vadd.f32 %v1942_v52, %v1940_v50 }
0x10ba   :  { %v1946_v58 = vpop.permute.xlu1 %1945 }
0x10bb   :  { %v1948_v59 = vadd.f32 %v1946_v58, %v1944_v56 }
0x10bd   :  { %v1949_v47 = vmul.f32 0.03125, %v1948_v59 }
0x10bf   :  { %v1957_v51 = vrot.slane %v1949_v47, %v3269_v8 }
0x10c1   :  { %v1964_v62 = vrot.slane %v1957_v51, %v3269_v8 }
0x10c3   :  { %1968 = vrot.lane.b32.xlu1 %v1964_v62, %s3036_s24  ;;  %1965 = vrot.lane.b32.xlu0 %v1964_v62, %s3034_s22 }
0x10c7   :  { %1971 = vrot.lane.b32.xlu0 %v1964_v62, %s3038_s26 }
0x1135   :  { %v1966_v1 = vpop.permute.xlu0 %1965  ;;  %v1969_v2 = vpop.permute.xlu1 %1968 }
0x1136   :  { %v1974_v3 = vsel %vm3288_vm4, %v1949_v47, %v1966_v1 }
0x1137   :  { %v1975_v14 = vsel %vm3302_vm6, %v1974_v3, %v1969_v2 }
0x1139   :  { %v1972_v4 = vpop.permute.xlu0 %1971 }
0x113a   :  { %v1976_v5 = vsel %vm3316_vm10, %v1975_v14, %v1972_v4 }
0x113b   :  { %v1981_v10 = vrot.slane %v1976_v5, %v3321_v36 }
0x113d   :  { %v1983_v11 = vsub.f32 %v1919_v55, %v1981_v10  ;;  %v1984_v19 = vsub.f32 %v1922_v40, %v1981_v10 }
0x113f   :  { %v1985_v12 = vmul.f32 %v1983_v11, %v1983_v11  ;;  %v1986_v13 = vmul.f32 %v1984_v19, %v1984_v19 }
0x1141   :  { %v1987_v15 = vsel %vm3749_vm15, %v1985_v12, 0.0  ;;  %v1988_v16 = vsel %vm3753_vm0, %v1986_v13, 0.0 }
0x1142   :  { %v1989_v17 = vsel %vm4289_vm14, %v1987_v15, 0.0  ;;  %v1990_v20 = vsel %vm4290_vm11, %v1988_v16, 0.0  ;;  %vm4303_vm14 = vcmask 392192  }
0x1143   :  { %v1991_v21 = vadd.f32 %v1990_v20, %v1989_v17 }
0x1145   :  { %v1992_v22 = vrot.slane %v1991_v21, 4 }
0x1147   :  { %v1993_v23 = vadd.f32 %v1992_v22, %v1991_v21 }
0x1149   :  { %v1994_v26 = vrot.slane %v1993_v23, 2 }
0x114b   :  { %v1995_v27 = vadd.f32 %v1994_v26, %v1993_v23 }
0x114d   :  { %v1996_v43 = vrot.slane %v1995_v27, 1 }
0x114f   :  { %v1997_v25 = vadd.f32 %v1996_v43, %v1995_v27 }
0x1151   :  { %2003 = vrot.lane.b32.xlu0 %v1997_v25, %s3030_s19  ;;  %1999 = vrot.lane.b32.xlu1 %v1997_v25, %s3025_s15 }
0x1155   :  { %2007 = vrot.lane.b32.xlu1 %v1997_v25, %s3029_s1 }
0x1159   :  { %2054 = vrot.lane.b32.xlu1 %v2052_v35, %s3034_s22 }
0x11c3   :  { %v2000_v44 = vpop.permute.xlu1 %1999  ;;  %v2004_v28 = vpop.permute.xlu0 %2003 }
0x11c4   :  { %v2002_v0 = vadd.f32 %v2000_v44, %v1997_v25  ;;  %v2984_v44 = vld [vmem:[%s4181_s7] sm:$0xff]  }
0x11c5   :  { %2254 = vmatpush1.bf16.msra.mxu0 %v2984_v44  ;;  %v4060_v44 = vld [vmem:[%s4182_s9] sm:$0xf] }
0x11c6   :  { %v2006_v37 = vadd.f32 %v2004_v28, %v2002_v0  ;;  %v2985_v0 = vld [vmem:[%s4181_s7 + $0x8] sm:$0xff]   ;;  %2255 = vmatprep.subr.bf16.mxu0 %v3040_v6  ;;  %v2986_v28 = vld [vmem:[%s4181_s7 + $0x10] sm:$0xff]  }
0x11c7   :  { %v2008_v53 = vpop.permute.xlu1 %2007 }
0x11c8   :  { %v2010_v54 = vadd.f32 %v2008_v53, %v2006_v37  ;;  %v2987_v37 = vld [vmem:[%s4181_s7 + $0x18] sm:$0xff]   ;;  %v2988_v53 = vld [vmem:[%s4181_s7 + $0x20] sm:$0xff]  }
0x11c9   :  { %2256 = vmatpush1.bf16.msra.mxu0 %v2985_v0  ;;  %v2401_v0 = vrot.slane %v4060_v44, %v3269_v8 }
0x11ca   :  { %v2011_v55 = vmul.f32 0.03125, %v2010_v54  ;;  %2257 = vmatprep.subr.bf16.mxu0 %v3040_v6  ;;  %v2989_v54 = vld [vmem:[%s4181_s7 + $0x28] sm:$0xff]  }
0x11cb   :  { %v2055_v42 = vpop.permute.xlu1 %2054 }
0x11cc   :  { %v2012_v31 = vadd.f32 1e-05, %v2011_v55  ;;  %v2063_v32 = vsel %vm3288_vm4, %v2052_v35, %v2055_v42  ;;  %v2990_v55 = vld [vmem:[%s4181_s7 + $0x30] sm:$0xff]  }
0x11cd   :  { %2258 = vmatpush1.bf16.msra.mxu0 %v2986_v28  ;;  %v2402_v28 = vcombine.high %v2401_v0, %v2401_v0 }
0x11ce   :  { %3014 = vrsqrt.f32 %v2012_v31  ;;  %2259 = vmatprep.subr.bf16.mxu0 %v3040_v6  ;;  %v2991_v31 = vld [vmem:[%s4181_s7 + $0x38] sm:$0xff]  }
0x11d1   :  { %2260 = vmatpush1.bf16.msra.mxu0 %v2987_v37  ;;  %v4065_v37 = vrot.slane %v2402_v28, %v3269_v8 }
0x11d2   :  { %2261 = vmatprep.subr.bf16.mxu0 %v3040_v6 }
0x11d5   :  { %2262 = vmatpush1.bf16.msra.mxu0 %v2988_v53 }
0x11d6   :  { %2263 = vmatprep.subr.bf16.mxu0 %v3040_v6 }
0x11d8   :  { %v3015_v40 = vpop.eup %3014 }
0x11d9   :  { %v2016_v29 = vmul.f32 %v3015_v40, %v2014_v33  ;;  %2264 = vmatpush1.bf16.msra.mxu0 %v2989_v54  ;;  %v2992_v33 = vld [vmem:[%s4181_s7 + $0x40] sm:$0xff]   ;;  %v2993_v40 = vld [vmem:[%s4181_s7 + $0x48] sm:$0xff]  }
0x11da   :  { %2265 = vmatprep.subr.bf16.mxu0 %v3040_v6 }
0x11db   :  { %v2024_v39 = vrot.slane %v2016_v29, %v3269_v8 }
0x11dd   :  { %v2031_v48 = vrot.slane %v2024_v39, %v3269_v8  ;;  %2266 = vmatpush1.bf16.msra.mxu0 %v2990_v55  ;;  %v2995_v39 = vld [vmem:[%s4181_s7 + $0x58] sm:$0xff]  }
0x11de   :  { %2267 = vmatprep.subr.bf16.mxu0 %v3040_v6 }
0x11df   :  { %2035 = vrot.lane.b32.xlu1 %v2031_v48, %s3036_s24  ;;  %2032 = vrot.lane.b32.xlu0 %v2031_v48, %s3034_s22 }
0x11e1   :  { %2268 = vmatpush1.bf16.msra.mxu0 %v2991_v31 }
0x11e2   :  { %2269 = vmatprep.subr.bf16.mxu0 %v3040_v6 }
0x11e3   :  { %2038 = vrot.lane.b32.xlu0 %v2031_v48, %s3038_s26  ;;  %2060 = vrot.lane.b32.xlu1 %v2052_v35, %s3038_s26 }
0x11e5   :  { %2270 = vmatpush1.bf16.msra.mxu0 %v2992_v33 }
0x11e6   :  { %2271 = vmatprep.subr.bf16.mxu0 %v3040_v6 }
0x11e7   :  { %2057 = vrot.lane.b32.xlu0 %v2052_v35, %s3036_s24 }
0x11e9   :  { %2272 = vmatpush1.bf16.msra.mxu0 %v2993_v40 }
0x11ea   :  { %2273 = vmatprep.subr.bf16.mxu0 %v3040_v6 }
0x1251   :  { %v2033_v41 = vpop.permute.xlu0 %2032  ;;  %v2036_v45 = vpop.permute.xlu1 %2035 }
0x1252   :  { %v2041_v57 = vsel %vm3288_vm4, %v2016_v29, %v2033_v41  ;;  %v2994_v29 = vld [vmem:[%s4181_s7 + $0x50] sm:$0xff]  }
0x1253   :  { %v2042_v46 = vsel %vm3302_vm6, %v2041_v57, %v2036_v45  ;;  %2274 = vmatpush1.bf16.msra.mxu0 %v2994_v29 }
0x1254   :  { %2275 = vmatprep.subr.bf16.mxu0 %v3040_v6 }
0x1255   :  { %v2039_v49 = vpop.permute.xlu0 %2038  ;;  %v2061_v38 = vpop.permute.xlu1 %2060 }
0x1256   :  { %v2043_v60 = vsel %vm3316_vm10, %v2042_v46, %v2039_v49 }
0x1257   :  { %v2048_v34 = vrot.slane %v2043_v60, %v3321_v36  ;;  %2276 = vmatpush1.bf16.msra.mxu0 %v2995_v39 }
0x1259   :  { %v2058_v50 = vpop.permute.xlu0 %2057  ;;  %v2050_v58 = vmul.f32 %v2048_v34, %v1983_v11  ;;  %v2051_v59 = vmul.f32 %v2048_v34, %v1984_v19 }
0x125a   :  { %v2064_v52 = vsel %vm3302_vm6, %v2063_v32, %v2058_v50  ;;  %vm4292_vm6 = vmmov %vm4290_vm11  ;;  %vm2168_vm11 = vsmask.f32 3328 }
0x125b   :  { %v2065_v56 = vsel %vm3316_vm10, %v2064_v52, %v2061_v38  ;;  %vm4294_vm10 = vcmask 1041408  }
0x125c   :  { %v2070_v47 = vrot.slane %v2065_v56, %v3321_v36 }
0x125e   :  { %v2072_v51 = vadd.f32 %v2070_v47, %v2050_v58  ;;  %v2073_v62 = vadd.f32 %v2070_v47, %v2051_v59  ;;  %v2297_v59 = vand.u32 3, %v3209_v7 }
0x1260   :  { %v2074_v1 = vmax.f32 %v2072_v51, 0.0  ;;  %v2075_v2 = vmax.f32 %v2073_v62, 0.0 }
0x1262   :  { %v2076_v3 = vsel %vm3749_vm15, %v2074_v1, 0.0  ;;  %v2077_v14 = vsel %vm3753_vm0, %v2075_v2, 0.0  ;;  %vm4293_vm0 = vcmask 1040384   ;;  %vm4295_vm15 = vcmask 1042432  }
0x1263   :  { %2078 = vst.msk [vmem:[%s4180_s11] sm:$0xff] %vm4291_vm1, %v2076_v3  ;;  %v2082_v24 = vrot.slane %v2076_v3, 1  ;;  %v2086_v30 = vrot.slane %v2077_v14, 1  ;;  %vm4297_vm5 = vmmov %vm4293_vm0 }
0x1264   :  { %2079 = vst.msk [vmem:[%s4180_s11 + $0x8] sm:$0xf] %vm4292_vm6, %v2077_v14  ;;  %vm4298_vm7 = vmmov %vm4295_vm15 }
0x1265   :  { %v2084_v4 = vmax.f32 %v2076_v3, %v2082_v24  ;;  %v2088_v5 = vmax.f32 %v2076_v3, %v2086_v30  ;;  %v2089_v10 = vmax.f32 %v2077_v14, %v2086_v30  ;;  %vm4304_vm1 = vmmov %vm4299_vm13 }
0x1266   :  { %vm4028_vm6 = vmand %vm4304_vm1, %vm2168_vm11 }
0x1267   :  { %v2091_v63 = vrot.slane %v2084_v4, 1  ;;  %v2093_v11 = vrot.slane %v2084_v4, 2  ;;  %v2096_v19 = vrot.slane %v2088_v5, 5  ;;  %v2099_v9 = vrot.slane %v2089_v10, 6 }
0x1269   :  { %v2101_v12 = vsel %vm4293_vm0, %v2091_v63, %v2093_v11  ;;  %vm4307_vm0 = vcmask 523264  }
0x126a   :  { %v2102_v13 = vsel %vm4294_vm10, %v2101_v12, %v2096_v19  ;;  %vm4308_vm10 = vmmov %vm4307_vm0 }
0x126b   :  { %v2103_v15 = vsel %vm4295_vm15, %v2102_v13, %v2099_v9  ;;  %vm2305_vm15 = vcmp.ge.s32.totalorder %v2297_v59, 1 }
0x126c   :  { %2105 = vrot.lane.b32.xlu0 %v2103_v15, %s3025_s15 }
0x12de   :  { %v2106_v16 = vpop.permute.xlu0 %2105 }
0x12df   :  { %v2108_v17 = vmax.f32 %v2103_v15, %v2106_v16 }
0x12e1   :  { %2110 = vrot.lane.b32.xlu1 %v2108_v17, %s3025_s15 }
0x1353   :  { %v2111_v20 = vpop.permute.xlu1 %2110 }
0x1354   :  { %v2113_v21 = vsel %vm4296_vm3, %v2108_v17, %v2111_v20  ;;  %vm2306_vm3 = vcmp.le.s32.totalorder %v2297_v59, 2  ;;  %v3000_v59 = vld [vmem:[%s4183_s8 + $0x20] sm:$0xff]  }
0x1355   :  { %v2115_v22 = vrot.slane %v2113_v21, 7  ;;  %v2117_v26 = vrot.slane %v2113_v21, 5 }
0x1357   :  { %v2119_v23 = vsel %vm4297_vm5, 0.0, %v2115_v22  ;;  %vm4039_vm5 = vmand %vm2305_vm15, %vm2306_vm3 }
0x1358   :  { %v2120_v27 = vsel %vm4298_vm7, %v2119_v23, 0.0  ;;  %vm4311_vm7 = vcmask 261120  }
0x1359   :  { %v2121_v43 = vsel %vm4299_vm13, %v2120_v27, 0.0  ;;  %vm4312_vm13 = vmmov %vm4311_vm7 }
0x135a   :  { %v2122_v25 = vsel %vm4300_vm9, %v2121_v43, %v2117_v26  ;;  %vm4313_vm9 = vmmov %vm4302_vm12 }
0x135b   :  { %v2123_v35 = vsel %vm4301_vm8, %v2122_v25, 0.0  ;;  %vm4314_vm8 = vmmov %vm4303_vm14 }
0x135c   :  { %2125 = vrot.lane.b32.xlu0 %v2123_v35, %s3034_s22  ;;  %vm4317_vm11 = vmmov %vm4311_vm7 }
0x13ce   :  { %v2126_v48 = vpop.permute.xlu0 %2125 }
0x13cf   :  { %v2128_v42 = vsel %vm4302_vm12, 0.0, %v2126_v48  ;;  %vm4315_vm12 = vmmov %vm4307_vm0 }
0x13d0   :  { %v2129_v41 = vsel %vm4303_vm14, %v2128_v42, 0.0  ;;  %vm4316_vm14 = vmmov %vm4307_vm0 }
0x13d1   :  { %v2154_v57 = vpack.c.bf16 %v2129_v41, %v2129_v41 }
0x13d3   :  { %v2156_v45 = vshrl.u32 %v2154_v57, 16  ;;  %v2159_v46 = vshll.u32 %v2154_v57, 16  ;;  %2172 = vrot.lane.b32.xlu1 %v2154_v57, %s3043_s5 }
0x13d5   :  { %v2164_v49 = vrot.slane %v2159_v46, 1  ;;  %v2158_v60 = vrot.slane %v2156_v45, 7 }
0x13d7   :  { %v2165_v38 = vor.u32 %v2164_v49, %v2156_v45  ;;  %v2161_v32 = vor.u32 %v2159_v46, %v2158_v60 }
0x13d9   :  { %v2170_v50 = vsel %vm4028_vm6, %v2165_v38, 0  ;;  %v2163_v56 = vsel %vm4284_vm2, 0, %v2161_v32 }
0x13da   :  { %2772 = vmatprep.mubr.msk.bf16.mxu0 %vm4307_vm0, %v2170_v50  ;;  %v2996_v50 = vld [vmem:[%s4183_s8] sm:$0xff]  }
0x13db   :  { %2551 = vmatpush1.bf16.msra.mxu1 %v2996_v50 }
0x13dc   :  { %2552 = vmatprep.subr.bf16.mxu1 %v3040_v6 }
0x1445   :  { %v2173_v52 = vpop.permute.xlu1 %2172 }
0x1446   :  { %v2176_v58 = vsel %vm4308_vm10, %v2163_v56, %v2173_v52  ;;  %v2997_v52 = vld [vmem:[%s4183_s8 + $0x8] sm:$0xff]   ;;  %v2998_v56 = vld [vmem:[%s4183_s8 + $0x10] sm:$0xff]  }
0x1447   :  { %2286 = vmatmul.mubr.bf16.vlgmr.msra.gmra.mrb[12].mxu0 %v2176_v58  ;;  %2553 = vmatpush1.bf16.msra.mxu1 %v2997_v52  ;;  %v2999_v58 = vld [vmem:[%s4183_s8 + $0x18] sm:$0xff]  }
0x1448   :  { %2554 = vmatprep.subr.bf16.mxu1 %v3040_v6 }
0x144b   :  { %2555 = vmatpush1.bf16.msra.mxu1 %v2998_v56 }
0x144c   :  { %2556 = vmatprep.subr.bf16.mxu1 %v3040_v6 }
0x144f   :  { %2557 = vmatpush1.bf16.msra.mxu1 %v2999_v58  ;;  %v2647_v58 = vrot.slane %v4060_v44, 2 }
0x1450   :  { %2558 = vmatprep.subr.bf16.mxu1 %v3040_v6 }
0x1453   :  { %2559 = vmatpush1.bf16.msra.mxu1 %v3000_v59 }
0x1454   :  { %2560 = vmatprep.subr.bf16.mxu1 %v3040_v6 }
0x151a   :  { %v2287_v51 = vpop.f32.mrb[12].mxu0 }
0x151b   :  { %v2310_v62 = vsel %vm4039_vm5, %v2287_v51, 0.0  ;;  %v2289_v1 = vpop.f32.mrb[13].mxu0 }
0x151c   :  { %v2311_v2 = vsel %vm4311_vm7, %v2310_v62, 0.0  ;;  %v2290_v3 = vpop.f32.mrb[14].mxu0  ;;  %v3002_v62 = vld [vmem:[%s4183_s8 + $0x30] sm:$0xff]   ;;  %v3003_v1 = vld [vmem:[%s4183_s8 + $0x38] sm:$0xff]  }
0x151d   :  { %v2312_v14 = vrot.slane %v2311_v2, 4  ;;  %v2291_v24 = vpop.f32.mrb[15].mxu0  ;;  %v3005_v3 = vld [vmem:[%s4183_s8 + $0x48] sm:$0xff]  }
0x151e   :  { %v3007_v24 = vld [vmem:[%s4183_s8 + $0x58] sm:$0xff]  }
0x151f   :  { %v2313_v30 = vadd.f32 %v2312_v14, %v2311_v2  ;;  %v3004_v2 = vld [vmem:[%s4183_s8 + $0x40] sm:$0xff]   ;;  %v3006_v14 = vld [vmem:[%s4183_s8 + $0x50] sm:$0xff]  }
0x1521   :  { %v2314_v4 = vrot.slane %v2313_v30, 2 }
0x1523   :  { %v2315_v5 = vadd.f32 %v2314_v4, %v2313_v30 }
0x1525   :  { %v2316_v7 = vrot.slane %v2315_v5, 1 }
0x1527   :  { %v2317_v10 = vadd.f32 %v2316_v7, %v2315_v5 }
0x1529   :  { %2319 = vrot.lane.b32.xlu0 %v2317_v10, %s3025_s15 }
0x159b   :  { %v2320_v63 = vpop.permute.xlu0 %2319 }
0x159c   :  { %v2322_v11 = vadd.f32 %v2320_v63, %v2317_v10 }
0x159e   :  { %v2323_v19 = vmul.f32 0.125, %v2322_v11 }
0x15a0   :  { %v2331_v9 = vrot.slane %v2323_v19, %v3269_v8 }
0x15a2   :  { %v2338_v12 = vrot.slane %v2331_v9, %v3269_v8 }
0x15a4   :  { %2339 = vrot.lane.b32.xlu1 %v2338_v12, %s3034_s22 }
0x1616   :  { %v2340_v13 = vpop.permute.xlu1 %2339 }
0x1617   :  { %v2342_v15 = vsel %vm3288_vm4, %v2323_v19, %v2340_v13 }
0x1618   :  { %v2347_v16 = vrot.slane %v2342_v15, %v3321_v36 }
0x161a   :  { %v2349_v17 = vsub.f32 %v2287_v51, %v2347_v16  ;;  %v3001_v51 = vld [vmem:[%s4183_s8 + $0x28] sm:$0xff]  }
0x161b   :  { %2561 = vmatpush1.bf16.msra.mxu1 %v3001_v51 }
0x161c   :  { %v2350_v20 = vmul.f32 %v2349_v17, %v2349_v17  ;;  %2562 = vmatprep.subr.bf16.mxu1 %v3040_v6 }
0x161e   :  { %v2351_v21 = vsel %vm4039_vm5, %v2350_v20, 0.0 }
0x161f   :  { %v2352_v22 = vsel %vm4312_vm13, %v2351_v21, 0.0  ;;  %2563 = vmatpush1.bf16.msra.mxu1 %v3002_v62 }
0x1620   :  { %v2353_v23 = vrot.slane %v2352_v22, 4  ;;  %2564 = vmatprep.subr.bf16.mxu1 %v3040_v6 }
0x1622   :  { %v2354_v26 = vadd.f32 %v2353_v23, %v2352_v22 }
0x1623   :  { %2565 = vmatpush1.bf16.msra.mxu1 %v3003_v1 }
0x1624   :  { %v2355_v27 = vrot.slane %v2354_v26, 2  ;;  %2566 = vmatprep.subr.bf16.mxu1 %v3040_v6 }
0x1626   :  { %v2356_v43 = vadd.f32 %v2355_v27, %v2354_v26 }
0x1627   :  { %2567 = vmatpush1.bf16.msra.mxu1 %v3004_v2 }
0x1628   :  { %v2357_v25 = vrot.slane %v2356_v43, 1  ;;  %2568 = vmatprep.subr.bf16.mxu1 %v3040_v6 }
0x162a   :  { %v2358_v35 = vadd.f32 %v2357_v25, %v2356_v43 }
0x162b   :  { %2569 = vmatpush1.bf16.msra.mxu1 %v3005_v3 }
0x162c   :  { %2360 = vrot.lane.b32.xlu0 %v2358_v35, %s3025_s15  ;;  %2570 = vmatprep.subr.bf16.mxu1 %v3040_v6 }
0x162f   :  { %2571 = vmatpush1.bf16.msra.mxu1 %v3006_v14 }
0x1630   :  { %2411 = vrot.lane.b32.xlu0 %v4065_v37, %s3034_s22  ;;  %2572 = vmatprep.subr.bf16.mxu1 %v3040_v6 }
0x1633   :  { %2573 = vmatpush1.bf16.msra.mxu1 %v3007_v24 }
0x169e   :  { %v2361_v53 = vpop.permute.xlu0 %2360 }
0x169f   :  { %v2363_v54 = vadd.f32 %v2361_v53, %v2358_v35 }
0x16a1   :  { %v2364_v55 = vmul.f32 0.125, %v2363_v54 }
0x16a2   :  { %v2412_v48 = vpop.permute.xlu0 %2411 }
0x16a3   :  { %v2365_v31 = vadd.f32 1e-05, %v2364_v55  ;;  %v2414_v42 = vsel %vm3288_vm4, %v4065_v37, %v2412_v48 }
0x16a4   :  { %v2419_v46 = vrot.slane %v2414_v42, %v3321_v36 }
0x16a5   :  { %3016 = vrsqrt.f32 %v2365_v31 }
0x16af   :  { %v3017_v33 = vpop.eup %3016 }
0x16b0   :  { %v2367_v40 = vmul.f32 %v3017_v33, %v4060_v44 }
0x16b2   :  { %v2375_v29 = vrot.slane %v2367_v40, %v3269_v8 }
0x16b4   :  { %v2382_v39 = vrot.slane %v2375_v29, %v3269_v8 }
0x16b6   :  { %2383 = vrot.lane.b32.xlu1 %v2382_v39, %s3034_s22 }
0x1728   :  { %v2384_v41 = vpop.permute.xlu1 %2383 }
0x1729   :  { %v2386_v57 = vsel %vm3288_vm4, %v2367_v40, %v2384_v41 }
0x172a   :  { %v2391_v45 = vrot.slane %v2386_v57, %v3321_v36 }
0x172c   :  { %v2393_v49 = vmul.f32 %v2391_v45, %v2349_v17 }
0x172e   :  { %v2421_v60 = vadd.f32 %v2419_v46, %v2393_v49 }
0x1730   :  { %v2422_v38 = vmax.f32 %v2421_v60, 0.0 }
0x1732   :  { %v2423_v32 = vsel %vm4039_vm5, %v2422_v38, 0.0  ;;  %v2676_v38 = vcombine.high %v4065_v37, %v4065_v37 }
0x1733   :  { %2425 = vrot.lane.b32.xlu1 %v2423_v32, %s3034_s22 }
0x17a5   :  { %v2426_v30 = vpop.permute.xlu1 %2425 }
0x17a6   :  { %v2428_v4 = vsel %vm4313_vm9, 0.0, %v2426_v30 }
0x17a7   :  { %v2429_v5 = vsel %vm4314_vm8, %v2428_v4, 0.0 }
0x17a8   :  { %v2454_v7 = vpack.c.bf16 %v2429_v5, %v2429_v5 }
0x17aa   :  { %v2456_v10 = vshrl.u32 %v2454_v7, 16  ;;  %v2459_v63 = vshll.u32 %v2454_v7, 16  ;;  %2469 = vrot.lane.b32.xlu0 %v2454_v7, %s3043_s5 }
0x17ac   :  { %v2464_v11 = vrot.slane %v2459_v63, 1  ;;  %v2458_v19 = vrot.slane %v2456_v10, 7 }
0x17ae   :  { %v2465_v9 = vor.u32 %v2464_v11, %v2456_v10  ;;  %v2461_v12 = vor.u32 %v2459_v63, %v2458_v19 }
0x17b0   :  { %v2467_v13 = vsel %vm4028_vm6, %v2465_v9, 0  ;;  %v2463_v15 = vsel %vm4284_vm2, 0, %v2461_v12  ;;  %vm4318_vm2 = vmmov %vm4311_vm7 }
0x17b1   :  { %2785 = vmatprep.mubr.msk.bf16.mxu1 %vm4315_vm12, %v2467_v13  ;;  %vm4319_vm1 = vmmov %vm4318_vm2 }
0x181c   :  { %v2470_v6 = vpop.permute.xlu0 %2469 }
0x181d   :  { %v2473_v16 = vsel %vm4316_vm14, %v2463_v15, %v2470_v6 }
0x181e   :  { %2583 = vmatmul.mubr.bf16.vlgmr.msra.gmra.mrb[12].mxu1 %v2473_v16 }
0x18f1   :  { %v2584_v17 = vpop.f32.mrb[12].mxu1 }
0x18f2   :  { %v2590_v20 = vsel %vm4039_vm5, %v2584_v17, 0.0  ;;  %v2586_v21 = vpop.f32.mrb[13].mxu1 }
0x18f3   :  { %v2591_v22 = vsel %vm4317_vm11, %v2590_v20, 0.0  ;;  %v2587_v23 = vpop.f32.mrb[14].mxu1 }
0x18f4   :  { %v2592_v26 = vrot.slane %v2591_v22, 4  ;;  %v2588_v34 = vpop.f32.mrb[15].mxu1 }
0x18f6   :  { %v2593_v27 = vadd.f32 %v2592_v26, %v2591_v22 }
0x18f8   :  { %v2594_v43 = vrot.slane %v2593_v27, 2 }
0x18fa   :  { %v2595_v25 = vadd.f32 %v2594_v43, %v2593_v27 }
0x18fc   :  { %v2596_v35 = vrot.slane %v2595_v25, 1 }
0x18fe   :  { %v2597_v0 = vadd.f32 %v2596_v35, %v2595_v25 }
0x1900   :  { %2599 = vrot.lane.b32.xlu1 %v2597_v0, %s3025_s15 }
0x1972   :  { %v2600_v61 = vpop.permute.xlu1 %2599 }
0x1973   :  { %v2602_v28 = vadd.f32 %v2600_v61, %v2597_v0 }
0x1975   :  { %v2603_v53 = vmul.f32 0.125, %v2602_v28 }
0x1977   :  { %v2611_v54 = vrot.slane %v2603_v53, %v3269_v8 }
0x1979   :  { %v2618_v55 = vrot.slane %v2611_v54, %v3269_v8 }
0x197b   :  { %2619 = vrot.lane.b32.xlu0 %v2618_v55, %s3034_s22 }
0x19ed   :  { %v2620_v31 = vpop.permute.xlu0 %2619 }
0x19ee   :  { %v2622_v33 = vsel %vm3288_vm4, %v2603_v53, %v2620_v31 }
0x19ef   :  { %v2627_v40 = vrot.slane %v2622_v33, %v3321_v36 }
0x19f1   :  { %v2629_v29 = vsub.f32 %v2584_v17, %v2627_v40 }
0x19f3   :  { %v2630_v39 = vmul.f32 %v2629_v29, %v2629_v29 }
0x19f5   :  { %v2631_v48 = vsel %vm4039_vm5, %v2630_v39, 0.0 }
0x19f6   :  { %v2632_v42 = vsel %vm4318_vm2, %v2631_v48, 0.0 }
0x19f7   :  { %v2633_v41 = vrot.slane %v2632_v42, 4 }
0x19f9   :  { %v2634_v57 = vadd.f32 %v2633_v41, %v2632_v42 }
0x19fb   :  { %v2635_v45 = vrot.slane %v2634_v57, 2 }
0x19fd   :  { %v2636_v46 = vadd.f32 %v2635_v45, %v2634_v57 }
0x19ff   :  { %v2637_v49 = vrot.slane %v2636_v46, 1 }
0x1a01   :  { %v2638_v60 = vadd.f32 %v2637_v49, %v2636_v46 }
0x1a03   :  { %2640 = vrot.lane.b32.xlu1 %v2638_v60, %s3025_s15 }
0x1a07   :  { %2678 = vrot.lane.b32.xlu1 %v2676_v38, %s3034_s22 }
0x1a75   :  { %v2641_v32 = vpop.permute.xlu1 %2640 }
0x1a76   :  { %v2643_v50 = vadd.f32 %v2641_v32, %v2638_v60 }
0x1a78   :  { %v2644_v52 = vmul.f32 0.125, %v2643_v50 }
0x1a79   :  { %v2679_v2 = vpop.permute.xlu1 %2678 }
0x1a7a   :  { %v2645_v56 = vadd.f32 1e-05, %v2644_v52  ;;  %v2681_v37 = vsel %vm3288_vm4, %v2676_v38, %v2679_v2 }
0x1a7b   :  { %v2686_v44 = vrot.slane %v2681_v37, %v3321_v36 }
0x1a7c   :  { %3018 = vrsqrt.f32 %v2645_v56 }
0x1a86   :  { %v3019_v59 = vpop.eup %3018 }
0x1a87   :  { %v2649_v51 = vmul.f32 %v3019_v59, %v2647_v58 }
0x1a89   :  { %v2657_v62 = vrot.slane %v2649_v51, %v3269_v8 }
0x1a8b   :  { %v2664_v1 = vrot.slane %v2657_v62, %v3269_v8 }
0x1a8d   :  { %2665 = vrot.lane.b32.xlu0 %v2664_v1, %s3034_s22 }
0x1aff   :  { %v2666_v3 = vpop.permute.xlu0 %2665 }
0x1b00   :  { %v2668_v14 = vsel %vm3288_vm4, %v2649_v51, %v2666_v3 }
0x1b01   :  { %v2673_v24 = vrot.slane %v2668_v14, %v3321_v36 }
0x1b03   :  { %v2675_v30 = vmul.f32 %v2673_v24, %v2629_v29 }
0x1b05   :  { %v2688_v4 = vadd.f32 %v2686_v44, %v2675_v30 }
0x1b07   :  { %v2689_v5 = vmax.f32 %v2688_v4, 0.0 }
0x1b09   :  { %v2690_v8 = vsel %vm4039_vm5, %v2689_v5, 0.0 }
0x1b0a   :  { %2691 = vst.msk [vmem:[%s4184_s12] sm:$0xff] %vm4319_vm1, %v2690_v8 }

</bundles_post_ra>
